<compile_context>
chip_gen: v5e
topology: v5e:2x2
jax: 0.10.0
libtpu: 0.0.40
codegen_flags: <defaults>
</compile_context>

<pallas_src>
import functools

import jax
import jax.numpy as jnp
from jax import lax
from jax.experimental import pallas as pl
from jax.experimental.pallas import tpu as pltpu

_BN_EPS = 1e-5
_LANE = 128
_SQRT_HALF = 0.7071067811865476
_INV_1414 = 1.0 / 1.414  # constant divide -> multiply


# ---------------------------------------------------------------------------
# VMEM limit / compiler params (generation aware)
# ---------------------------------------------------------------------------
@functools.lru_cache(maxsize=None)
def _vmem_limit_bytes():
    cap = 64 * 1024 * 1024
    try:
        info = pltpu.get_tpu_info()
        cap = int(getattr(info, "vmem_capacity_bytes", cap))
    except Exception:
        pass
    # ~5/8 of physical VMEM, capped: ~40 MiB on v7x (64 MiB VMEM), 64 MiB on
    # v5e/v6e (128 MiB) -> leaves headroom for XLA fusions + pipeline buffers.
    return int(min((cap * 5) // 8, 64 * 1024 * 1024))


def _compiler_params():
    return pltpu.CompilerParams(
        dimension_semantics=("parallel", "parallel"),
        vmem_limit_bytes=_vmem_limit_bytes(),
    )


# ---------------------------------------------------------------------------
# In-kernel math helpers
# ---------------------------------------------------------------------------
def _erf(x):
    # Abramowitz & Stegun 7.1.26, |err| < 1.5e-7 -> matches PyTorch's exact
    # (erf-based) nn.GELU() well inside the 1e-4 budget.  The divide is replaced
    # by an EUP approx reciprocal refined with one Newton-Raphson step
    # (rel err ~6e-8), keeping the VALU slot free.
    p = 0.3275911
    a1, a2, a3, a4, a5 = 0.254829592, -0.284496736, 1.421413741, -1.453152027, 1.061405429
    sgn = jnp.where(x < 0.0, -1.0, 1.0)
    ax = jnp.abs(x)
    d = 1.0 + p * ax
    r = pl.reciprocal(d, approx=True)
    t = r * (2.0 - d * r)            # one Newton-Raphson refinement
    poly = ((((a5 * t + a4) * t + a3) * t + a2) * t + a1) * t
    return sgn * (1.0 - poly * jnp.exp(-ax * ax))


def _gelu(x):
    return 0.5 * x * (1.0 + _erf(x * _SQRT_HALF))


# ---------------------------------------------------------------------------
# Kernel 1/2: 3x3 SAME conv.  Inputs are width-padded (W+2) and channel-padded
# (lane multiple).  The 3 ky taps are folded into the contraction dim, so each
# tile is 3 matmuls with K = 3*Cin_p accumulated in a VMEM scratch.  Optionally
# applies BN1-affine + GELU to the input tile + halo rows (so x1 never hits HBM)
# and emits per-tile partial BN statistics (sum, sum_sq).
# ---------------------------------------------------------------------------
def _conv3x3_kernel(*refs, apply_act, th, w_out):
    if apply_act:
        top_ref, mid_ref, bot_ref, w_ref, s_ref, t_ref, y_ref, st_ref, acc_ref = refs
    else:
        top_ref, mid_ref, bot_ref, w_ref, y_ref, st_ref, acc_ref = refs

    i = pl.program_id(1)
    last = pl.num_programs(1) - 1
    wp = w_out + 2
    cin3 = w_ref.shape[1]           # 3 * cin_p
    cout_p = y_ref.shape[-1]

    top = top_ref[0]                # (1,  wp, cin_p)  single halo row above
    mid = mid_ref[0]                # (th, wp, cin_p)  tile rows
    bot = bot_ref[0]                # (1,  wp, cin_p)  single halo row below

    if apply_act:
        # BN1 affine + GELU of the previous conv output, recomputed on the two
        # halo rows (cheap), so the x1 activation never round-trips through HBM.
        s = s_ref[0, :]
        t = t_ref[0, :]
        # SAME-padding columns of the *activated* input must be zero, but
        # gelu(0*s + t) != 0 -> re-zero the border columns after activation.
        col = lax.broadcasted_iota(jnp.int32, (1, wp, 1), 1)
        cmask = jnp.logical_and(col > 0, col < wp - 1).astype(jnp.float32)
        top = _gelu(top * s + t) * cmask
        mid = _gelu(mid * s + t) * cmask
        bot = _gelu(bot * s + t) * cmask

    # Zero the halo rows that fall outside the image (SAME zero padding).
    top = top * (i > 0).astype(jnp.float32)
    bot = bot * (i < last).astype(jnp.float32)

    rows = jnp.concatenate([top, mid, bot], axis=0)      # (th+2, wp, cin_p)

    # 3 kx shifts; for each, fold the 3 ky taps into the K dim -> one deep matmul.
    for kx in range(3):
        slab = rows[:, kx:kx + w_out, :]                 # (th+2, w_out, cin_p)
        patch = jnp.concatenate(
            [slab[0:th], slab[1:th + 1], slab[2:th + 2]], axis=-1
        ).reshape(th * w_out, cin3)                      # (th*w_out, 3*cin_p)
        part = jnp.dot(patch, w_ref[kx], preferred_element_type=jnp.float32)
        if kx == 0:
            acc_ref[...] = part
        else:
            acc_ref[...] += part

    acc = acc_ref[...]
    out = acc.reshape(th, w_out, cout_p)
    # Store the output width-padded (zero border columns) so the next pass can
    # read it without any in-kernel column padding.
    zc = jnp.zeros((th, 1, cout_p), jnp.float32)
    y_ref[...] = jnp.concatenate([zc, out, zc], axis=1).reshape(1, th, wp, cout_p)

    # Per-tile partial BN statistics over the real (interior) pixels only.
    psum = jnp.sum(acc, axis=0, keepdims=True)
    psq = jnp.sum(acc * acc, axis=0, keepdims=True)
    st_ref[...] = jnp.concatenate([psum, psq], axis=0).reshape(1, 1, 2, cout_p)


# ---------------------------------------------------------------------------
# Kernel 3: finalize -> BN2 affine + GELU (+ residual add, * 1/1.414)
# ---------------------------------------------------------------------------
def _bn_gelu_kernel(y_ref, s_ref, t_ref, o_ref):
    o_ref[...] = _gelu(y_ref[...] * s_ref[0, :] + t_ref[0, :])


def _bn_gelu_res_kernel(y_ref, s_ref, t_ref, x_ref, o_ref):
    z = _gelu(y_ref[...] * s_ref[0, :] + t_ref[0, :])
    o_ref[...] = (x_ref[...] + z) * _INV_1414


# ---------------------------------------------------------------------------
# pallas_call wrappers
# ---------------------------------------------------------------------------
def _conv3x3_pass(x, wts, th, scale=None, shift=None):
    # x: (N, H, W+2, cin_p) width- and channel-padded; wts: (3, 3*cin_p, cout_p)
    n, h, wp, cin_p = x.shape
    w_out = wp - 2
    cout_p = wts.shape[-1]
    n_tiles = h // th
    apply_act = scale is not None

    kern = functools.partial(_conv3x3_kernel, apply_act=apply_act, th=th, w_out=w_out)

    # Halos are fetched as single rows (clamped at the border, masked in-kernel),
    # so per-step input DMA is th+2 rows, not 3*th.
    in_specs = [
        pl.BlockSpec((1, 1, wp, cin_p),
                     lambda ni, i: (ni, jnp.maximum(i * th - 1, 0), 0, 0)),
        pl.BlockSpec((1, th, wp, cin_p), lambda ni, i: (ni, i, 0, 0)),
        pl.BlockSpec((1, 1, wp, cin_p),
                     lambda ni, i: (ni, jnp.minimum((i + 1) * th, h - 1), 0, 0)),
        pl.BlockSpec((3, 3 * cin_p, cout_p), lambda ni, i: (0, 0, 0)),  # resident W
    ]
    args = [x, x, x, wts]
    if apply_act:
        vec = pl.BlockSpec((1, cin_p), lambda ni, i: (0, 0))
        in_specs += [vec, vec]
        args += [scale, shift]

    out_shape = (jax.ShapeDtypeStruct((n, h, wp, cout_p), jnp.float32),
                 jax.ShapeDtypeStruct((n, n_tiles, 2, cout_p), jnp.float32))
    out_specs = (pl.BlockSpec((1, th, wp, cout_p), lambda ni, i: (ni, i, 0, 0)),
                 pl.BlockSpec((1, 1, 2, cout_p), lambda ni, i: (ni, i, 0, 0)))

    return pl.pallas_call(
        kern,
        grid=(n, n_tiles),
        in_specs=in_specs,
        out_specs=out_specs,
        out_shape=out_shape,
        scratch_shapes=[pltpu.VMEM((th * w_out, cout_p), jnp.float32)],
        compiler_params=_compiler_params(),
    )(*args)


def _bn_gelu_finalize_pass(y, s, t, residual, th):
    n, h, wp, cp = y.shape
    n_tiles = h // th
    blk = pl.BlockSpec((1, th, wp, cp), lambda ni, i: (ni, i, 0, 0))
    vec = pl.BlockSpec((1, cp), lambda ni, i: (0, 0))
    if residual is None:
        kern, args, specs = _bn_gelu_kernel, (y, s, t), [blk, vec, vec]
    else:
        kern, args, specs = _bn_gelu_res_kernel, (y, s, t, residual), [blk, vec, vec, blk]
    return pl.pallas_call(
        kern,
        grid=(n, n_tiles),
        in_specs=specs,
        out_specs=blk,
        out_shape=jax.ShapeDtypeStruct((n, h, wp, cp), jnp.float32),
        compiler_params=_compiler_params(),
    )(*args)


# ---------------------------------------------------------------------------
# Glue (padding / layout / tile picking / tiny per-channel BN finalize)
# ---------------------------------------------------------------------------
def _round_up(v, m):
    return (v + m - 1) // m * m


def _pick_row_tile(h, w, cin_p, cout_p, vmem_limit):
    # Target ~512-1024 matmul rows per tile (th*W), bounded by a conservative
    # per-step VMEM working-set estimate (input/output blocks double-buffered).
    budget = max(vmem_limit // 2, 8 * 1024 * 1024)
    wp = w + 2
    best = 1
    for th in range(1, h + 1):
        if h % th:
            continue
        if th * w > 1024 and th != 1:
            continue
        est = 4 * (
            2 * ((th + 2) * wp * cin_p)              # input blocks (x2 buffers)
            + 2 * (th * wp * cout_p + 2 * cout_p)    # output blocks (x2 buffers)
            + 3 * 3 * cin_p * cout_p                 # resident folded weights
            + (th + 2) * wp * cin_p                  # rows slab temp
            + 2 * th * w * 3 * cin_p                 # kx slab + ky-folded patch
            + 2 * th * w * cout_p                    # accumulator + store temp
        )
        if est <= budget:
            best = th
    return best


def _fold_weights(wt, cin_p, cout_p):
    # (3, 3, cin, cout) HWIO -> (kx, ky*cin_p + c, cout_p): the 3 ky taps are
    # folded into the contraction dim (K = 3*cin_p) for deep MXU matmuls.
    # TODO(synk): for genuinely tiny real channel counts one could additionally
    # fold kx into K (single K=9*cin matmul); kept uniform here.
    wt = wt.astype(jnp.float32)
    wt = jnp.pad(wt, ((0, 0), (0, 0),
                      (0, cin_p - wt.shape[2]), (0, cout_p - wt.shape[3])))
    wt = jnp.transpose(wt, (1, 0, 2, 3))             # (kx, ky, cin_p, cout_p)
    return wt.reshape(3, 3 * cin_p, cout_p)


def _pad_row(v, cp):
    v = v.reshape(1, -1).astype(jnp.float32)
    return jnp.pad(v, ((0, 0), (0, cp - v.shape[1])))


def _bn_affine(stats, count, gamma, beta):
    # stats: (N, nH, 2, Cp) per-tile partial (sum, sum_sq).  Tiny per-channel
    # finalize done in plain JAX; biased variance, as PyTorch uses in train mode.
    # NOTE: one-pass E[x^2]-mean^2 variance; fine at these scales / zero-mean
    # activations, switch to a two-pass/shifted form if shapes or means grow.
    tot = jnp.sum(stats, axis=(0, 1))                 # (2, Cp)
    mean = tot[0] / count
    var = jnp.maximum(tot[1] / count - mean * mean, 0.0)
    s = gamma * lax.rsqrt(var + _BN_EPS)              # (1, Cp)
    t = beta - mean * s                               # (1, Cp)
    return s.astype(jnp.float32), t.astype(jnp.float32)


def residual_conv_block(x_nchw, params, *, is_res=True):
    x = jnp.transpose(x_nchw, (0, 2, 3, 1)).astype(jnp.float32)   # NCHW -> NHWC
    n, h, w, cin = x.shape
    w1, w2 = params["w1"], params["w2"]
    cout = w1.shape[-1]
    same_channels = cin == cout
    if is_res and not same_channels:
        # TODO(synk): PyTorch builds a freshly random-initialized 1x1 Conv2d inside
        # forward() for this case (non-deterministic); not reproducible, so skipped.
        raise NotImplementedError("is_res with in_channels != out_channels")

    cin_p = _round_up(cin, _LANE)
    cout_p = _round_up(cout, _LANE)
    th = _pick_row_tile(h, w, max(cin_p, cout_p), cout_p, _vmem_limit_bytes())
    pixels = n * h * w

    # Width pre-padded with one zero column per side (SAME padding) and channels
    # padded to a lane multiple -> lane-dense loads/stores, no in-kernel column
    # concat for pass 1.
    xp = jnp.pad(x, ((0, 0), (0, 0), (1, 1), (0, cin_p - cin)))
    w1p = _fold_weights(w1, cin_p, cout_p)
    w2p = _fold_weights(w2, cout_p, cout_p)
    g1, be1 = _pad_row(params["g1"], cout_p), _pad_row(params["beta1"], cout_p)
    g2, be2 = _pad_row(params["g2"], cout_p), _pad_row(params["beta2"], cout_p)
    # Conv biases b1/b2 are intentionally not used: train-mode BatchNorm subtracts
    # the batch mean, which cancels a constant per-channel bias exactly.

    # Pass 1: conv1 + partial BN1 stats.
    y1, st1 = _conv3x3_pass(xp, w1p, th)
    s1, t1 = _bn_affine(st1, pixels, g1, be1)

    # Pass 2: BN1-affine + GELU applied in-kernel to y1 (tile + 1-row halos),
    # then conv2 + partial BN2 stats.  x1 never hits HBM.
    y2, st2 = _conv3x3_pass(y1, w2p, th, scale=s1, shift=t1)
    s2, t2 = _bn_affine(st2, pixels, g2, be2)

    # Pass 3: BN2-affine + GELU (+ residual add and * 1/1.414).
    res = xp if (is_res and same_channels) else None
    outp = _bn_gelu_finalize_pass(y2, s2, t2, res, th)

    out = outp[:, :, 1:w + 1, :cout]              # crop width pad + channel pad
    return jnp.transpose(out, (0, 3, 1, 2))       # back to NCHW


# ---------------------------------------------------------------------------
# Pure-JAX reference (for correctness check only)
# ---------------------------------------------------------------------------
def _ref_conv_bn_gelu(x_nhwc, w_hwio, b, g, beta):
    y = lax.conv_general_dilated(x_nhwc, w_hwio, (1, 1), "SAME",
                                 dimension_numbers=("NHWC", "HWIO", "NHWC")) + b
    mean = y.mean(axis=(0, 1, 2), keepdims=True)
    var = ((y - mean) ** 2).mean(axis=(0, 1, 2), keepdims=True)
    z = (y - mean) / jnp.sqrt(var + _BN_EPS) * g + beta
    return jax.nn.gelu(z, approximate=False)


def ref_block(x_nchw, params, *, is_res=True):
    x = jnp.transpose(x_nchw, (0, 2, 3, 1))
    x1 = _ref_conv_bn_gelu(x, params["w1"], params["b1"], params["g1"], params["beta1"])
    x2 = _ref_conv_bn_gelu(x1, params["w2"], params["b2"], params["g2"], params["beta2"])
    out = (x + x2) / 1.414 if is_res else x2
    return jnp.transpose(out, (0, 3, 1, 2))


# ---------------------------------------------------------------------------
if __name__ == "__main__":
    N, C_IN, C_OUT, H, W = 2, 4, 4, 16, 16   # same_channels -> residual path

    key = jax.random.PRNGKey(0)
    ks = jax.random.split(key, 9)
    params = {
        "w1": 0.1 * jax.random.normal(ks[0], (3, 3, C_IN, C_OUT), jnp.float32),
        "b1": 0.05 * jax.random.normal(ks[1], (C_OUT,), jnp.float32),
        "g1": 1.0 + 0.1 * jax.random.normal(ks[2], (C_OUT,), jnp.float32),
        "beta1": 0.1 * jax.random.normal(ks[3], (C_OUT,), jnp.float32),
        "w2": 0.1 * jax.random.normal(ks[4], (3, 3, C_OUT, C_OUT), jnp.float32),
        "b2": 0.05 * jax.random.normal(ks[5], (C_OUT,), jnp.float32),
        "g2": 1.0 + 0.1 * jax.random.normal(ks[6], (C_OUT,), jnp.float32),
        "beta2": 0.1 * jax.random.normal(ks[7], (C_OUT,), jnp.float32),
    }
    x = jax.random.normal(ks[8], (N, C_IN, H, W), jnp.float32)   # PyTorch-style NCHW

    out = jax.block_until_ready(residual_conv_block(x, params, is_res=True))
    assert out.shape == (N, C_OUT, H, W), out.shape

    ref = ref_block(x, params, is_res=True)
    err = float(jnp.max(jnp.abs(out - ref)))
    if err > 1e-4:
        raise AssertionError(f"mismatch vs reference: max abs err = {err}")

    print("KERNEL_OK")
</pallas_src>

<mosaic_0001>
module attributes {stable_mosaic.version = 11 : i64} {
  func.func @_conv3x3_kernel(%arg0: i32, %arg1: i32, %arg2: memref<1x1x18x128xf32, #tpu.memory_space<vmem>>, %arg3: memref<1x16x18x128xf32, #tpu.memory_space<vmem>>, %arg4: memref<1x1x18x128xf32, #tpu.memory_space<vmem>>, %arg5: memref<3x384x128xf32, #tpu.memory_space<vmem>>, %arg6: memref<1x16x18x128xf32, #tpu.memory_space<vmem>>, %arg7: memref<1x1x2x128xf32, #tpu.memory_space<vmem>>, %arg8: memref<256x128xf32, #tpu.memory_space<vmem>>) attributes {dimension_semantics = [#tpu.dimension_semantics<parallel>, #tpu.dimension_semantics<parallel>], iteration_bounds = array<i64: 2, 1>, scalar_prefetch = 0 : i64, scratch_operands = 1 : i64, tpu.core_type = #tpu.core_type<tc>, window_params = [{transform_indices = @transform_0, window_bounds = array<i64: 1, 1, 18, 128>}, {transform_indices = @transform_1, window_bounds = array<i64: 1, 16, 18, 128>}, {transform_indices = @transform_2, window_bounds = array<i64: 1, 1, 18, 128>}, {pipeline_mode = #tpu.pipeline_mode<synchronous>, transform_indices = @transform_3, window_bounds = array<i64: 3, 384, 128>}, {transform_indices = @transform_4, window_bounds = array<i64: 1, 16, 18, 128>}, {transform_indices = @transform_5, window_bounds = array<i64: 1, 1, 2, 128>}]} {
    %c0 = arith.constant 0 : index
    %c0_0 = arith.constant 0 : index
    %c0_1 = arith.constant 0 : index
    %c0_2 = arith.constant 0 : index
    %0 = vector.load %arg2[%c0, %c0_0, %c0_1, %c0_2] : memref<1x1x18x128xf32, #tpu.memory_space<vmem>>, vector<1x1x18x128xf32>
    %1 = vector.shape_cast %0 : vector<1x1x18x128xf32> to vector<1x18x128xf32>
    %c0_3 = arith.constant 0 : index
    %c0_4 = arith.constant 0 : index
    %c0_5 = arith.constant 0 : index
    %c0_6 = arith.constant 0 : index
    %2 = vector.load %arg3[%c0_3, %c0_4, %c0_5, %c0_6] : memref<1x16x18x128xf32, #tpu.memory_space<vmem>>, vector<1x16x18x128xf32>
    %3 = vector.shape_cast %2 : vector<1x16x18x128xf32> to vector<16x18x128xf32>
    %c0_7 = arith.constant 0 : index
    %c0_8 = arith.constant 0 : index
    %c0_9 = arith.constant 0 : index
    %c0_10 = arith.constant 0 : index
    %4 = vector.load %arg4[%c0_7, %c0_8, %c0_9, %c0_10] : memref<1x1x18x128xf32, #tpu.memory_space<vmem>>, vector<1x1x18x128xf32>
    %5 = vector.shape_cast %4 : vector<1x1x18x128xf32> to vector<1x18x128xf32>
    %c0_i32 = arith.constant 0 : i32
    %6 = arith.cmpi sgt, %arg1, %c0_i32 : i32
    %7 = arith.extui %6 : i1 to i32
    %8 = arith.sitofp %7 : i32 to f32
    %9 = vector.broadcast %8 : f32 to vector<1x18x128xf32>
    %10 = arith.mulf %1, %9 : vector<1x18x128xf32>
    %c0_i32_11 = arith.constant 0 : i32
    %11 = arith.cmpi slt, %arg1, %c0_i32_11 : i32
    %12 = arith.extui %11 : i1 to i32
    %13 = arith.sitofp %12 : i32 to f32
    %14 = vector.broadcast %13 : f32 to vector<1x18x128xf32>
    %15 = arith.mulf %5, %14 : vector<1x18x128xf32>
    %16 = tpu.concatenate %10, %3, %15 in 0 : vector<1x18x128xf32>, vector<16x18x128xf32>, vector<1x18x128xf32> -> vector<18x18x128xf32>
    %17 = vector.extract_strided_slice %16 {offsets = [0, 0, 0], sizes = [18, 16, 128], strides = [1, 1, 1]} : vector<18x18x128xf32> to vector<18x16x128xf32>
    %18 = vector.extract_strided_slice %17 {offsets = [0, 0, 0], sizes = [16, 16, 128], strides = [1, 1, 1]} : vector<18x16x128xf32> to vector<16x16x128xf32>
    %19 = vector.extract_strided_slice %17 {offsets = [1, 0, 0], sizes = [16, 16, 128], strides = [1, 1, 1]} : vector<18x16x128xf32> to vector<16x16x128xf32>
    %20 = vector.extract_strided_slice %17 {offsets = [2, 0, 0], sizes = [16, 16, 128], strides = [1, 1, 1]} : vector<18x16x128xf32> to vector<16x16x128xf32>
    %21 = tpu.concatenate %18, %19, %20 in 2 : vector<16x16x128xf32>, vector<16x16x128xf32>, vector<16x16x128xf32> -> vector<16x16x384xf32>
    %22 = vector.shape_cast %21 : vector<16x16x384xf32> to vector<256x384xf32>
    %c0_12 = arith.constant 0 : index
    %c0_13 = arith.constant 0 : index
    %c0_14 = arith.constant 0 : index
    %23 = vector.load %arg5[%c0_12, %c0_13, %c0_14] : memref<3x384x128xf32, #tpu.memory_space<vmem>>, vector<1x384x128xf32>
    %24 = vector.shape_cast %23 : vector<1x384x128xf32> to vector<384x128xf32>
    %cst = arith.constant dense<0.000000e+00> : vector<256x128xf32>
    %25 = tpu.matmul %22, %24, %cst {dimension_numbers = #tpu.dot_dimension_numbers<[1], [0], [0], [1], [0, 0, 1, 1], [], []>} : vector<256x384xf32>, vector<384x128xf32>, vector<256x128xf32> -> vector<256x128xf32>
    %c0_15 = arith.constant 0 : index
    %c0_16 = arith.constant 0 : index
    %26 = vector.load %arg8[%c0_15, %c0_16] : memref<256x128xf32, #tpu.memory_space<vmem>>, vector<256x128xf32>
    tpu.vector_store %arg8[%c0_15, %c0_16], %25 {strides = array<i32>} : memref<256x128xf32, #tpu.memory_space<vmem>>, vector<256x128xf32>,
    %27 = vector.extract_strided_slice %16 {offsets = [0, 1, 0], sizes = [18, 16, 128], strides = [1, 1, 1]} : vector<18x18x128xf32> to vector<18x16x128xf32>
    %28 = vector.extract_strided_slice %27 {offsets = [0, 0, 0], sizes = [16, 16, 128], strides = [1, 1, 1]} : vector<18x16x128xf32> to vector<16x16x128xf32>
    %29 = vector.extract_strided_slice %27 {offsets = [1, 0, 0], sizes = [16, 16, 128], strides = [1, 1, 1]} : vector<18x16x128xf32> to vector<16x16x128xf32>
    %30 = vector.extract_strided_slice %27 {offsets = [2, 0, 0], sizes = [16, 16, 128], strides = [1, 1, 1]} : vector<18x16x128xf32> to vector<16x16x128xf32>
    %31 = tpu.concatenate %28, %29, %30 in 2 : vector<16x16x128xf32>, vector<16x16x128xf32>, vector<16x16x128xf32> -> vector<16x16x384xf32>
    %32 = vector.shape_cast %31 : vector<16x16x384xf32> to vector<256x384xf32>
    %c1 = arith.constant 1 : index
    %c0_17 = arith.constant 0 : index
    %c0_18 = arith.constant 0 : index
    %33 = vector.load %arg5[%c1, %c0_17, %c0_18] : memref<3x384x128xf32, #tpu.memory_space<vmem>>, vector<1x384x128xf32>
    %34 = vector.shape_cast %33 : vector<1x384x128xf32> to vector<384x128xf32>
    %cst_19 = arith.constant dense<0.000000e+00> : vector<256x128xf32>
    %35 = tpu.matmul %32, %34, %cst_19 {dimension_numbers = #tpu.dot_dimension_numbers<[1], [0], [0], [1], [0, 0, 1, 1], [], []>} : vector<256x384xf32>, vector<384x128xf32>, vector<256x128xf32> -> vector<256x128xf32>
    %c0_20 = arith.constant 0 : index
    %c0_21 = arith.constant 0 : index
    %36 = vector.load %arg8[%c0_20, %c0_21] : memref<256x128xf32, #tpu.memory_space<vmem>>, vector<256x128xf32>
    %37 = arith.addf %36, %35 : vector<256x128xf32>
    %c0_22 = arith.constant 0 : index
    %c0_23 = arith.constant 0 : index
    %38 = vector.load %arg8[%c0_22, %c0_23] : memref<256x128xf32, #tpu.memory_space<vmem>>, vector<256x128xf32>
    tpu.vector_store %arg8[%c0_22, %c0_23], %37 {strides = array<i32>} : memref<256x128xf32, #tpu.memory_space<vmem>>, vector<256x128xf32>,
    %39 = vector.extract_strided_slice %16 {offsets = [0, 2, 0], sizes = [18, 16, 128], strides = [1, 1, 1]} : vector<18x18x128xf32> to vector<18x16x128xf32>
    %40 = vector.extract_strided_slice %39 {offsets = [0, 0, 0], sizes = [16, 16, 128], strides = [1, 1, 1]} : vector<18x16x128xf32> to vector<16x16x128xf32>
    %41 = vector.extract_strided_slice %39 {offsets = [1, 0, 0], sizes = [16, 16, 128], strides = [1, 1, 1]} : vector<18x16x128xf32> to vector<16x16x128xf32>
    %42 = vector.extract_strided_slice %39 {offsets = [2, 0, 0], sizes = [16, 16, 128], strides = [1, 1, 1]} : vector<18x16x128xf32> to vector<16x16x128xf32>
    %43 = tpu.concatenate %40, %41, %42 in 2 : vector<16x16x128xf32>, vector<16x16x128xf32>, vector<16x16x128xf32> -> vector<16x16x384xf32>
    %44 = vector.shape_cast %43 : vector<16x16x384xf32> to vector<256x384xf32>
    %c2 = arith.constant 2 : index
    %c0_24 = arith.constant 0 : index
    %c0_25 = arith.constant 0 : index
    %45 = vector.load %arg5[%c2, %c0_24, %c0_25] : memref<3x384x128xf32, #tpu.memory_space<vmem>>, vector<1x384x128xf32>
    %46 = vector.shape_cast %45 : vector<1x384x128xf32> to vector<384x128xf32>
    %cst_26 = arith.constant dense<0.000000e+00> : vector<256x128xf32>
    %47 = tpu.matmul %44, %46, %cst_26 {dimension_numbers = #tpu.dot_dimension_numbers<[1], [0], [0], [1], [0, 0, 1, 1], [], []>} : vector<256x384xf32>, vector<384x128xf32>, vector<256x128xf32> -> vector<256x128xf32>
    %c0_27 = arith.constant 0 : index
    %c0_28 = arith.constant 0 : index
    %48 = vector.load %arg8[%c0_27, %c0_28] : memref<256x128xf32, #tpu.memory_space<vmem>>, vector<256x128xf32>
    %49 = arith.addf %48, %47 : vector<256x128xf32>
    %c0_29 = arith.constant 0 : index
    %c0_30 = arith.constant 0 : index
    %50 = vector.load %arg8[%c0_29, %c0_30] : memref<256x128xf32, #tpu.memory_space<vmem>>, vector<256x128xf32>
    tpu.vector_store %arg8[%c0_29, %c0_30], %49 {strides = array<i32>} : memref<256x128xf32, #tpu.memory_space<vmem>>, vector<256x128xf32>,
    %c0_31 = arith.constant 0 : index
    %c0_32 = arith.constant 0 : index
    %51 = vector.load %arg8[%c0_31, %c0_32] : memref<256x128xf32, #tpu.memory_space<vmem>>, vector<256x128xf32>
    %52 = vector.shape_cast %51 : vector<256x128xf32> to vector<16x16x128xf32>
    %cst_33 = arith.constant 0.000000e+00 : f32
    %53 = vector.broadcast %cst_33 : f32 to vector<16x1x128xf32>
    %54 = tpu.concatenate %53, %52, %53 in 1 : vector<16x1x128xf32>, vector<16x16x128xf32>, vector<16x1x128xf32> -> vector<16x18x128xf32>
    %55 = vector.shape_cast %54 : vector<16x18x128xf32> to vector<1x16x18x128xf32>
    %c0_34 = arith.constant 0 : index
    %c0_35 = arith.constant 0 : index
    %c0_36 = arith.constant 0 : index
    %c0_37 = arith.constant 0 : index
    %56 = vector.load %arg6[%c0_34, %c0_35, %c0_36, %c0_37] : memref<1x16x18x128xf32, #tpu.memory_space<vmem>>, vector<1x16x18x128xf32>
    tpu.vector_store %arg6[%c0_34, %c0_35, %c0_36, %c0_37], %55 {strides = array<i32>} : memref<1x16x18x128xf32, #tpu.memory_space<vmem>>, vector<1x16x18x128xf32>,
    %cst_38 = arith.constant dense<0.000000e+00> : vector<128xf32>
    %57 = vector.multi_reduction <add>, %51, %cst_38 [0] : vector<256x128xf32> to vector<128xf32>
    %58 = vector.shape_cast %57 : vector<128xf32> to vector<1x128xf32>
    %59 = arith.mulf %51, %51 : vector<256x128xf32>
    %cst_39 = arith.constant dense<0.000000e+00> : vector<128xf32>
    %60 = vector.multi_reduction <add>, %59, %cst_39 [0] : vector<256x128xf32> to vector<128xf32>
    %61 = vector.shape_cast %60 : vector<128xf32> to vector<1x128xf32>
    %62 = tpu.concatenate %58, %61 in 0 : vector<1x128xf32>, vector<1x128xf32> -> vector<2x128xf32>
    %63 = vector.shape_cast %62 : vector<2x128xf32> to vector<1x1x2x128xf32>
    %c0_40 = arith.constant 0 : index
    %c0_41 = arith.constant 0 : index
    %c0_42 = arith.constant 0 : index
    %c0_43 = arith.constant 0 : index
    %64 = vector.load %arg7[%c0_40, %c0_41, %c0_42, %c0_43] : memref<1x1x2x128xf32, #tpu.memory_space<vmem>>, vector<1x1x2x128xf32>
    tpu.vector_store %arg7[%c0_40, %c0_41, %c0_42, %c0_43], %63 {strides = array<i32>} : memref<1x1x2x128xf32, #tpu.memory_space<vmem>>, vector<1x1x2x128xf32>,
    return
  }
  func.func @transform_0(%arg0: i32, %arg1: i32) -> (i32, i32, i32, i32) {
    %c16_i32 = arith.constant 16 : i32
    %0 = arith.muli %arg1, %c16_i32 : i32
    %c1_i32 = arith.constant 1 : i32
    %1 = arith.subi %0, %c1_i32 : i32
    %c0_i32 = arith.constant 0 : i32
    %2 = arith.maxsi %1, %c0_i32 : i32
    %c0_i32_0 = arith.constant 0 : i32
    %c0_i32_1 = arith.constant 0 : i32
    %c0_i32_2 = arith.constant 0 : i32
    return %arg0, %2, %c0_i32_0, %c0_i32_1 : i32, i32, i32, i32
  }
  func.func @transform_1(%arg0: i32, %arg1: i32) -> (i32, i32, i32, i32) {
    %c0_i32 = arith.constant 0 : i32
    %c0_i32_0 = arith.constant 0 : i32
    %c0_i32_1 = arith.constant 0 : i32
    return %arg0, %arg1, %c0_i32, %c0_i32_0 : i32, i32, i32, i32
  }
  func.func @transform_2(%arg0: i32, %arg1: i32) -> (i32, i32, i32, i32) {
    %c1_i32 = arith.constant 1 : i32
    %0 = arith.addi %arg1, %c1_i32 : i32
    %c16_i32 = arith.constant 16 : i32
    %1 = arith.muli %0, %c16_i32 : i32
    %c15_i32 = arith.constant 15 : i32
    %2 = arith.minsi %1, %c15_i32 : i32
    %c0_i32 = arith.constant 0 : i32
    %c0_i32_0 = arith.constant 0 : i32
    %c0_i32_1 = arith.constant 0 : i32
    return %arg0, %2, %c0_i32, %c0_i32_0 : i32, i32, i32, i32
  }
  func.func @transform_3(%arg0: i32, %arg1: i32) -> (i32, i32, i32) {
    %c0_i32 = arith.constant 0 : i32
    %c0_i32_0 = arith.constant 0 : i32
    %c0_i32_1 = arith.constant 0 : i32
    %c0_i32_2 = arith.constant 0 : i32
    return %c0_i32, %c0_i32_0, %c0_i32_1 : i32, i32, i32
  }
  func.func @transform_4(%arg0: i32, %arg1: i32) -> (i32, i32, i32, i32) {
    %c0_i32 = arith.constant 0 : i32
    %c0_i32_0 = arith.constant 0 : i32
    %c0_i32_1 = arith.constant 0 : i32
    return %arg0, %arg1, %c0_i32, %c0_i32_0 : i32, i32, i32, i32
  }
  func.func @transform_5(%arg0: i32, %arg1: i32) -> (i32, i32, i32, i32) {
    %c0_i32 = arith.constant 0 : i32
    %c0_i32_0 = arith.constant 0 : i32
    %c0_i32_1 = arith.constant 0 : i32
    return %arg0, %arg1, %c0_i32, %c0_i32_0 : i32, i32, i32, i32
  }
}

</mosaic_0001>

<bundles_post_ra>
// kernel: tpu_custom_call.1
= control target key start
LH: loop header
LB: loop body
LE: loop exit
PB: predicated region body
PF: predicated region fallthrough
CT: control target
= control target key end

     0   :  { %11 = vsyncpa [#allocation4], 0  ;;  %s4736_s0 = inlined_call_operand.vmem [shape: f32[2,16,18,128], index: 0, kind: input, shape index: {}]   ;;  %s4737_s1 = inlined_call_operand.vmem [shape: f32[2,16,18,128], index: 1, kind: input, shape index: {}]   ;;  %s4738_s2 = inlined_call_operand.vmem [shape: f32[2,16,18,128], index: 2, kind: input, shape index: {}]   ;;  %s4739_s3 = inlined_call_operand.vmem [shape: f32[3,384,128], index: 3, kind: input, shape index: {}]   ;;  %s4740_s4 = inlined_call_operand.vmem [shape: f32[2,16,18,128], index: 4, kind: output, shape index: {0}]   ;;  %s4741_s5 = inlined_call_operand.hbm [shape: f32[2,1,2,128], index: 5, kind: output, shape index: {1}]  }
   0x1   :  { %13 = vsyncpa [#allocation4 + $0x1], 0  ;;  %s3069_s18 = smov 0   ;;  %s3071_s19 = smov 0  }
   0x2   :  { %s3073_s20 = smov 0   ;;  %s3075_s21 = smov 0  }
   0x3   :  { %s3077_s22 = smov 0   ;;  %s3079_s23 = smov 0  }
   0x4 LB: > { %s2710_s24 = sadd.s32 4294967295, %s3037_s23   ;;  %s2711_s25 = sadd.s32 4294967294, %s3037_s23   ;;  %s3037_s23 = sphi %s3079_s23, %s19_s23   ;;  %s3033_s22 = sphi %s3077_s22, %s4950_s22   ;;  %s3029_s21 = sphi %s3075_s21, %s4949_s21   ;;  %s3025_s20 = sphi %s3073_s20, %s4948_s20   ;;  %s3021_s19 = sphi %s3071_s19, %s4947_s19   ;;  %s3017_s18 = sphi %s3069_s18, %s4946_s18  }
   0x5   : > { %s31_s26 = sadd.s32 1, %s3033_s22  ;;  %s189_s27 = sadd.s32 1, %s3025_s20 }
   0x6   : > { %p33_p0 = scmp.ge.s32.totalorder %s31_s26, 2  ;;  %p199_p1 = scmp.ne.s32.totalorder %s3025_s20, %s3021_s19 }
   0x7   : > { %p200_p2 = scmp.eq.s32.totalorder %s2710_s24, 1  ;;  %p205_p3 = scmp.ne.s32.totalorder %s3021_s19, %s3017_s18 }
   0x8   : > { %s4952_s26 = smov (%p33_p0, %s31_s26), 0  ;;  %p206_p5 = scmp.eq.s32.totalorder %s2711_s25, 1 }
   0x9   : > { %p3109_p4 = por %p200_p2, %p199_p1  ;;  %s184_s29 = ssub.s32 %s3033_s22, %s4952_s26 }
   0xa   : > { %p2714_p6 = scmp.ge.s32.totalorder %s3037_s23, 1  ;;  %p187_p7 = scmp.eq.s32.totalorder %s184_s29, 0 }
   0xb   : > { %p3116_p8 = por %p206_p5, %p205_p3  ;;  %p281_p9 = scmp.lt.s32.totalorder %s3037_s23, 3 }
   0xc   : > { %s3122_s6 = scalar_select %p187_p7, %s3025_s20, %s189_s27  }
   0xd   : > { %p282_p10 = pnand %p2714_p6, %p281_p9 }
   0xf   : > { %285 = sbr.rel (%p282_p10) target bundleno = 779 (0x30b), region = 36 }
  0x14   : > { %v489_v0 = vld [vmem:[%s4739_s3 + $0x78] sm:$0xff]  ;;  %v488_v1 = vld [vmem:[%s4739_s3 + $0x70] sm:$0xff]  ;;  %p354_p11 = scmp.lt.s32.totalorder %s3029_s21, 1  ;;  %v487_v2 = vld [vmem:[%s4739_s3 + $0x68] sm:$0xff]  ;;  %vm947_vm0 = vcmask 1046528   ;;  %vm1558_vm1 = vcmask 1045504  }
  0x15   : > { %2822 = vmatpush.msra.mxu1 %v489_v0  ;;  %2823 = vmatpush.msra.mxu2 %v489_v0  ;;  %v486_v3 = vld [vmem:[%s4739_s3 + $0x60] sm:$0xff]  ;;  %v485_v4 = vld [vmem:[%s4739_s3 + $0x58] sm:$0xff]  ;;  %v484_v5 = vld [vmem:[%s4739_s3 + $0x50] sm:$0xff]  ;;  %vm2233_vm2 = vcmask 1040384   ;;  %s2979_s24 = scalar_lea.hbm %s4741_s5, 4 }
  0x16   : > { %2824 = vmatpush.msra.mxu3 %v489_v0  ;;  %522 = vmatpush.msra.mxu0 %v489_v0  ;;  %s3135_s13 = scalar_select %p354_p11, %s3029_s21, 1  ;;  %v483_v6 = vld [vmem:[%s4739_s3 + $0x48] sm:$0xff]  ;;  %v482_v7 = vld [vmem:[%s4739_s3 + $0x40] sm:$0xff]  ;;  %v481_v8 = vld [vmem:[%s4739_s3 + $0x38] sm:$0xff] }
  0x17   : > { %2825 = vmatpush.msra.mxu1 %v488_v1  ;;  %2826 = vmatpush.msra.mxu2 %v488_v1  ;;  %v480_v9 = vld [vmem:[%s4739_s3 + $0x30] sm:$0xff]  ;;  %v479_v10 = vld [vmem:[%s4739_s3 + $0x28] sm:$0xff]  ;;  %v478_v11 = vld [vmem:[%s4739_s3 + $0x20] sm:$0xff] }
  0x18   : > { %2827 = vmatpush.msra.mxu3 %v488_v1  ;;  %523 = vmatpush.msra.mxu0 %v488_v1  ;;  %v477_v12 = vld [vmem:[%s4739_s3 + $0x18] sm:$0xff]  ;;  %s3168_s27 = smul.u32 384, %s3135_s13  ;;  %v476_v13 = vld [vmem:[%s4739_s3 + $0x10] sm:$0xff]  ;;  %v475_v14 = vld [vmem:[%s4739_s3 + $0x8] sm:$0xff] }
  0x19   : > { %2828 = vmatpush.msra.mxu1 %v487_v2  ;;  %2829 = vmatpush.msra.mxu2 %v487_v2  ;;  %v474_v15 = vld [vmem:[%s4739_s3] sm:$0xff]  ;;  %v521_v20 = vld [vmem:[%s4739_s3 + $0x178] sm:$0xff]  ;;  %v520_v23 = vld [vmem:[%s4739_s3 + $0x170] sm:$0xff] }
  0x1a   : > { %2830 = vmatpush.msra.mxu3 %v487_v2  ;;  %524 = vmatpush.msra.mxu0 %v487_v2  ;;  %s3180_s11 = scalar_lea.vmem %s4737_s1, %s3168_s27  ;;  %s3186_s15 = scalar_lea.vmem %s4736_s0, %s3168_s27  ;;  %v2735_v21 = vld [vmem:[%s4739_s3 + $0x1f8] sm:$0xff]  ;;  %v2734_v24 = vld [vmem:[%s4739_s3 + $0x1f0] sm:$0xff]  ;;  %v519_v27 = vld [vmem:[%s4739_s3 + $0x168] sm:$0xff] }
  0x1b   : > { %2831 = vmatpush.msra.mxu1 %v486_v3  ;;  %2832 = vmatpush.msra.mxu2 %v486_v3  ;;  %v3192_v16 = vld [vmem:[%s3180_s11 + $0x48] sm:$0xff]  ;;  %v406_v19 = vld [vmem:[%s3186_s15] sm:$0xff]  ;;  %v505_v22 = vld [vmem:[%s4739_s3 + $0xf8] sm:$0xff]  ;;  %s2821_s10 = sadd.s32 360, %s3168_s27  ;;  %s4385_s25 = scalar_lea.vmem %s4740_s4, %s3168_s27 }
  0x1c   : > { %2833 = vmatpush.msra.mxu3 %v486_v3  ;;  %525 = vmatpush.msra.mxu0 %v486_v3  ;;  %v3195_v17 = vld [vmem:[%s3180_s11 + $0xa8] sm:$0xff]  ;;  %v3219_v25 = vmul.f32 0.0, %v406_v19  ;;  %v504_v26 = vld [vmem:[%s4739_s3 + $0xf0] sm:$0xff]  ;;  %v2751_v29 = vld [vmem:[%s4739_s3 + $0x278] sm:$0xff]  ;;  %s4151_s16 = scalar_lea.vmem %s4738_s2, %s2821_s10  ;;  %s347_s27 = sand.u32 1, %s3021_s19  }
  0x1d   : > { %2834 = vmatpush.msra.mxu1 %v485_v4  ;;  %2835 = vmatpush.msra.mxu2 %v485_v4  ;;  %v3198_v18 = vld [vmem:[%s3180_s11 + $0x108] sm:$0xff]  ;;  %v3238_v31 = vld [vmem:[%s3180_s11 + $0x50] sm:$0xff]  ;;  %v518_v32 = vld [vmem:[%s4739_s3 + $0x160] sm:$0xff] }
  0x1e   : > { %2836 = vmatpush.msra.mxu3 %v485_v4  ;;  %526 = vmatpush.msra.mxu0 %v485_v4  ;;  %v2733_v28 = vld [vmem:[%s4739_s3 + $0x1e8] sm:$0xff]  ;;  %v3244_v33 = vld [vmem:[%s3180_s11 + $0xb0] sm:$0xff]  ;;  %v2732_v36 = vld [vmem:[%s4739_s3 + $0x1e0] sm:$0xff] }
  0x1f   : > { %2837 = vmatpush.msra.mxu1 %v484_v5  ;;  %2838 = vmatpush.msra.mxu2 %v484_v5  ;;  %v503_v30 = vld [vmem:[%s4739_s3 + $0xe8] sm:$0xff]  ;;  %v3247_v34 = vld [vmem:[%s3180_s11 + $0x110] sm:$0xff]  ;;  %v517_v38 = vld [vmem:[%s4739_s3 + $0x158] sm:$0xff] }
  0x20   : > { %2839 = vmatpush.msra.mxu3 %v484_v5  ;;  %527 = vmatpush.msra.mxu0 %v484_v5  ;;  %v407_v35 = vld [vmem:[%s3186_s15 + $0x8] sm:$0xff]  ;;  %v2750_v37 = vld [vmem:[%s4739_s3 + $0x270] sm:$0xff]  ;;  %v502_v39 = vld [vmem:[%s4739_s3 + $0xe0] sm:$0xff] }
  0x21   : > { %2840 = vmatpush.msra.mxu1 %v483_v6  ;;  %2841 = vmatpush.msra.mxu2 %v483_v6  ;;  %v3265_v40 = vmul.f32 0.0, %v407_v35  ;;  %v2731_v41 = vld [vmem:[%s4739_s3 + $0x1d8] sm:$0xff]  ;;  %v2749_v42 = vld [vmem:[%s4739_s3 + $0x268] sm:$0xff]  ;;  %v516_v43 = vld [vmem:[%s4739_s3 + $0x150] sm:$0xff] }
  0x22   : > { %2842 = vmatpush.msra.mxu3 %v483_v6  ;;  %528 = vmatpush.msra.mxu0 %v483_v6  ;;  %v2730_v44 = vld [vmem:[%s4739_s3 + $0x1d0] sm:$0xff]  ;;  %v2748_v45 = vld [vmem:[%s4739_s3 + $0x260] sm:$0xff]  ;;  %v501_v46 = vld [vmem:[%s4739_s3 + $0xd8] sm:$0xff] }
  0x23   : > { %2843 = vmatpush.msra.mxu1 %v482_v7  ;;  %2844 = vmatpush.msra.mxu2 %v482_v7  ;;  %v515_v47 = vld [vmem:[%s4739_s3 + $0x148] sm:$0xff]  ;;  %v3290_v48 = vld [vmem:[%s3180_s11 + $0x60] sm:$0xff]  ;;  %v2747_v52 = vld [vmem:[%s4739_s3 + $0x258] sm:$0xff] }
  0x24   : > { %2845 = vmatpush.msra.mxu3 %v482_v7  ;;  %529 = vmatpush.msra.mxu0 %v482_v7  ;;  %v2729_v49 = vld [vmem:[%s4739_s3 + $0x1c8] sm:$0xff]  ;;  %v3296_v50 = vld [vmem:[%s3180_s11 + $0xc0] sm:$0xff]  ;;  %v500_v53 = vld [vmem:[%s4739_s3 + $0xd0] sm:$0xff] }
  0x25   : > { %2846 = vmatpush.msra.mxu1 %v481_v8  ;;  %2847 = vmatpush.msra.mxu2 %v481_v8  ;;  %v3299_v51 = vld [vmem:[%s3180_s11 + $0x120] sm:$0xff]  ;;  %v2746_v56 = vld [vmem:[%s4739_s3 + $0x250] sm:$0xff]  ;;  %v499_v57 = vld [vmem:[%s4739_s3 + $0xc8] sm:$0xff] }
  0x26   : > { %2848 = vmatpush.msra.mxu3 %v481_v8  ;;  %530 = vmatpush.msra.mxu0 %v481_v8  ;;  %v514_v54 = vld [vmem:[%s4739_s3 + $0x140] sm:$0xff]  ;;  %v513_v59 = vld [vmem:[%s4739_s3 + $0x138] sm:$0xff]  ;;  %v2745_v61 = vld [vmem:[%s4739_s3 + $0x248] sm:$0xff] }
  0x27   : > { %2849 = vmatpush.msra.mxu1 %v480_v9  ;;  %2850 = vmatpush.msra.mxu2 %v480_v9  ;;  %v2728_v55 = vld [vmem:[%s4739_s3 + $0x1c0] sm:$0xff]  ;;  %v2727_v60 = vld [vmem:[%s4739_s3 + $0x1b8] sm:$0xff]  ;;  %v512_v63 = vld [vmem:[%s4739_s3 + $0x130] sm:$0xff] }
  0x28   : > { %2851 = vmatpush.msra.mxu3 %v480_v9  ;;  %531 = vmatpush.msra.mxu0 %v480_v9  ;;  %v3323_v58 = vld [vmem:[%s3180_s11] sm:$0xff]  ;;  %v3342_v0 = vld [vmem:[%s3180_s11 + $0x68] sm:$0xff]  ;;  %v2726_v1 = vld [vmem:[%s4739_s3 + $0x1b0] sm:$0xff] }
  0x29   : > { %2852 = vmatpush.msra.mxu1 %v479_v10  ;;  %2853 = vmatpush.msra.mxu2 %v479_v10  ;;  %v498_v62 = vld [vmem:[%s4739_s3 + $0xc0] sm:$0xff]  ;;  %v3348_v2 = vld [vmem:[%s3180_s11 + $0xc8] sm:$0xff]  ;;  %v497_v5 = vld [vmem:[%s4739_s3 + $0xb8] sm:$0xff] }
  0x2a   : > { %2854 = vmatpush.msra.mxu3 %v479_v10  ;;  %532 = vmatpush.msra.mxu0 %v479_v10  ;;  %v3351_v3 = vld [vmem:[%s3180_s11 + $0x128] sm:$0xff]  ;;  %v2744_v4 = vld [vmem:[%s4739_s3 + $0x240] sm:$0xff]  ;;  %v2743_v8 = vld [vmem:[%s4739_s3 + $0x238] sm:$0xff] }
  0x2b   : > { %2855 = vmatpush.msra.mxu1 %v478_v11  ;;  %2856 = vmatpush.msra.mxu2 %v478_v11  ;;  %v511_v6 = vld [vmem:[%s4739_s3 + $0x128] sm:$0xff]  ;;  %v496_v9 = vld [vmem:[%s4739_s3 + $0xb0] sm:$0xff]  ;;  %v3394_v19 = vld [vmem:[%s3180_s11 + $0x78] sm:$0xff] }
  0x2c   : > { %2857 = vmatpush.msra.mxu3 %v478_v11  ;;  %533 = vmatpush.msra.mxu0 %v478_v11  ;;  %v2725_v7 = vld [vmem:[%s4739_s3 + $0x1a8] sm:$0xff]  ;;  %v510_v11 = vld [vmem:[%s4739_s3 + $0x120] sm:$0xff] }
  0x2d   : > { %2858 = vmatpush.msra.mxu1 %v477_v12  ;;  %2859 = vmatpush.msra.mxu2 %v477_v12  ;;  %v3375_v10 = vld [vmem:[%s3180_s11 + $0x8] sm:$0xff] }
  0x2e   : > { %2860 = vmatpush.msra.mxu3 %v477_v12  ;;  %534 = vmatpush.msra.mxu0 %v477_v12  ;;  %v2724_v12 = vld [vmem:[%s4739_s3 + $0x1a0] sm:$0xff]  ;;  %v2721_v35 = vld [vmem:[%s4739_s3 + $0x188] sm:$0xff] }
  0x2f   : > { %2861 = vmatpush.msra.mxu1 %v476_v13  ;;  %2862 = vmatpush.msra.mxu2 %v476_v13 }
  0x30   : > { %2863 = vmatpush.msra.mxu3 %v476_v13  ;;  %535 = vmatpush.msra.mxu0 %v476_v13  ;;  %v2742_v13 = vld [vmem:[%s4739_s3 + $0x230] sm:$0xff] }
  0x31   : > { %2864 = vmatpush.msra.mxu1 %v475_v14  ;;  %2865 = vmatpush.msra.mxu2 %v475_v14 }
  0x32   : > { %2866 = vmatpush.msra.mxu3 %v475_v14  ;;  %536 = vmatpush.msra.mxu0 %v475_v14  ;;  %v495_v14 = vld [vmem:[%s4739_s3 + $0xa8] sm:$0xff] }
  0x33   : > { %2867 = vmatpush.msra.mxu1 %v474_v15  ;;  %2868 = vmatpush.msra.mxu2 %v474_v15 }
  0x34   : > { %2869 = vmatpush.msra.mxu3 %v474_v15  ;;  %562 = vmatmul.f32.vlgmr.msra.gmra.mxu1 %v3192_v16 }
  0x35   : > { %586 = vmatmul.f32.vlgmr.msra.gmra.mxu2 %v3195_v17  ;;  %610 = vmatmul.f32.vlgmr.msra.gmra.mxu3 %v3198_v18 }
  0x36   : > { %748 = vmatpush.msrb.mxu2 %v521_v20  ;;  %1123 = vmatpush.msrb.mxu3 %v2735_v21  ;;  %v2723_v20 = vld [vmem:[%s4739_s3 + $0x198] sm:$0xff] }
  0x37   : > { %537 = vmatpush.msra.mxu0 %v474_v15  ;;  %635 = vmatpush.msrb.mxu1 %v505_v22  ;;  %v509_v15 = vld [vmem:[%s4739_s3 + $0x118] sm:$0xff] }
  0x38   : > { %749 = vmatpush.msrb.mxu2 %v520_v23  ;;  %1124 = vmatpush.msrb.mxu3 %v2734_v24  ;;  %v3400_v21 = vld [vmem:[%s3180_s11 + $0xd8] sm:$0xff]  ;;  %v2741_v23 = vld [vmem:[%s4739_s3 + $0x228] sm:$0xff]  ;;  %v494_v24 = vld [vmem:[%s4739_s3 + $0xa0] sm:$0xff] }
  0x39   : > { %538 = vmatmul.f32.vlgmr.msra.gmra.mxu0 %v3219_v25  ;;  %636 = vmatpush.msrb.mxu1 %v504_v26  ;;  %v3403_v22 = vld [vmem:[%s3180_s11 + $0x138] sm:$0xff]  ;;  %v508_v26 = vld [vmem:[%s4739_s3 + $0x110] sm:$0xff] }
  0x3a   : > { %750 = vmatpush.msrb.mxu2 %v519_v27  ;;  %1125 = vmatpush.msrb.mxu3 %v2733_v28  ;;  %v2722_v27 = vld [vmem:[%s4739_s3 + $0x190] sm:$0xff]  ;;  %v2740_v28 = vld [vmem:[%s4739_s3 + $0x220] sm:$0xff] }
  0x3b   : > { %1236 = vmatpush.msrb.mxu0 %v2751_v29  ;;  %637 = vmatpush.msrb.mxu1 %v503_v30  ;;  %v493_v29 = vld [vmem:[%s4739_s3 + $0x98] sm:$0xff] }
  0x3c   : > { %565 = vmatmul.f32.gmra.mxu1 %v3238_v31  ;;  %751 = vmatpush.msrb.mxu2 %v518_v32  ;;  %v3427_v30 = vld [vmem:[%s3180_s11 + $0x18] sm:$0xff]  ;;  %v507_v32 = vld [vmem:[%s4739_s3 + $0x108] sm:$0xff] }
  0x3d   : > { %589 = vmatmul.f32.gmra.mxu2 %v3244_v33  ;;  %613 = vmatmul.f32.gmra.mxu3 %v3247_v34 }
  0x3e   : > { %1126 = vmatpush.msrb.mxu3 %v2732_v36  ;;  %1237 = vmatpush.msrb.mxu0 %v2750_v37  ;;  %v2739_v36 = vld [vmem:[%s4739_s3 + $0x218] sm:$0xff]  ;;  %v492_v37 = vld [vmem:[%s4739_s3 + $0x90] sm:$0xff] }
  0x3f   : > { %752 = vmatpush.msrb.mxu2 %v517_v38  ;;  %638 = vmatpush.msrb.mxu1 %v502_v39  ;;  %v506_v38 = vld [vmem:[%s4739_s3 + $0x100] sm:$0xff] }
  0x40   : > { %1127 = vmatpush.msrb.mxu3 %v2731_v41  ;;  %1238 = vmatpush.msrb.mxu0 %v2749_v42  ;;  %v3446_v39 = vld [vmem:[%s3180_s11 + $0x80] sm:$0xff] }
  0x41   : > { %541 = vmatmul.f32.gmra.mxu0 %v3265_v40  ;;  %753 = vmatpush.msrb.mxu2 %v516_v43  ;;  %v2720_v41 = vld [vmem:[%s4739_s3 + $0x180] sm:$0xff] }
  0x42   : > { %1128 = vmatpush.msrb.mxu3 %v2730_v44  ;;  %1239 = vmatpush.msrb.mxu0 %v2748_v45  ;;  %v3452_v42 = vld [vmem:[%s3180_s11 + $0xe0] sm:$0xff]  ;;  %v2738_v44 = vld [vmem:[%s4739_s3 + $0x210] sm:$0xff]  ;;  %v491_v45 = vld [vmem:[%s4739_s3 + $0x88] sm:$0xff] }
  0x43   : > { %639 = vmatpush.msrb.mxu1 %v501_v46  ;;  %754 = vmatpush.msrb.mxu2 %v515_v47  ;;  %v3455_v43 = vld [vmem:[%s3180_s11 + $0x140] sm:$0xff]  ;;  %v2783_v46 = vld [vmem:[%s4739_s3 + $0x378] sm:$0xff] }
  0x44   : > { %568 = vmatmul.f32.gmra.mxu1 %v3290_v48  ;;  %1129 = vmatpush.msrb.mxu3 %v2729_v49  ;;  %v2799_v47 = vld [vmem:[%s4739_s3 + $0x3f8] sm:$0xff]  ;;  %v490_v49 = vld [vmem:[%s4739_s3 + $0x80] sm:$0xff] }
  0x45   : > { %592 = vmatmul.f32.gmra.mxu2 %v3296_v50  ;;  %616 = vmatmul.f32.gmra.mxu3 %v3299_v51 }
  0x46   : > { %1240 = vmatpush.msrb.mxu0 %v2747_v52  ;;  %640 = vmatpush.msrb.mxu1 %v500_v53  ;;  %v2737_v52 = vld [vmem:[%s4739_s3 + $0x208] sm:$0xff]  ;;  %v3479_v53 = vld [vmem:[%s3180_s11 + $0x20] sm:$0xff] }
  0x47   : > { %755 = vmatpush.msrb.mxu2 %v514_v54  ;;  %1130 = vmatpush.msrb.mxu3 %v2728_v55  ;;  %v2767_v54 = vld [vmem:[%s4739_s3 + $0x2f8] sm:$0xff]  ;;  %v2736_v55 = vld [vmem:[%s4739_s3 + $0x200] sm:$0xff] }
  0x48   : > { %1241 = vmatpush.msrb.mxu0 %v2746_v56  ;;  %641 = vmatpush.msrb.mxu1 %v499_v57  ;;  %v2815_v56 = vld [vmem:[%s4739_s3 + $0x478] sm:$0xff]  ;;  %v3492_v57 = vld [vmem:[%s3180_s11 + $0x90] sm:$0xff] }
  0x49   : > { %544 = vmatmul.f32.gmra.mxu0 %v3323_v58  ;;  %756 = vmatpush.msrb.mxu2 %v513_v59  ;;  %v3495_v59 = vld [vmem:[%s3180_s11 + $0xf0] sm:$0xff] }
  0x4a   : > { %1131 = vmatpush.msrb.mxu3 %v2727_v60  ;;  %1242 = vmatpush.msrb.mxu0 %v2745_v61  ;;  %v3498_v60 = vld [vmem:[%s3180_s11 + $0x150] sm:$0xff] }
  0x4b   : > { %642 = vmatpush.msrb.mxu1 %v498_v62  ;;  %757 = vmatpush.msrb.mxu2 %v512_v63  ;;  %v2782_v61 = vld [vmem:[%s4739_s3 + $0x370] sm:$0xff] }
  0x4c   : > { %571 = vmatmul.f32.gmra.mxu1 %v3342_v0  ;;  %1132 = vmatpush.msrb.mxu3 %v2726_v1  ;;  %v2798_v62 = vld [vmem:[%s4739_s3 + $0x3f0] sm:$0xff]  ;;  %v3514_v1 = vld [vmem:[%s3180_s11 + $0x98] sm:$0xff] }
  0x4d   : > { %595 = vmatmul.f32.gmra.mxu2 %v3348_v2  ;;  %619 = vmatmul.f32.gmra.mxu3 %v3351_v3  ;;  %v3510_v63 = vld [vmem:[%s3180_s11 + $0x30] sm:$0xff] }
  0x4e   : > { %1243 = vmatpush.msrb.mxu0 %v2744_v4  ;;  %643 = vmatpush.msrb.mxu1 %v497_v5  ;;  %v2766_v4 = vld [vmem:[%s4739_s3 + $0x2f0] sm:$0xff]  ;;  %v3520_v5 = vld [vmem:[%s3180_s11 + $0xf8] sm:$0xff] }
  0x4f   : > { %758 = vmatpush.msrb.mxu2 %v511_v6  ;;  %1133 = vmatpush.msrb.mxu3 %v2725_v7  ;;  %v3523_v6 = vld [vmem:[%s3180_s11 + $0x158] sm:$0xff]  ;;  %v2814_v7 = vld [vmem:[%s4739_s3 + $0x470] sm:$0xff] }
  0x50   : > { %1244 = vmatpush.msrb.mxu0 %v2743_v8  ;;  %644 = vmatpush.msrb.mxu1 %v496_v9  ;;  %v3532_v8 = vld [vmem:[%s3180_s11 + $0x38] sm:$0xff]  ;;  %v948_v9 = vrot.slane %v3219_v25, 1 }
  0x51   : > { %547 = vmatmul.f32.gmra.mxu0 %v3375_v10  ;;  %759 = vmatpush.msrb.mxu2 %v510_v11  ;;  %v949_v11 = vrot.slane %v3265_v40, 1 }
  0x52   : > { %1134 = vmatpush.msrb.mxu3 %v2724_v12  ;;  %1245 = vmatpush.msrb.mxu0 %v2742_v13  ;;  %v408_v12 = vld [vmem:[%s3186_s15 + $0x10] sm:$0x3]  ;;  %s2817_s15 = sshll.u32 %s3029_s21, 1  ;;  %s2529_s21 = scalar_lea.sflag [#allocation4], %s347_s27 }
  0x53   : > { %645 = vmatpush.msrb.mxu1 %v495_v14  ;;  %760 = vmatpush.msrb.mxu2 %v509_v15  ;;  %v950_v13 = vsel %vm947_vm0, %v948_v9, %v949_v11  ;;  %v951_v14 = vrot.slane %v3323_v58, 1  ;;  %v952_v15 = vrot.slane %v3375_v10, 1  ;;  %v968_v9 = vrot.slane %v3192_v16, 1  ;;  %s2544_s8 = scalar_lea.hbm %s4741_s5, %s2817_s15 }
  0x54   : > { %574 = vmatmul.f32.gmra.mxu1 %v3394_v19  ;;  %1135 = vmatpush.msrb.mxu3 %v2723_v20  ;;  %v3541_v20 = vmul.f32 0.0, %v408_v12  ;;  %v2794_v12 = vld [vmem:[%s4739_s3 + $0x3d0] sm:$0xff]  ;;  %s2548_s10 = sshll.u32 %s2544_s8, 4  ;;  %s2549_s10 = int_to_ptr.hbm [resolvable:$true] %s2548_s10 }
  0x55   : > { %598 = vmatmul.f32.gmra.mxu2 %v3400_v21  ;;  %622 = vmatmul.f32.gmra.mxu3 %v3403_v22  ;;  %s2973_s12 = sshra.s32 %s2549_s10, 4  ;;  %s2974_s12 = int_to_ptr.hbm [resolvable:$true] %s2973_s12 }
  0x56   : > { %1246 = vmatpush.msrb.mxu0 %v2741_v23  ;;  %646 = vmatpush.msrb.mxu1 %v494_v24  ;;  %v2781_v23 = vld [vmem:[%s4739_s3 + $0x368] sm:$0xff]  ;;  %s2975_s14 = scalar_lea.hbm %s2974_s12, 2  ;;  %p2980_p1 = scmp.lt.s32.totalorder %s2974_s12, %s4741_s5 }
  0x57   : > { %761 = vmatpush.msrb.mxu2 %v508_v26  ;;  %1136 = vmatpush.msrb.mxu3 %v2722_v27  ;;  %v2797_v24 = vld [vmem:[%s4739_s3 + $0x3e8] sm:$0xff]  ;;  %v953_v26 = vsel %vm947_vm0, %v951_v14, %v952_v15  ;;  %v957_v27 = vrot.slane %v3541_v20, 1  ;;  %v3644_v14 = vld [vmem:[%s3180_s11 + $0x58] sm:$0x3]  ;;  %p2976_p12 = scmp.ne.s32.totalorder %s2974_s12, %s2975_s14  ;;  %p2981_p2 = scmp.lt.s32.totalorder %s2979_s24, %s2975_s14 }
  0x58   : > { %1247 = vmatpush.msrb.mxu0 %v2740_v28  ;;  %647 = vmatpush.msrb.mxu1 %v493_v29  ;;  %v3554_v28 = vld [vmem:[%s3180_s11 + $0x10] sm:$0x3] }
  0x59   : > { %550 = vmatmul.f32.gmra.mxu0 %v3427_v30  ;;  %762 = vmatpush.msrb.mxu2 %v507_v32  ;;  %v958_v29 = vsel %vm947_vm0, %v949_v11, %v957_v27  ;;  %v959_v32 = vrot.slane %v3554_v28, 1  ;;  %v969_v11 = vrot.slane %v3238_v31, 1  ;;  %v973_v27 = vrot.slane %v3290_v48, 1  ;;  %p2977_p13 = pnand %p2976_p12, %p3109_p4  ;;  %p2982_p3 = por %p2981_p2, %p2980_p1 }
  0x5a   : > { %1137 = vmatpush.msrb.mxu3 %v2721_v35  ;;  %1248 = vmatpush.msrb.mxu0 %v2739_v36  ;;  %v2813_v35 = vld [vmem:[%s4739_s3 + $0x468] sm:$0xff] }
  0x5b   : > { %648 = vmatpush.msrb.mxu1 %v492_v37  ;;  %763 = vmatpush.msrb.mxu2 %v506_v38  ;;  %v960_v36 = vsel %vm947_vm0, %v952_v15, %v959_v32  ;;  %v954_v37 = vrot.slane %v3427_v30, 1  ;;  %v955_v38 = vrot.slane %v3479_v53, 1  ;;  %v971_v15 = vrot.slane %v3644_v14, 1  ;;  %p2978_p0 = pneg %p2977_p13 }
  0x5c   : > { %577 = vmatmul.f32.gmra.mxu1 %v3446_v39  ;;  %1138 = vmatpush.msrb.mxu3 %v2720_v41  ;;  %v2796_v41 = vld [vmem:[%s4739_s3 + $0x3e0] sm:$0xff] }
  0x5d   : > { %601 = vmatmul.f32.gmra.mxu2 %v3452_v42  ;;  %625 = vmatmul.f32.gmra.mxu3 %v3455_v43  ;;  %p2983_p5 = pnand %p2982_p3, %p2978_p0 }
  0x5e   : > { %1249 = vmatpush.msrb.mxu0 %v2738_v44  ;;  %649 = vmatpush.msrb.mxu1 %v491_v45  ;;  %v3578_v44 = vsel %vm947_vm0, %v954_v37, %v955_v38  ;;  %v3581_v45 = vld [vmem:[%s3180_s11 + $0x28] sm:$0x3] }
  0x5f   : > { %1734 = vmatpush.msra.mxu2 %v2783_v46  ;;  %1847 = vmatpush.msra.mxu3 %v2799_v47  ;;  %v961_v46 = vrot.slane %v3581_v45, 1  ;;  %v2812_v47 = vld [vmem:[%s4739_s3 + $0x460] sm:$0xff] }
  0x60   : > { %650 = vmatpush.msrb.mxu1 %v490_v49  ;;  %1250 = vmatpush.msrb.mxu0 %v2737_v52  ;;  %v963_v52 = vrot.slane %v3510_v63, 1 }
  0x61   : > { %553 = vmatmul.f32.gmra.mxu0 %v3479_v53  ;;  %1735 = vmatpush.msra.mxu2 %v2782_v61  ;;  %v3594_v49 = vsel %vm947_vm0, %v955_v38, %v961_v46  ;;  %v3612_v61 = vld [vmem:[%s3180_s11 + $0x40] sm:$0x3] }
  0x62   : > { %1349 = vmatpush.msra.mxu1 %v2767_v54  ;;  %1251 = vmatpush.msrb.mxu0 %v2736_v55  ;;  %v964_v54 = vrot.slane %v3532_v8, 1  ;;  %v2795_v55 = vld [vmem:[%s4739_s3 + $0x3d8] sm:$0xff] }
  0x63   : > { %1848 = vmatpush.msra.mxu3 %v2798_v62  ;;  %1736 = vmatpush.msra.mxu2 %v2781_v23  ;;  %v2763_v62 = vld [vmem:[%s4739_s3 + $0x2d8] sm:$0xff]  ;;  %v2810_v23 = vld [vmem:[%s4739_s3 + $0x450] sm:$0xff] }
  0x64   : > { %1960 = vmatpush.msra.mxu0 %v2815_v56  ;;  %580 = vmatmul.f32.gmra.mxu1 %v3492_v57  ;;  %v3609_v56 = vsel %vm947_vm0, %v963_v52, %v964_v54 }
  0x65   : > { %604 = vmatmul.f32.gmra.mxu2 %v3495_v59  ;;  %628 = vmatmul.f32.gmra.mxu3 %v3498_v60 }
  0x66   : > { %1350 = vmatpush.msra.mxu1 %v2766_v4  ;;  %1961 = vmatpush.msra.mxu0 %v2814_v7  ;;  %v2811_v4 = vld [vmem:[%s4739_s3 + $0x458] sm:$0xff] }
  0x67   : > { %1849 = vmatpush.msra.mxu3 %v2797_v24  ;;  %v3658_v24 = vsel %vm947_vm0, %v969_v11, %v971_v15 }
  0x68   : > { %1962 = vmatpush.msra.mxu0 %v2813_v35 }
  0x69   : > { %556 = vmatmul.f32.gmra.mxu0 %v3510_v63  ;;  %1850 = vmatpush.msra.mxu3 %v2796_v41 }
  0x6a   : > { %1963 = vmatpush.msra.mxu0 %v2812_v47 }
  0x6b   : > { %1851 = vmatpush.msra.mxu3 %v2795_v55  ;;  %v979_v55 = vrot.slane %v3446_v39, 1 }
  0x6c   : > { %583 = vmatmul.f32.gmra.mxu1 %v3514_v1  ;;  %1964 = vmatpush.msra.mxu0 %v2811_v4 }
  0x6d   : > { %607 = vmatmul.f32.gmra.mxu2 %v3520_v5  ;;  %631 = vmatmul.f32.gmra.mxu3 %v3523_v6 }
  0x6e   : > { %1852 = vmatpush.msra.mxu3 %v2794_v12  ;;  %1965 = vmatpush.msra.mxu0 %v2810_v23  ;;  %v2808_v23 = vld [vmem:[%s4739_s3 + $0x440] sm:$0xff] }
  0x71   : > { %559 = vmatmul.f32.gmra.mxu0 %v3532_v8 }
  0x74   : > { %651 = vmatmul.f32.vlgmr.msrb.gmra.mxu1 %v3323_v58  ;;  %v2765_v58 = vld [vmem:[%s4739_s3 + $0x2e8] sm:$0xff] }
  0x75   : > { %764 = vmatmul.f32.vlgmr.msrb.gmra.mxu2 %v3427_v30  ;;  %1139 = vmatmul.f32.vlgmr.msrb.gmra.mxu3 %v950_v13  ;;  %v3641_v13 = vsel %vm947_vm0, %v968_v9, %v969_v11 }
  0x76   : > { %1351 = vmatpush.msra.mxu1 %v2765_v58  ;;  %v2777_v58 = vld [vmem:[%s4739_s3 + $0x348] sm:$0xff] }
  0x79   : > { %1252 = vmatmul.f32.vlgmr.msrb.gmra.mxu0 %v953_v26 }
  0x7c   : > { %654 = vmatmul.f32.gmra.mxu1 %v3375_v10  ;;  %v2780_v10 = vld [vmem:[%s4739_s3 + $0x360] sm:$0xff] }
  0x7d   : > { %767 = vmatmul.f32.gmra.mxu2 %v3479_v53  ;;  %1142 = vmatmul.f32.gmra.mxu3 %v958_v29  ;;  %v2793_v29 = vld [vmem:[%s4739_s3 + $0x3c8] sm:$0xff] }
  0x7e   : > { %1737 = vmatpush.msra.mxu2 %v2780_v10  ;;  %1853 = vmatpush.msra.mxu3 %v2793_v29  ;;  %v2761_v10 = vld [vmem:[%s4739_s3 + $0x2c8] sm:$0xff] }
  0x81   : > { %1255 = vmatmul.f32.gmra.mxu0 %v960_v36 }
  0x84   : > { %657 = vmatmul.f32.gmra.mxu1 %v3427_v30  ;;  %v2764_v30 = vld [vmem:[%s4739_s3 + $0x2e0] sm:$0xff] }
  0x85   : > { %770 = vmatmul.f32.gmra.mxu2 %v3510_v63  ;;  %1145 = vmatmul.f32.gmra.mxu3 %v953_v26 }
  0x86   : > { %1352 = vmatpush.msra.mxu1 %v2764_v30  ;;  %v2809_v30 = vld [vmem:[%s4739_s3 + $0x448] sm:$0xff] }
  0x87   : > { %1966 = vmatpush.msra.mxu0 %v2809_v30  ;;  %v2775_v30 = vld [vmem:[%s4739_s3 + $0x338] sm:$0xff] }
  0x88   : > { %1353 = vmatpush.msra.mxu1 %v2763_v62  ;;  %v2776_v62 = vld [vmem:[%s4739_s3 + $0x340] sm:$0xff] }
  0x89   : > { %1258 = vmatmul.f32.gmra.mxu0 %v3578_v44 }
  0x8a   : > { %1967 = vmatpush.msra.mxu0 %v2808_v23 }
  0x8c   : > { %660 = vmatmul.f32.gmra.mxu1 %v3479_v53  ;;  %v2779_v53 = vld [vmem:[%s4739_s3 + $0x358] sm:$0xff] }
  0x8d   : > { %773 = vmatmul.f32.gmra.mxu2 %v3532_v8  ;;  %1148 = vmatmul.f32.gmra.mxu3 %v960_v36 }
  0x8e   : > { %1738 = vmatpush.msra.mxu2 %v2779_v53  ;;  %v978_v53 = vrot.slane %v3394_v19, 1 }
  0x90   : > { %v3725_v9 = vsel %vm947_vm0, %v978_v53, %v979_v55  ;;  %v2791_v53 = vld [vmem:[%s4739_s3 + $0x3b8] sm:$0xff] }
  0x91   : > { %1261 = vmatmul.f32.gmra.mxu0 %v3594_v49 }
  0x94   : > { %663 = vmatmul.f32.gmra.mxu1 %v3510_v63  ;;  %v966_v63 = vrot.slane %v3612_v61, 1 }
  0x95   : > { %776 = vmatmul.f32.gmra.mxu2 %v3192_v16  ;;  %1151 = vmatmul.f32.gmra.mxu3 %v3578_v44 }
  0x96   : > { %v3626_v7 = vsel %vm947_vm0, %v964_v54, %v966_v63  ;;  %v2792_v63 = vld [vmem:[%s4739_s3 + $0x3c0] sm:$0xff] }
  0x97   : > { %1854 = vmatpush.msra.mxu3 %v2792_v63 }
  0x99   : > { %1264 = vmatmul.f32.gmra.mxu0 %v3609_v56  ;;  %1855 = vmatpush.msra.mxu3 %v2791_v53 }
  0x9c   : > { %666 = vmatmul.f32.gmra.mxu1 %v3532_v8  ;;  %v2778_v8 = vld [vmem:[%s4739_s3 + $0x350] sm:$0xff] }
  0x9d   : > { %779 = vmatmul.f32.gmra.mxu2 %v3238_v31  ;;  %1154 = vmatmul.f32.gmra.mxu3 %v3594_v49 }
  0x9e   : > { %1739 = vmatpush.msra.mxu2 %v2778_v8 }
  0xa0   : > { %1740 = vmatpush.msra.mxu2 %v2777_v58 }
  0xa1   : > { %1267 = vmatmul.f32.gmra.mxu0 %v3626_v7 }
  0xa2   : > { %1741 = vmatpush.msra.mxu2 %v2776_v62 }
  0xa4   : > { %669 = vmatmul.f32.gmra.mxu1 %v3192_v16  ;;  %v2762_v16 = vld [vmem:[%s4739_s3 + $0x2d0] sm:$0xff]  ;;  %1742 = vmatpush.msra.mxu2 %v2775_v30 }
  0xa5   : > { %782 = vmatmul.f32.gmra.mxu2 %v3290_v48  ;;  %1157 = vmatmul.f32.gmra.mxu3 %v3609_v56 }
  0xa6   : > { %1354 = vmatpush.msra.mxu1 %v2762_v16  ;;  %v2760_v16 = vld [vmem:[%s4739_s3 + $0x2c0] sm:$0xff] }
  0xa8   : > { %1355 = vmatpush.msra.mxu1 %v2761_v10  ;;  %v983_v10 = vrot.slane %v3492_v57, 1 }
  0xa9   : > { %1270 = vmatmul.f32.gmra.mxu0 %v3641_v13 }
  0xaa   : > { %1356 = vmatpush.msra.mxu1 %v2760_v16 }
  0xac   : > { %672 = vmatmul.f32.gmra.mxu1 %v3238_v31  ;;  %v974_v31 = vrot.slane %v3342_v0, 1 }
  0xad   : > { %785 = vmatmul.f32.gmra.mxu2 %v3342_v0  ;;  %1160 = vmatmul.f32.gmra.mxu3 %v3626_v7 }
  0xae   : > { %v3677_v35 = vsel %vm947_vm0, %v973_v27, %v974_v31 }
  0xb1   : > { %v3660_v26 = vpop.f32.mrf.mxu1  ;;  %1273 = vmatmul.f32.gmra.mxu0 %v3658_v24 }
  0xb2   : > { %4761 = vst [vmem:[#allocation6_spill] sm:$0xff] %v3660_v26 }
  0xb4   : > { %675 = vmatmul.f32.gmra.mxu1 %v3290_v48  ;;  %v3680_v48 = vld [vmem:[%s3180_s11 + $0x70] sm:$0x3] }
  0xb5   : > { %788 = vmatmul.f32.gmra.mxu2 %v3394_v19  ;;  %1163 = vmatmul.f32.gmra.mxu3 %v3641_v13  ;;  %v976_v41 = vrot.slane %v3680_v48, 1 }
  0xb6   : > { %v3674_v32 = vpop.f32.mrf.mxu0 }
  0xb7   : > { %v3702_v47 = vsel %vm947_vm0, %v974_v31, %v976_v41  ;;  %v984_v41 = vrot.slane %v3514_v1, 1 }
  0xb8   : > { %v3682_v36 = vpop.f32.mrf.mxu2  ;;  %v3684_v37 = vpop.f32.mrf.mxu3 }
  0xb9   : > { %4762 = vst [vmem:[#allocation7_spill] sm:$0xff] %v3682_v36  ;;  %v3686_v38 = vpop.f32.mrf.mxu1  ;;  %1276 = vmatmul.f32.gmra.mxu0 %v3677_v35  ;;  %v3773_v62 = vsel %vm947_vm0, %v983_v10, %v984_v41  ;;  %v2807_v10 = vld [vmem:[%s4739_s3 + $0x438] sm:$0xff] }
  0xba   : > { %4763 = vst [vmem:[#allocation8_spill] sm:$0xff] %v3684_v37  ;;  %1968 = vmatpush.msra.mxu0 %v2807_v10 }
  0xbb   : > { %4764 = vst [vmem:[#allocation9_spill] sm:$0xff] %v3686_v38 }
  0xbc   : > { %678 = vmatmul.f32.gmra.mxu1 %v3342_v0 }
  0xbd   : > { %791 = vmatmul.f32.gmra.mxu2 %v3446_v39  ;;  %1166 = vmatmul.f32.gmra.mxu3 %v3658_v24 }
  0xbe   : > { %v3699_v46 = vpop.f32.mrf.mxu0 }
  0xc0   : > { %v3704_v52 = vpop.f32.mrf.mxu2  ;;  %v3706_v54 = vpop.f32.mrf.mxu3 }
  0xc1   : > { %4765 = vst [vmem:[#allocation10_spill] sm:$0xff] %v3704_v52  ;;  %v3708_v0 = vpop.f32.mrf.mxu1  ;;  %1279 = vmatmul.f32.gmra.mxu0 %v3702_v47  ;;  %v994_v52 = vrot.slane %v3348_v2, 1 }
  0xc2   : > { %4766 = vst [vmem:[#allocation11_spill] sm:$0xff] %v3706_v54  ;;  %v989_v54 = vrot.slane %v3244_v33, 1 }
  0xc3   : > { %4767 = vst [vmem:[#allocation12_spill] sm:$0xff] %v3708_v0  ;;  %v999_v0 = vrot.slane %v3452_v42, 1 }
  0xc4   : > { %681 = vmatmul.f32.gmra.mxu1 %v3394_v19  ;;  %v3728_v19 = vld [vmem:[%s3180_s11 + $0x88] sm:$0x3] }
  0xc5   : > { %794 = vmatmul.f32.gmra.mxu2 %v3492_v57  ;;  %1169 = vmatmul.f32.gmra.mxu3 %v3677_v35  ;;  %v981_v15 = vrot.slane %v3728_v19, 1 }
  0xc6   : > { %v3722_v4 = vpop.f32.mrf.mxu0 }
  0xc7   : > { %v3750_v31 = vsel %vm947_vm0, %v979_v55, %v981_v15 }
  0xc8   : > { %v3730_v11 = vpop.f32.mrf.mxu2  ;;  %v3732_v8 = vpop.f32.mrf.mxu3 }
  0xc9   : > { %4768 = vst [vmem:[#allocation13_spill] sm:$0xff] %v3730_v11  ;;  %v3734_v12 = vpop.f32.mrf.mxu1  ;;  %1282 = vmatmul.f32.gmra.mxu0 %v3725_v9  ;;  %v2758_v11 = vld [vmem:[%s4739_s3 + $0x2b0] sm:$0xff] }
  0xca   : > { %4769 = vst [vmem:[#allocation14_spill] sm:$0xff] %v3732_v8  ;;  %v988_v8 = vrot.slane %v3195_v17, 1 }
  0xcb   : > { %4770 = vst [vmem:[#allocation15_spill] sm:$0xff] %v3734_v12 }
  0xcc   : > { %684 = vmatmul.f32.gmra.mxu1 %v3446_v39 }
  0xcd   : > { %797 = vmatmul.f32.gmra.mxu2 %v3514_v1  ;;  %1172 = vmatmul.f32.gmra.mxu3 %v3702_v47 }
  0xce   : > { %v3747_v27 = vpop.f32.mrf.mxu0 }
  0xd0   : > { %v3752_v58 = vpop.f32.mrf.mxu2  ;;  %v3754_v29 = vpop.f32.mrf.mxu3 }
  0xd1   : > { %4771 = vst [vmem:[#allocation16_spill] sm:$0xff] %v3752_v58  ;;  %v3756_v39 = vpop.f32.mrf.mxu1  ;;  %1285 = vmatmul.f32.gmra.mxu0 %v3750_v31 }
  0xd2   : > { %4772 = vst [vmem:[#allocation17_spill] sm:$0xff] %v3754_v29  ;;  %v2759_v29 = vld [vmem:[%s4739_s3 + $0x2b8] sm:$0xff] }
  0xd3   : > { %4773 = vst [vmem:[#allocation18_spill] sm:$0xff] %v3756_v39  ;;  %1357 = vmatpush.msra.mxu1 %v2759_v29 }
  0xd4   : > { %687 = vmatmul.f32.gmra.mxu1 %v3492_v57  ;;  %v3776_v57 = vld [vmem:[%s3180_s11 + $0xa0] sm:$0x3] }
  0xd5   : > { %800 = vmatmul.f32.gmra.mxu2 %v3195_v17  ;;  %1175 = vmatmul.f32.gmra.mxu3 %v3725_v9  ;;  %v986_v23 = vrot.slane %v3776_v57, 1 }
  0xd6   : > { %v3770_v55 = vpop.f32.mrf.mxu0  ;;  %1358 = vmatpush.msra.mxu1 %v2758_v11 }
  0xd7   : > { %v3798_v53 = vsel %vm947_vm0, %v984_v41, %v986_v23  ;;  %v2774_v41 = vld [vmem:[%s4739_s3 + $0x330] sm:$0xff] }
  0xd8   : > { %v3778_v63 = vpop.f32.mrf.mxu2  ;;  %v3780_v16 = vpop.f32.mrf.mxu3  ;;  %v2790_v23 = vld [vmem:[%s4739_s3 + $0x3b0] sm:$0xff]  ;;  %1743 = vmatpush.msra.mxu2 %v2774_v41 }
  0xd9   : > { %4774 = vst [vmem:[#allocation19_spill] sm:$0xff] %v3778_v63  ;;  %v3782_v15 = vpop.f32.mrf.mxu1  ;;  %1288 = vmatmul.f32.gmra.mxu0 %v3773_v62  ;;  %1856 = vmatpush.msra.mxu3 %v2790_v23 }
  0xda   : > { %4775 = vst [vmem:[#allocation20_spill] sm:$0xff] %v3780_v16 }
  0xdb   : > { %4776 = vst [vmem:[#allocation21_spill] sm:$0xff] %v3782_v15 }
  0xdc   : > { %690 = vmatmul.f32.gmra.mxu1 %v3514_v1 }
  0xdd   : > { %803 = vmatmul.f32.gmra.mxu2 %v3244_v33  ;;  %1178 = vmatmul.f32.gmra.mxu3 %v3750_v31 }
  0xde   : > { %v3795_v30 = vpop.f32.mrf.mxu0 }
  0xe0   : > { %v3800_v16 = vpop.f32.mrf.mxu2  ;;  %v3802_v29 = vpop.f32.mrf.mxu3 }
  0xe1   : > { %4777 = vst [vmem:[#allocation22_spill] sm:$0xff] %v3800_v16  ;;  %v3804_v1 = vpop.f32.mrf.mxu1  ;;  %1291 = vmatmul.f32.gmra.mxu0 %v3798_v53 }
  0xe2   : > { %4778 = vst [vmem:[#allocation23_spill] sm:$0xff] %v3802_v29  ;;  %v3821_v29 = vsel %vm947_vm0, %v988_v8, %v989_v54  ;;  %v2806_v8 = vld [vmem:[%s4739_s3 + $0x430] sm:$0xff] }
  0xe3   : > { %4779 = vst [vmem:[#allocation24_spill] sm:$0xff] %v3804_v1  ;;  %1969 = vmatpush.msra.mxu0 %v2806_v8 }
  0xe4   : > { %693 = vmatmul.f32.gmra.mxu1 %v3195_v17  ;;  %v3824_v17 = vld [vmem:[%s3180_s11 + $0xb8] sm:$0x3] }
  0xe5   : > { %806 = vmatmul.f32.gmra.mxu2 %v3296_v50  ;;  %1181 = vmatmul.f32.gmra.mxu3 %v3773_v62  ;;  %v991_v58 = vrot.slane %v3824_v17, 1 }
  0xe6   : > { %v3818_v10 = vpop.f32.mrf.mxu0 }
  0xe7   : > { %v3846_v23 = vsel %vm947_vm0, %v989_v54, %v991_v58  ;;  %v2773_v54 = vld [vmem:[%s4739_s3 + $0x328] sm:$0xff] }
  0xe8   : > { %v3826_v37 = vpop.f32.mrf.mxu2  ;;  %v3828_v16 = vpop.f32.mrf.mxu3  ;;  %v2789_v58 = vld [vmem:[%s4739_s3 + $0x3a8] sm:$0xff]  ;;  %1744 = vmatpush.msra.mxu2 %v2773_v54 }
  0xe9   : > { %4780 = vst [vmem:[#allocation25_spill] sm:$0xff] %v3826_v37  ;;  %v3830_v63 = vpop.f32.mrf.mxu1  ;;  %1294 = vmatmul.f32.gmra.mxu0 %v3821_v29  ;;  %v993_v37 = vrot.slane %v3296_v50, 1  ;;  %1857 = vmatpush.msra.mxu3 %v2789_v58 }
  0xea   : > { %4781 = vst [vmem:[#allocation26_spill] sm:$0xff] %v3828_v16 }
  0xeb   : > { %4782 = vst [vmem:[#allocation27_spill] sm:$0xff] %v3830_v63 }
  0xec   : > { %696 = vmatmul.f32.gmra.mxu1 %v3244_v33 }
  0xed   : > { %809 = vmatmul.f32.gmra.mxu2 %v3348_v2  ;;  %1184 = vmatmul.f32.gmra.mxu3 %v3798_v53 }
  0xee   : > { %v3843_v41 = vpop.f32.mrf.mxu0 }
  0xf0   : > { %v3848_v16 = vpop.f32.mrf.mxu2  ;;  %v3850_v11 = vpop.f32.mrf.mxu3 }
  0xf1   : > { %4783 = vst [vmem:[#allocation28_spill] sm:$0xff] %v3848_v16  ;;  %v652_v33 = vpop.f32.mrf.mxu1  ;;  %1297 = vmatmul.f32.gmra.mxu0 %v3846_v23  ;;  %v3869_v16 = vld [vmem:[%s3180_s11 + $0xd0] sm:$0x3] }
  0xf2   : > { %4784 = vst [vmem:[#allocation29_spill] sm:$0xff] %v3850_v11  ;;  %v3865_v11 = vsel %vm947_vm0, %v993_v37, %v994_v52  ;;  %v996_v12 = vrot.slane %v3869_v16, 1  ;;  %v2757_v37 = vld [vmem:[%s4739_s3 + $0x2a8] sm:$0xff] }
  0xf3   : > { %1359 = vmatpush.msra.mxu1 %v2757_v37  ;;  %v998_v37 = vrot.slane %v3400_v21, 1 }
  0xf4   : > { %699 = vmatmul.f32.gmra.mxu1 %v3296_v50  ;;  %v653_v50 = vadd.f32 %v652_v33, %v3674_v32  ;;  %v2805_v32 = vld [vmem:[%s4739_s3 + $0x428] sm:$0xff] }
  0xf5   : > { %812 = vmatmul.f32.gmra.mxu2 %v3400_v21  ;;  %1187 = vmatmul.f32.gmra.mxu3 %v3821_v29 }
  0xf6   : > { %v1253_v8 = vpop.f32.mrf.mxu0  ;;  %1970 = vmatpush.msra.mxu0 %v2805_v32  ;;  %v3911_v32 = vld [vmem:[%s3180_s11 + $0xe8] sm:$0x3] }
  0xf7   : > { %v1001_v26 = vrot.slane %v3911_v32, 1 }
  0xf8   : > { %v765_v36 = vpop.f32.mrf.mxu2  ;;  %v1140_v63 = vpop.f32.mrf.mxu3 }
  0xf9   : > { %v3871_v1 = vadd.f32 %v765_v36, %v653_v50  ;;  %v3873_v15 = vadd.f32 %v1253_v8, %v1140_v63  ;;  %v655_v39 = vpop.f32.mrf.mxu1  ;;  %1300 = vmatmul.f32.gmra.mxu0 %v3865_v11  ;;  %v3887_v63 = vsel %vm947_vm0, %v994_v52, %v996_v12  ;;  %v2788_v52 = vld [vmem:[%s4739_s3 + $0x3a0] sm:$0xff] }
  0xfa   : > { %v656_v33 = vadd.f32 %v655_v39, %v3699_v46  ;;  %v2772_v46 = vld [vmem:[%s4739_s3 + $0x320] sm:$0xff]  ;;  %v3907_v39 = vsel %vm947_vm0, %v998_v37, %v999_v0  ;;  %1858 = vmatpush.msra.mxu3 %v2788_v52 }
  0xfb   : > { %1745 = vmatpush.msra.mxu2 %v2772_v46  ;;  %v2756_v37 = vld [vmem:[%s4739_s3 + $0x2a0] sm:$0xff]  ;;  %v3929_v46 = vsel %vm947_vm0, %v999_v0, %v1001_v26  ;;  %v2771_v26 = vld [vmem:[%s4739_s3 + $0x318] sm:$0xff] }
  0xfc   : > { %702 = vmatmul.f32.gmra.mxu1 %v3348_v2 }
  0xfd   : > { %815 = vmatmul.f32.gmra.mxu2 %v3452_v42  ;;  %1190 = vmatmul.f32.gmra.mxu3 %v3846_v23 }
  0xfe   : > { %v1256_v36 = vpop.f32.mrf.mxu0  ;;  %1360 = vmatpush.msra.mxu1 %v2756_v37  ;;  %v1003_v37 = vrot.slane %v3495_v59, 1  ;;  %1746 = vmatpush.msra.mxu2 %v2771_v26 }
 0x100   : > { %v768_v54 = vpop.f32.mrf.mxu2  ;;  %v1143_v58 = vpop.f32.mrf.mxu3 }
 0x101   : > { %v3890_v8 = vadd.f32 %v768_v54, %v656_v33  ;;  %v3892_v2 = vadd.f32 %v1256_v36, %v1143_v58  ;;  %v658_v50 = vpop.f32.mrf.mxu1  ;;  %1303 = vmatmul.f32.gmra.mxu0 %v3887_v63 }
 0x104   : > { %705 = vmatmul.f32.gmra.mxu1 %v3400_v21  ;;  %v659_v21 = vadd.f32 %v658_v50, %v3722_v4  ;;  %v2804_v4 = vld [vmem:[%s4739_s3 + $0x420] sm:$0xff] }
 0x105   : > { %818 = vmatmul.f32.gmra.mxu2 %v3495_v59  ;;  %1193 = vmatmul.f32.gmra.mxu3 %v3865_v11 }
 0x106   : > { %v1259_v12 = vpop.f32.mrf.mxu0  ;;  %1971 = vmatpush.msra.mxu0 %v2804_v4  ;;  %v3953_v4 = vld [vmem:[%s3180_s11 + $0x100] sm:$0x3] }
 0x108   : > { %v771_v36 = vpop.f32.mrf.mxu2  ;;  %v1146_v33 = vpop.f32.mrf.mxu3 }
 0x109   : > { %v3913_v54 = vadd.f32 %v771_v36, %v659_v21  ;;  %v3915_v58 = vadd.f32 %v1259_v12, %v1146_v33  ;;  %v661_v38 = vpop.f32.mrf.mxu1  ;;  %1306 = vmatmul.f32.gmra.mxu0 %v3907_v39 }
 0x10a   : > { %v662_v52 = vadd.f32 %v661_v38, %v3747_v27  ;;  %v2787_v38 = vld [vmem:[%s4739_s3 + $0x398] sm:$0xff] }
 0x10b   : > { %4785 = vst [vmem:[#allocation30_spill] sm:$0xff] %v3913_v54  ;;  %v1004_v54 = vrot.slane %v3520_v5, 1  ;;  %1859 = vmatpush.msra.mxu3 %v2787_v38 }
 0x10c   : > { %708 = vmatmul.f32.gmra.mxu1 %v3452_v42 }
 0x10d   : > { %821 = vmatmul.f32.gmra.mxu2 %v3520_v5  ;;  %1196 = vmatmul.f32.gmra.mxu3 %v3887_v63  ;;  %v3949_v27 = vsel %vm947_vm0, %v1003_v37, %v1004_v54  ;;  %v2755_v37 = vld [vmem:[%s4739_s3 + $0x298] sm:$0xff] }
 0x10e   : > { %v1262_v50 = vpop.f32.mrf.mxu0  ;;  %1361 = vmatpush.msra.mxu1 %v2755_v37  ;;  %v3980_v37 = vld [vmem:[%s3180_s11 + $0x108] sm:$0xff] }
 0x10f   : > { %4790 = vst [vmem:[#allocation35_spill] sm:$0xff] %v3980_v37 }
 0x110   : > { %v774_v12 = vpop.f32.mrf.mxu2  ;;  %v1149_v21 = vpop.f32.mrf.mxu3 }
 0x111   : > { %v3932_v36 = vadd.f32 %v774_v12, %v662_v52  ;;  %v3934_v42 = vadd.f32 %v1262_v50, %v1149_v21  ;;  %v664_v33 = vpop.f32.mrf.mxu1  ;;  %1309 = vmatmul.f32.gmra.mxu0 %v3929_v46 }
 0x113   : > { %4786 = vst [vmem:[#allocation31_spill] sm:$0xff] %v3932_v36  ;;  %v1006_v36 = vrot.slane %v3953_v4, 1 }
 0x114   : > { %711 = vmatmul.f32.gmra.mxu1 %v3495_v59  ;;  %v665_v59 = vadd.f32 %v664_v33, %v3770_v55  ;;  %v2803_v55 = vld [vmem:[%s4739_s3 + $0x418] sm:$0xff] }
 0x115   : > { %824 = vmatmul.f32.gmra.mxu2 %v3198_v18  ;;  %1199 = vmatmul.f32.gmra.mxu3 %v3907_v39  ;;  %v3971_v26 = vsel %vm947_vm0, %v1004_v54, %v1006_v36  ;;  %v1009_v54 = vrot.slane %v3247_v34, 1  ;;  %v2786_v36 = vld [vmem:[%s4739_s3 + $0x390] sm:$0xff] }
 0x116   : > { %v1265_v0 = vpop.f32.mrf.mxu0  ;;  %1972 = vmatpush.msra.mxu0 %v2803_v55  ;;  %1860 = vmatpush.msra.mxu3 %v2786_v36 }
 0x118   : > { %v777_v18 = vpop.f32.mrf.mxu2  ;;  %v1152_v50 = vpop.f32.mrf.mxu3 }
 0x119   : > { %v3955_v52 = vadd.f32 %v777_v18, %v665_v59  ;;  %v3957_v12 = vadd.f32 %v1265_v0, %v1152_v50  ;;  %v667_v21 = vpop.f32.mrf.mxu1  ;;  %1312 = vmatmul.f32.gmra.mxu0 %v3949_v27 }
 0x11a   : > { %v668_v38 = vadd.f32 %v667_v21, %v3795_v30  ;;  %v2770_v30 = vld [vmem:[%s4739_s3 + $0x310] sm:$0xff] }
 0x11b   : > { %4787 = vst [vmem:[#allocation32_spill] sm:$0xff] %v3955_v52  ;;  %v1008_v52 = vrot.slane %v3980_v37, 1  ;;  %1747 = vmatpush.msra.mxu2 %v2770_v30  ;;  %v4010_v30 = vld [vmem:[%s3180_s11 + $0x110] sm:$0xff] }
 0x11c   : > { %714 = vmatmul.f32.gmra.mxu1 %v3520_v5 }
 0x11d   : > { %827 = vmatmul.f32.gmra.mxu2 %v3247_v34  ;;  %1202 = vmatmul.f32.gmra.mxu3 %v3929_v46  ;;  %v3994_v55 = vsel %vm947_vm0, %v1008_v52, %v1009_v54  ;;  %v2754_v52 = vld [vmem:[%s4739_s3 + $0x290] sm:$0xff] }
 0x11e   : > { %v1268_v33 = vpop.f32.mrf.mxu0  ;;  %1362 = vmatpush.msra.mxu1 %v2754_v52 }
 0x120   : > { %v780_v0 = vpop.f32.mrf.mxu2  ;;  %v1155_v59 = vpop.f32.mrf.mxu3 }
 0x121   : > { %v3974_v18 = vadd.f32 %v780_v0, %v668_v38  ;;  %v3976_v5 = vadd.f32 %v1268_v33, %v1155_v59  ;;  %v670_v50 = vpop.f32.mrf.mxu1  ;;  %1315 = vmatmul.f32.gmra.mxu0 %v3971_v26  ;;  %v3998_v33 = vld [vmem:[%s3180_s11 + $0x118] sm:$0x3] }
 0x122   : > { %v671_v34 = vadd.f32 %v670_v50, %v3818_v10  ;;  %4791 = vst [vmem:[#allocation36_spill] sm:$0xff] %v3998_v33  ;;  %v2802_v10 = vld [vmem:[%s4739_s3 + $0x410] sm:$0xff] }
 0x123   : > { %4788 = vst [vmem:[#allocation33_spill] sm:$0xff] %v3974_v18  ;;  %1973 = vmatpush.msra.mxu0 %v2802_v10  ;;  %v4047_v10 = vld [vmem:[%s3180_s11 + $0x130] sm:$0x3] }
 0x124   : > { %4789 = vst [vmem:[#allocation34_spill] sm:$0xff] %v3976_v5  ;;  %717 = vmatmul.f32.gmra.mxu1 %v3980_v37  ;;  %v1011_v37 = vrot.slane %v3998_v33, 1  ;;  %v1014_v33 = vrot.slane %v3351_v3, 1 }
 0x125   : > { %830 = vmatmul.f32.gmra.mxu2 %v3299_v51  ;;  %1205 = vmatmul.f32.gmra.mxu3 %v3949_v27 }
 0x126   : > { %v1271_v21 = vpop.f32.mrf.mxu0  ;;  %v4019_v36 = vsel %vm947_vm0, %v1009_v54, %v1011_v37  ;;  %v4032_v37 = vld [vmem:[%s3180_s11 + $0x120] sm:$0xff] }
 0x128   : > { %v783_v38 = vpop.f32.mrf.mxu2  ;;  %v1158_v0 = vpop.f32.mrf.mxu3 }
 0x129   : > { %v4000_v59 = vadd.f32 %v783_v38, %v671_v34  ;;  %v4002_v18 = vadd.f32 %v1271_v21, %v1158_v0  ;;  %v673_v5 = vpop.f32.mrf.mxu1  ;;  %1318 = vmatmul.f32.gmra.mxu0 %v3994_v55 }
 0x12a   : > { %v674_v21 = vadd.f32 %v673_v5, %v3843_v41  ;;  %v2769_v41 = vld [vmem:[%s4739_s3 + $0x308] sm:$0xff] }
 0x12b   : > { %4792 = vst [vmem:[#allocation37_spill] sm:$0xff] %v4000_v59  ;;  %v2785_v5 = vld [vmem:[%s4739_s3 + $0x388] sm:$0xff]  ;;  %1748 = vmatpush.msra.mxu2 %v2769_v41 }
 0x12c   : > { %4793 = vst [vmem:[#allocation38_spill] sm:$0xff] %v4002_v18  ;;  %720 = vmatmul.f32.gmra.mxu1 %v4010_v30  ;;  %v1013_v18 = vrot.slane %v3299_v51, 1  ;;  %1861 = vmatpush.msra.mxu3 %v2785_v5  ;;  %v2801_v41 = vld [vmem:[%s4739_s3 + $0x408] sm:$0xff] }
 0x12d   : > { %833 = vmatmul.f32.gmra.mxu2 %v3351_v3  ;;  %1208 = vmatmul.f32.gmra.mxu3 %v3971_v26 }
 0x12e   : > { %v1274_v50 = vpop.f32.mrf.mxu0  ;;  %v4044_v51 = vsel %vm947_vm0, %v1013_v18, %v1014_v33  ;;  %v2753_v18 = vld [vmem:[%s4739_s3 + $0x288] sm:$0xff]  ;;  %1974 = vmatpush.msra.mxu0 %v2801_v41 }
 0x12f   : > { %1363 = vmatpush.msra.mxu1 %v2753_v18 }
 0x130   : > { %v786_v34 = vpop.f32.mrf.mxu2  ;;  %v1161_v38 = vpop.f32.mrf.mxu3 }
 0x131   : > { %v4022_v0 = vadd.f32 %v786_v34, %v674_v21  ;;  %v4024_v52 = vadd.f32 %v1274_v50, %v1161_v38  ;;  %v4026_v59 = vpop.f32.mrf.mxu1  ;;  %1321 = vmatmul.f32.gmra.mxu0 %v4019_v36 }
 0x132   : > { %4795 = vst [vmem:[#allocation40_spill] sm:$0xff] %v4026_v59  ;;  %v1016_v59 = vrot.slane %v4047_v10, 1 }
 0x133   : > { %4794 = vst [vmem:[#allocation39_spill] sm:$0xff] %v4022_v0 }
 0x134   : > { %723 = vmatmul.f32.gmra.mxu1 %v4032_v37 }
 0x135   : > { %836 = vmatmul.f32.gmra.mxu2 %v3403_v22  ;;  %1211 = vmatmul.f32.gmra.mxu3 %v3994_v55 }
 0x136   : > { %v1277_v54 = vpop.f32.mrf.mxu0 }
 0x138   : > { %v4049_v50 = vpop.f32.mrf.mxu2  ;;  %v1164_v21 = vpop.f32.mrf.mxu3 }
 0x139   : > { %4796 = vst [vmem:[#allocation41_spill] sm:$0xff] %v4049_v50  ;;  %v4051_v34 = vadd.f32 %v1277_v54, %v1164_v21  ;;  %v4053_v38 = vpop.f32.mrf.mxu1  ;;  %1324 = vmatmul.f32.gmra.mxu0 %v4044_v51  ;;  %v4067_v54 = vsel %vm947_vm0, %v1014_v33, %v1016_v59  ;;  %v1019_v50 = vrot.slane %v3455_v43, 1  ;;  %v2768_v33 = vld [vmem:[%s4739_s3 + $0x300] sm:$0xff] }
 0x13a   : > { %4798 = vst [vmem:[#allocation43_spill] sm:$0xff] %v4053_v38  ;;  %v2784_v59 = vld [vmem:[%s4739_s3 + $0x380] sm:$0xff]  ;;  %1749 = vmatpush.msra.mxu2 %v2768_v33 }
 0x13b   : > { %4797 = vst [vmem:[#allocation42_spill] sm:$0xff] %v4051_v34  ;;  %v1018_v34 = vrot.slane %v3403_v22, 1  ;;  %1862 = vmatpush.msra.mxu3 %v2784_v59 }
 0x13c   : > { %726 = vmatmul.f32.gmra.mxu1 %v3351_v3  ;;  %4799 = vst [vmem:[#allocation44_spill] sm:$0xff] %v4067_v54 }
 0x13d   : > { %839 = vmatmul.f32.gmra.mxu2 %v3455_v43  ;;  %1214 = vmatmul.f32.gmra.mxu3 %v4019_v36  ;;  %v4088_v41 = vsel %vm947_vm0, %v1018_v34, %v1019_v50  ;;  %v2752_v34 = vld [vmem:[%s4739_s3 + $0x280] sm:$0xff] }
 0x13e   : > { %v1280_v5 = vpop.f32.mrf.mxu0  ;;  %4803 = vst [vmem:[#allocation48_spill] sm:$0xff] %v4088_v41  ;;  %1364 = vmatpush.msra.mxu1 %v2752_v34 }
 0x140   : > { %v4069_v21 = vpop.f32.mrf.mxu2  ;;  %v1167_v38 = vpop.f32.mrf.mxu3 }
 0x141   : > { %4800 = vst [vmem:[#allocation45_spill] sm:$0xff] %v4069_v21  ;;  %v4071_v18 = vadd.f32 %v1280_v5, %v1167_v38  ;;  %v4073_v3 = vpop.f32.mrf.mxu1  ;;  %1327 = vmatmul.f32.gmra.mxu0 %v4067_v54  ;;  %v4091_v5 = vld [vmem:[%s3180_s11 + $0x148] sm:$0x3] }
 0x142   : > { %4802 = vst [vmem:[#allocation47_spill] sm:$0xff] %v4073_v3  ;;  %v1021_v0 = vrot.slane %v4091_v5, 1 }
 0x143   : > { %4801 = vst [vmem:[#allocation46_spill] sm:$0xff] %v4071_v18 }
 0x144   : > { %729 = vmatmul.f32.gmra.mxu1 %v3403_v22  ;;  %4804 = vst [vmem:[#allocation49_spill] sm:$0xff] %v4091_v5  ;;  %v4111_v59 = vsel %vm947_vm0, %v1019_v50, %v1021_v0  ;;  %v454_v5 = vld [vmem:[%s3180_s11 + $0x168] sm:$0xff]  ;;  %v1023_v0 = vrot.slane %v3498_v60, 1  ;;  %v1024_v50 = vrot.slane %v3523_v6, 1 }
 0x145   : > { %842 = vmatmul.f32.gmra.mxu2 %v3498_v60  ;;  %1217 = vmatmul.f32.gmra.mxu3 %v4044_v51  ;;  %4808 = vst [vmem:[#allocation53_spill] sm:$0xff] %v4111_v59 }
 0x146   : > { %v1283_v38 = vpop.f32.mrf.mxu0 }
 0x148   : > { %v4093_v22 = vpop.f32.mrf.mxu2  ;;  %v1170_v3 = vpop.f32.mrf.mxu3 }
 0x149   : > { %4805 = vst [vmem:[#allocation50_spill] sm:$0xff] %v4093_v22  ;;  %v4095_v18 = vadd.f32 %v1283_v38, %v1170_v3  ;;  %v4097_v21 = vpop.f32.mrf.mxu1  ;;  %1330 = vmatmul.f32.gmra.mxu0 %v4088_v41  ;;  %v2800_v3 = vld [vmem:[%s4739_s3 + $0x400] sm:$0xff]  ;;  %v1559_v38 = vrot.slane %v3219_v25, 2 }
 0x14a   : > { %4807 = vst [vmem:[#allocation52_spill] sm:$0xff] %v4097_v21  ;;  %1975 = vmatpush.msra.mxu0 %v2800_v3  ;;  %v4745_v21 = vrot.slane %v3265_v40, 2 }
 0x14b   : > { %4806 = vst [vmem:[#allocation51_spill] sm:$0xff] %v4095_v18 }
 0x14c   : > { %732 = vmatmul.f32.gmra.mxu1 %v3455_v43  ;;  %v1561_v25 = vsel %vm1558_vm1, %v1559_v38, %v4745_v21  ;;  %v4145_v38 = vld [vmem:[%s3180_s11 + $0x170] sm:$0xff] }
 0x14d   : > { %845 = vmatmul.f32.gmra.mxu2 %v3523_v6  ;;  %1220 = vmatmul.f32.gmra.mxu3 %v4067_v54  ;;  %4817 = vst [vmem:[#allocation62_spill] sm:$0xff] %v4145_v38 }
 0x14e   : > { %v1286_v33 = vpop.f32.mrf.mxu0 }
 0x150   : > { %v4115_v34 = vpop.f32.mrf.mxu2  ;;  %v1173_v43 = vpop.f32.mrf.mxu3 }
 0x151   : > { %4809 = vst [vmem:[#allocation54_spill] sm:$0xff] %v4115_v34  ;;  %v4117_v18 = vadd.f32 %v1286_v33, %v1173_v43  ;;  %v4119_v22 = vpop.f32.mrf.mxu1  ;;  %1333 = vmatmul.f32.gmra.mxu0 %v4111_v59  ;;  %v4131_v33 = vsel %vm947_vm0, %v1023_v0, %v1024_v50  ;;  %v4134_v43 = vld [vmem:[%s3180_s11 + $0x160] sm:$0x3] }
 0x152   : > { %4811 = vst [vmem:[#allocation56_spill] sm:$0xff] %v4119_v22  ;;  %v1026_v21 = vrot.slane %v4134_v43, 1 }
 0x153   : > { %4810 = vst [vmem:[#allocation55_spill] sm:$0xff] %v4117_v18 }
 0x154   : > { %735 = vmatmul.f32.gmra.mxu1 %v3498_v60  ;;  %4812 = vst [vmem:[#allocation57_spill] sm:$0xff] %v4131_v33  ;;  %v4157_v0 = vsel %vm947_vm0, %v1024_v50, %v1026_v21  ;;  %v458_v50 = vld [vmem:[%s4151_s16 + $0x8] sm:$0xff] }
 0x155   : > { %848 = vmatmul.f32.gmra.mxu2 %v454_v5  ;;  %1223 = vmatmul.f32.gmra.mxu3 %v4088_v41  ;;  %4813 = vst [vmem:[#allocation58_spill] sm:$0xff] %v4134_v43  ;;  %v1028_v41 = vrot.slane %v454_v5, 1 }
 0x156   : > { %v1289_v3 = vpop.f32.mrf.mxu0  ;;  %4818 = vst [vmem:[#allocation63_spill] sm:$0xff] %v4157_v0 }
 0x158   : > { %v4136_v22 = vpop.f32.mrf.mxu2  ;;  %v1176_v18 = vpop.f32.mrf.mxu3 }
 0x159   : > { %4814 = vst [vmem:[#allocation59_spill] sm:$0xff] %v4136_v22  ;;  %v4139_v34 = vadd.f32 %v1289_v3, %v1176_v18  ;;  %v4141_v60 = vpop.f32.mrf.mxu1  ;;  %1336 = vmatmul.f32.gmra.mxu0 %v4131_v33  ;;  %v457_v3 = vld [vmem:[%s4151_s16] sm:$0xff] }
 0x15a   : > { %4816 = vst [vmem:[#allocation61_spill] sm:$0xff] %v4141_v60 }
 0x15b   : > { %4815 = vst [vmem:[#allocation60_spill] sm:$0xff] %v4139_v34 }
 0x15c   : > { %738 = vmatmul.f32.gmra.mxu1 %v3523_v6  ;;  %v4167_v6 = vmul.f32 0.0, %v457_v3 }
 0x15d   : > { %851 = vmatmul.f32.gmra.mxu2 %v4145_v38  ;;  %1226 = vmatmul.f32.gmra.mxu3 %v4111_v59  ;;  %v1029_v59 = vrot.slane %v4145_v38, 1 }
 0x15e   : > { %v1292_v18 = vpop.f32.mrf.mxu0  ;;  %4822 = vst [vmem:[#allocation67_spill] sm:$0xff] %v4167_v6 }
 0x160   : > { %v4160_v60 = vpop.f32.mrf.mxu2  ;;  %v1179_v34 = vpop.f32.mrf.mxu3 }
 0x161   : > { %4819 = vst [vmem:[#allocation64_spill] sm:$0xff] %v4160_v60  ;;  %v4162_v22 = vadd.f32 %v1292_v18, %v1179_v34  ;;  %v4164_v43 = vpop.f32.mrf.mxu1  ;;  %1339 = vmatmul.f32.gmra.mxu0 %v4157_v0  ;;  %v4173_v34 = vsel %vm947_vm0, %v1028_v41, %v1029_v59  ;;  %v4177_v18 = vld [vmem:[%s3180_s11 + $0x178] sm:$0x3]  ;;  %v2931_v41 = vld [vmem:[%s3180_s11] sm:$0xff] }
 0x162   : > { %4821 = vst [vmem:[#allocation66_spill] sm:$0xff] %v4164_v43 }
 0x163   : > { %4820 = vst [vmem:[#allocation65_spill] sm:$0xff] %v4162_v22 }
 0x164   : > { %741 = vmatmul.f32.gmra.mxu1 %v454_v5  ;;  %4823 = vst [vmem:[#allocation68_spill] sm:$0xff] %v4173_v34  ;;  %v4186_v5 = vmul.f32 0.0, %v458_v50 }
 0x165   : > { %854 = vmatmul.f32.gmra.mxu2 %v4167_v6  ;;  %1229 = vmatmul.f32.gmra.mxu3 %v4131_v33  ;;  %4824 = vst [vmem:[#allocation69_spill] sm:$0xff] %v4177_v18  ;;  %v1031_v6 = vrot.slane %v4177_v18, 1 }
 0x166   : > { %v1295_v21 = vpop.f32.mrf.mxu0  ;;  %4828 = vst [vmem:[#allocation73_spill] sm:$0xff] %v4186_v5 }
 0x168   : > { %v4179_v43 = vpop.f32.mrf.mxu2  ;;  %v1182_v3 = vpop.f32.mrf.mxu3 }
 0x169   : > { %4825 = vst [vmem:[#allocation70_spill] sm:$0xff] %v4179_v43  ;;  %v4181_v22 = vadd.f32 %v1295_v21, %v1182_v3  ;;  %v4183_v60 = vpop.f32.mrf.mxu1  ;;  %1342 = vmatmul.f32.gmra.mxu0 %v4173_v34  ;;  %v1562_v43 = vrot.slane %v2931_v41, 2  ;;  %v2932_v21 = vld [vmem:[%s3180_s11 + $0x8] sm:$0xff]  ;;  %v2934_v41 = vld [vmem:[%s3180_s11 + $0x20] sm:$0xff] }
 0x16a   : > { %4827 = vst [vmem:[#allocation72_spill] sm:$0xff] %v4183_v60  ;;  %v1563_v3 = vrot.slane %v2932_v21, 2  ;;  %v4195_v60 = vsel %vm947_vm0, %v1029_v59, %v1031_v6  ;;  %v1566_v54 = vrot.slane %v2934_v41, 2  ;;  %v1568_v6 = vrot.slane %v3541_v20, 2 }
 0x16b   : > { %4826 = vst [vmem:[#allocation71_spill] sm:$0xff] %v4181_v22 }
 0x16c   : > { %744 = vmatmul.f32.gmra.mxu1 %v4145_v38  ;;  %v2933_v38 = vld [vmem:[%s3180_s11 + $0x18] sm:$0xff] }
 0x16d   : > { %857 = vmatmul.f32.gmra.mxu2 %v4186_v5  ;;  %1232 = vmatmul.f32.gmra.mxu3 %v4157_v0  ;;  %v1564_v5 = vsel %vm1558_vm1, %v1562_v43, %v1563_v3  ;;  %v1565_v0 = vrot.slane %v2933_v38, 2 }
 0x16e   : > { %v1298_v22 = vpop.f32.mrf.mxu0 }
 0x170   : > { %v4197_v50 = vpop.f32.mrf.mxu2  ;;  %v1185_v34 = vpop.f32.mrf.mxu3 }
 0x171   : > { %v4199_v18 = vadd.f32 %v1298_v22, %v1185_v34  ;;  %v4201_v33 = vpop.f32.mrf.mxu1  ;;  %1345 = vmatmul.f32.gmra.mxu0 %v4195_v60  ;;  %v1570_v22 = vrot.slane %v3554_v28, 2  ;;  %v1567_v34 = vsel %vm1558_vm1, %v1565_v0, %v1566_v54  ;;  %v1572_v28 = vrot.slane %v3581_v45, 2 }
 0x172   : > { %4830 = vst [vmem:[#allocation75_spill] sm:$0xff] %v4201_v33 }
 0x173   : > { %4829 = vst [vmem:[#allocation74_spill] sm:$0xff] %v4199_v18  ;;  %v1571_v20 = vsel %vm1558_vm1, %v1563_v3, %v1570_v22  ;;  %v2936_v3 = vld [vmem:[%s3180_s11 + $0x38] sm:$0xff] }
 0x174   : > { %1365 = vmatmul.f32.vlgmr.msra.gmra.mxu1 %v3578_v44  ;;  %v4831_v44 = vrot.slane %v3265_v40, 2  ;;  %v1575_v22 = vrot.slane %v2936_v3, 2 }
 0x175   : > { %1750 = vmatmul.f32.vlgmr.msra.gmra.mxu2 %v1561_v25  ;;  %1863 = vmatmul.f32.vlgmr.msra.gmra.mxu3 %v1564_v5 }
 0x176   : > { %v1301_v59 = vpop.f32.mrf.mxu0  ;;  %v1569_v25 = vsel %vm1558_vm1, %v4831_v44, %v1568_v6  ;;  %v2935_v6 = vld [vmem:[%s3180_s11 + $0x30] sm:$0xff] }
 0x177   : > { %v1574_v44 = vrot.slane %v2935_v6, 2 }
 0x178   : > { %v4211_v21 = vpop.f32.mrf.mxu2  ;;  %v1188_v33 = vpop.f32.mrf.mxu3 }
 0x179   : > { %v4213_v18 = vadd.f32 %v1301_v59, %v1188_v33  ;;  %v4215_v43 = vpop.f32.mrf.mxu1  ;;  %1976 = vmatmul.f32.vlgmr.msra.gmra.mxu0 %v1567_v34  ;;  %v1573_v33 = vsel %vm1558_vm1, %v1566_v54, %v1572_v28 }
 0x17c   : > { %1368 = vmatmul.f32.gmra.mxu1 %v3594_v49  ;;  %v1576_v49 = vsel %vm1558_vm1, %v1574_v44, %v1575_v22 }
 0x17d   : > { %1753 = vmatmul.f32.gmra.mxu2 %v1569_v25  ;;  %1866 = vmatmul.f32.gmra.mxu3 %v1571_v20 }
 0x17e   : > { %v1304_v38 = vpop.f32.mrf.mxu0 }
 0x180   : > { %v4224_v0 = vpop.f32.mrf.mxu2  ;;  %v1191_v41 = vpop.f32.mrf.mxu3 }
 0x181   : > { %v4226_v59 = vadd.f32 %v1304_v38, %v1191_v41  ;;  %v4228_v40 = vpop.f32.mrf.mxu1  ;;  %1979 = vmatmul.f32.gmra.mxu0 %v1573_v33  ;;  %v1577_v41 = vrot.slane %v3612_v61, 2 }
 0x184   : > { %1371 = vmatmul.f32.gmra.mxu1 %v3609_v56 }
 0x185   : > { %1756 = vmatmul.f32.gmra.mxu2 %v1564_v5  ;;  %1869 = vmatmul.f32.gmra.mxu3 %v1567_v34  ;;  %v1578_v5 = vsel %vm1558_vm1, %v1575_v22, %v1577_v41 }
 0x186   : > { %v1307_v45 = vpop.f32.mrf.mxu0 }
 0x188   : > { %v4234_v54 = vpop.f32.mrf.mxu2  ;;  %v1194_v25 = vpop.f32.mrf.mxu3 }
 0x189   : > { %4832 = vst [vmem:[#allocation76_spill] sm:$0xff] %v4234_v54  ;;  %v4236_v28 = vadd.f32 %v1307_v45, %v1194_v25  ;;  %v4238_v38 = vpop.f32.mrf.mxu1  ;;  %1982 = vmatmul.f32.gmra.mxu0 %v1576_v49  ;;  %v2937_v25 = vld [vmem:[%s3180_s11 + $0x48] sm:$0xff] }
 0x18a   : > { %4834 = vst [vmem:[#allocation78_spill] sm:$0xff] %v4238_v38  ;;  %v1579_v38 = vrot.slane %v2937_v25, 2 }
 0x18b   : > { %4833 = vst [vmem:[#allocation77_spill] sm:$0xff] %v4236_v28  ;;  %v2938_v28 = vld [vmem:[%s3180_s11 + $0x50] sm:$0xff] }
 0x18c   : > { %1374 = vmatmul.f32.gmra.mxu1 %v3626_v7  ;;  %v1580_v54 = vrot.slane %v2938_v28, 2 }
 0x18d   : > { %1759 = vmatmul.f32.gmra.mxu2 %v1571_v20  ;;  %1872 = vmatmul.f32.gmra.mxu3 %v1573_v33 }
 0x18e   : > { %v1310_v56 = vpop.f32.mrf.mxu0  ;;  %v1581_v7 = vsel %vm1558_vm1, %v1579_v38, %v1580_v54 }
 0x190   : > { %v4243_v6 = vpop.f32.mrf.mxu2  ;;  %v1197_v44 = vpop.f32.mrf.mxu3 }
 0x191   : > { %v4245_v3 = vadd.f32 %v1310_v56, %v1197_v44  ;;  %v4247_v45 = vpop.f32.mrf.mxu1  ;;  %1985 = vmatmul.f32.gmra.mxu0 %v1578_v5  ;;  %v1582_v44 = vrot.slane %v3644_v14, 2 }
 0x194   : > { %1377 = vmatmul.f32.gmra.mxu1 %v3641_v13 }
 0x195   : > { %1762 = vmatmul.f32.gmra.mxu2 %v1567_v34  ;;  %1875 = vmatmul.f32.gmra.mxu3 %v1576_v49  ;;  %v1583_v34 = vsel %vm1558_vm1, %v1580_v54, %v1582_v44 }
 0x196   : > { %v1313_v61 = vpop.f32.mrf.mxu0 }
 0x198   : > { %v4253_v20 = vpop.f32.mrf.mxu2  ;;  %v1200_v22 = vpop.f32.mrf.mxu3 }
 0x199   : > { %4835 = vst [vmem:[#allocation79_spill] sm:$0xff] %v4253_v20  ;;  %v4255_v41 = vadd.f32 %v1313_v61, %v1200_v22  ;;  %v4257_v56 = vpop.f32.mrf.mxu1  ;;  %1988 = vmatmul.f32.gmra.mxu0 %v1581_v7  ;;  %v2939_v22 = vld [vmem:[%s3180_s11 + $0x60] sm:$0xff] }
 0x19a   : > { %4837 = vst [vmem:[#allocation81_spill] sm:$0xff] %v4257_v56  ;;  %v1584_v56 = vrot.slane %v2939_v22, 2 }
 0x19b   : > { %4836 = vst [vmem:[#allocation80_spill] sm:$0xff] %v4255_v41  ;;  %v2940_v41 = vld [vmem:[%s3180_s11 + $0x68] sm:$0xff] }
 0x19c   : > { %1380 = vmatmul.f32.gmra.mxu1 %v3658_v24  ;;  %v1585_v20 = vrot.slane %v2940_v41, 2 }
 0x19d   : > { %1765 = vmatmul.f32.gmra.mxu2 %v1573_v33  ;;  %1878 = vmatmul.f32.gmra.mxu3 %v1578_v5 }
 0x19e   : > { %v1316_v13 = vpop.f32.mrf.mxu0  ;;  %v1586_v24 = vsel %vm1558_vm1, %v1584_v56, %v1585_v20 }
 0x1a0   : > { %v4262_v28 = vpop.f32.mrf.mxu2  ;;  %v1203_v38 = vpop.f32.mrf.mxu3 }
 0x1a1   : > { %v4264_v25 = vadd.f32 %v1316_v13, %v1203_v38  ;;  %v4266_v61 = vpop.f32.mrf.mxu1  ;;  %1991 = vmatmul.f32.gmra.mxu0 %v1583_v34  ;;  %v1587_v38 = vrot.slane %v3680_v48, 2 }
 0x1a4   : > { %1383 = vmatmul.f32.gmra.mxu1 %v3677_v35 }
 0x1a5   : > { %1768 = vmatmul.f32.gmra.mxu2 %v1576_v49  ;;  %1881 = vmatmul.f32.gmra.mxu3 %v1581_v7  ;;  %v1588_v49 = vsel %vm1558_vm1, %v1585_v20, %v1587_v38 }
 0x1a6   : > { %v1319_v14 = vpop.f32.mrf.mxu0 }
 0x1a8   : > { %v4272_v33 = vpop.f32.mrf.mxu2  ;;  %v1206_v54 = vpop.f32.mrf.mxu3 }
 0x1a9   : > { %4838 = vst [vmem:[#allocation82_spill] sm:$0xff] %v4272_v33  ;;  %v4274_v44 = vadd.f32 %v1319_v14, %v1206_v54  ;;  %v4276_v13 = vpop.f32.mrf.mxu1  ;;  %1994 = vmatmul.f32.gmra.mxu0 %v1586_v24  ;;  %v2941_v54 = vld [vmem:[%s3180_s11 + $0x78] sm:$0xff] }
 0x1aa   : > { %4840 = vst [vmem:[#allocation84_spill] sm:$0xff] %v4276_v13  ;;  %v1589_v13 = vrot.slane %v2941_v54, 2 }
 0x1ab   : > { %4839 = vst [vmem:[#allocation83_spill] sm:$0xff] %v4274_v44  ;;  %v2942_v44 = vld [vmem:[%s3180_s11 + $0x80] sm:$0xff] }
 0x1ac   : > { %1386 = vmatmul.f32.gmra.mxu1 %v3702_v47  ;;  %v1590_v33 = vrot.slane %v2942_v44, 2 }
 0x1ad   : > { %1771 = vmatmul.f32.gmra.mxu2 %v1578_v5  ;;  %1884 = vmatmul.f32.gmra.mxu3 %v1583_v34 }
 0x1ae   : > { %v1322_v35 = vpop.f32.mrf.mxu0  ;;  %v1591_v47 = vsel %vm1558_vm1, %v1589_v13, %v1590_v33 }
 0x1b0   : > { %v4281_v41 = vpop.f32.mrf.mxu2  ;;  %v1209_v56 = vpop.f32.mrf.mxu3 }
 0x1b1   : > { %v4283_v22 = vadd.f32 %v1322_v35, %v1209_v56  ;;  %v4285_v14 = vpop.f32.mrf.mxu1  ;;  %1997 = vmatmul.f32.gmra.mxu0 %v1588_v49  ;;  %v1592_v56 = vrot.slane %v3728_v19, 2 }
 0x1b4   : > { %1389 = vmatmul.f32.gmra.mxu1 %v3725_v9 }
 0x1b5   : > { %1774 = vmatmul.f32.gmra.mxu2 %v1581_v7  ;;  %1887 = vmatmul.f32.gmra.mxu3 %v1586_v24  ;;  %v1593_v7 = vsel %vm1558_vm1, %v1590_v33, %v1592_v56 }
 0x1b6   : > { %v1325_v48 = vpop.f32.mrf.mxu0 }
 0x1b8   : > { %v4291_v5 = vpop.f32.mrf.mxu2  ;;  %v1212_v20 = vpop.f32.mrf.mxu3 }
 0x1b9   : > { %4841 = vst [vmem:[#allocation85_spill] sm:$0xff] %v4291_v5  ;;  %v4293_v38 = vadd.f32 %v1325_v48, %v1212_v20  ;;  %v4295_v35 = vpop.f32.mrf.mxu1  ;;  %2000 = vmatmul.f32.gmra.mxu0 %v1591_v47  ;;  %v2943_v20 = vld [vmem:[%s3180_s11 + $0x90] sm:$0xff] }
 0x1ba   : > { %4843 = vst [vmem:[#allocation87_spill] sm:$0xff] %v4295_v35  ;;  %v1594_v35 = vrot.slane %v2943_v20, 2 }
 0x1bb   : > { %4842 = vst [vmem:[#allocation86_spill] sm:$0xff] %v4293_v38  ;;  %v2944_v38 = vld [vmem:[%s3180_s11 + $0x98] sm:$0xff] }
 0x1bc   : > { %1392 = vmatmul.f32.gmra.mxu1 %v3750_v31  ;;  %v1595_v5 = vrot.slane %v2944_v38, 2 }
 0x1bd   : > { %1777 = vmatmul.f32.gmra.mxu2 %v1583_v34  ;;  %1890 = vmatmul.f32.gmra.mxu3 %v1588_v49 }
 0x1be   : > { %v1328_v9 = vpop.f32.mrf.mxu0  ;;  %v1596_v31 = vsel %vm1558_vm1, %v1594_v35, %v1595_v5 }
 0x1c0   : > { %v4300_v44 = vpop.f32.mrf.mxu2  ;;  %v1215_v13 = vpop.f32.mrf.mxu3 }
 0x1c1   : > { %v4302_v54 = vadd.f32 %v1328_v9, %v1215_v13  ;;  %v4304_v48 = vpop.f32.mrf.mxu1  ;;  %2003 = vmatmul.f32.gmra.mxu0 %v1593_v7  ;;  %v1597_v13 = vrot.slane %v3776_v57, 2 }
 0x1c4   : > { %1395 = vmatmul.f32.gmra.mxu1 %v3773_v62 }
 0x1c5   : > { %1780 = vmatmul.f32.gmra.mxu2 %v1586_v24  ;;  %1893 = vmatmul.f32.gmra.mxu3 %v1591_v47  ;;  %v1598_v24 = vsel %vm1558_vm1, %v1595_v5, %v1597_v13 }
 0x1c6   : > { %v1331_v19 = vpop.f32.mrf.mxu0 }
 0x1c8   : > { %v4310_v34 = vpop.f32.mrf.mxu2  ;;  %v1218_v33 = vpop.f32.mrf.mxu3 }
 0x1c9   : > { %4844 = vst [vmem:[#allocation88_spill] sm:$0xff] %v4310_v34  ;;  %v4312_v56 = vadd.f32 %v1331_v19, %v1218_v33  ;;  %v4314_v9 = vpop.f32.mrf.mxu1  ;;  %2006 = vmatmul.f32.gmra.mxu0 %v1596_v31  ;;  %v2945_v33 = vld [vmem:[%s3180_s11 + $0xa8] sm:$0xff] }
 0x1ca   : > { %4846 = vst [vmem:[#allocation90_spill] sm:$0xff] %v4314_v9  ;;  %v1599_v9 = vrot.slane %v2945_v33, 2 }
 0x1cb   : > { %4845 = vst [vmem:[#allocation89_spill] sm:$0xff] %v4312_v56  ;;  %v2946_v56 = vld [vmem:[%s3180_s11 + $0xb0] sm:$0xff] }
 0x1cc   : > { %1398 = vmatmul.f32.gmra.mxu1 %v3798_v53  ;;  %v1600_v34 = vrot.slane %v2946_v56, 2 }
 0x1cd   : > { %1783 = vmatmul.f32.gmra.mxu2 %v1588_v49  ;;  %1896 = vmatmul.f32.gmra.mxu3 %v1593_v7 }
 0x1ce   : > { %v1334_v62 = vpop.f32.mrf.mxu0  ;;  %v1601_v53 = vsel %vm1558_vm1, %v1599_v9, %v1600_v34 }
 0x1d0   : > { %v4319_v38 = vpop.f32.mrf.mxu2  ;;  %v1221_v35 = vpop.f32.mrf.mxu3 }
 0x1d1   : > { %v4321_v20 = vadd.f32 %v1334_v62, %v1221_v35  ;;  %v4323_v19 = vpop.f32.mrf.mxu1  ;;  %2009 = vmatmul.f32.gmra.mxu0 %v1598_v24  ;;  %v1602_v35 = vrot.slane %v3824_v17, 2 }
 0x1d4   : > { %1401 = vmatmul.f32.gmra.mxu1 %v3821_v29 }
 0x1d5   : > { %1786 = vmatmul.f32.gmra.mxu2 %v1591_v47  ;;  %1899 = vmatmul.f32.gmra.mxu3 %v1596_v31  ;;  %v1603_v47 = vsel %vm1558_vm1, %v1600_v34, %v1602_v35 }
 0x1d6   : > { %v1337_v57 = vpop.f32.mrf.mxu0 }
 0x1d8   : > { %v4329_v49 = vpop.f32.mrf.mxu2  ;;  %v1224_v5 = vpop.f32.mrf.mxu3 }
 0x1d9   : > { %4847 = vst [vmem:[#allocation91_spill] sm:$0xff] %v4329_v49  ;;  %v4331_v13 = vadd.f32 %v1337_v57, %v1224_v5  ;;  %v4333_v62 = vpop.f32.mrf.mxu1  ;;  %2012 = vmatmul.f32.gmra.mxu0 %v1601_v53  ;;  %v2947_v5 = vld [vmem:[%s3180_s11 + $0xc0] sm:$0xff] }
 0x1da   : > { %4849 = vst [vmem:[#allocation93_spill] sm:$0xff] %v4333_v62  ;;  %v1604_v62 = vrot.slane %v2947_v5, 2 }
 0x1db   : > { %4848 = vst [vmem:[#allocation92_spill] sm:$0xff] %v4331_v13  ;;  %v2948_v13 = vld [vmem:[%s3180_s11 + $0xc8] sm:$0xff] }
 0x1dc   : > { %1404 = vmatmul.f32.gmra.mxu1 %v3846_v23  ;;  %v1605_v49 = vrot.slane %v2948_v13, 2 }
 0x1dd   : > { %1789 = vmatmul.f32.gmra.mxu2 %v1593_v7  ;;  %1902 = vmatmul.f32.gmra.mxu3 %v1598_v24 }
 0x1de   : > { %v1340_v29 = vpop.f32.mrf.mxu0  ;;  %v1606_v23 = vsel %vm1558_vm1, %v1604_v62, %v1605_v49 }
 0x1e0   : > { %v4338_v56 = vpop.f32.mrf.mxu2  ;;  %v1227_v9 = vpop.f32.mrf.mxu3 }
 0x1e1   : > { %v4340_v33 = vadd.f32 %v1340_v29, %v1227_v9  ;;  %v4342_v57 = vpop.f32.mrf.mxu1  ;;  %2015 = vmatmul.f32.gmra.mxu0 %v1603_v47  ;;  %v1607_v9 = vrot.slane %v3869_v16, 2 }
 0x1e4   : > { %1407 = vmatmul.f32.gmra.mxu1 %v3865_v11 }
 0x1e5   : > { %1792 = vmatmul.f32.gmra.mxu2 %v1596_v31  ;;  %1905 = vmatmul.f32.gmra.mxu3 %v1601_v53  ;;  %v4357_v31 = vsel %vm1558_vm1, %v1605_v49, %v1607_v9 }
 0x1e6   : > { %v1343_v17 = vpop.f32.mrf.mxu0 }
 0x1e8   : > { %v4348_v7 = vpop.f32.mrf.mxu2  ;;  %v1230_v34 = vpop.f32.mrf.mxu3 }
 0x1e9   : > { %v4350_v35 = vadd.f32 %v1343_v17, %v1230_v34  ;;  %v4352_v29 = vpop.f32.mrf.mxu1  ;;  %2018 = vmatmul.f32.gmra.mxu0 %v1606_v23 }
 0x1ea   : > { %4851 = vst [vmem:[#allocation95_spill] sm:$0xff] %v4352_v29  ;;  %v2949_v29 = vld [vmem:[%s3180_s11 + $0xd8] sm:$0xff] }
 0x1eb   : > { %4850 = vst [vmem:[#allocation94_spill] sm:$0xff] %v4350_v35  ;;  %v1609_v16 = vrot.slane %v2949_v29, 2  ;;  %v2950_v35 = vld [vmem:[%s3180_s11 + $0xe0] sm:$0xff] }
 0x1ec   : > { %1410 = vmatmul.f32.gmra.mxu1 %v3887_v63  ;;  %v1610_v63 = vrot.slane %v2950_v35, 2  ;;  %v1612_v35 = vrot.slane %v3911_v32, 2 }
 0x1ed   : > { %1795 = vmatmul.f32.gmra.mxu2 %v1598_v24  ;;  %1908 = vmatmul.f32.gmra.mxu3 %v1603_v47 }
 0x1ee   : > { %v1346_v11 = vpop.f32.mrf.mxu0  ;;  %v4370_v9 = vsel %vm1558_vm1, %v1609_v16, %v1610_v63 }
 0x1f0   : > { %v4359_v13 = vpop.f32.mrf.mxu2  ;;  %v1233_v62 = vpop.f32.mrf.mxu3 }
 0x1f1   : > { %4852 = vst [vmem:[#allocation96_spill] sm:$0xff] %v4359_v13  ;;  %v4361_v5 = vadd.f32 %v1346_v11, %v1233_v62  ;;  %v1366_v17 = vpop.f32.mrf.mxu1  ;;  %2021 = vmatmul.f32.gmra.mxu0 %v4357_v31 }
 0x1f2   : > { %v1367_v34 = vadd.f32 %v1366_v17, %v3873_v15  ;;  %v4379_v17 = vsel %vm1558_vm1, %v1610_v63, %v1612_v35  ;;  %v2952_v63 = vld [vmem:[%s3180_s11 + $0xf8] sm:$0xff] }
 0x1f3   : > { %4853 = vst [vmem:[#allocation97_spill] sm:$0xff] %v4361_v5 }
 0x1f4   : > { %v1494_v24 = vadd.f32 %v1367_v34, %v3871_v1  ;;  %1413 = vmatmul.f32.gmra.mxu1 %v3907_v39  ;;  %v2951_v34 = vld [vmem:[%s3180_s11 + $0xf0] sm:$0xff] }
 0x1f5   : > { %1798 = vmatmul.f32.gmra.mxu2 %v1601_v53  ;;  %1911 = vmatmul.f32.gmra.mxu3 %v1606_v23  ;;  %v1614_v16 = vrot.slane %v2951_v34, 2 }
 0x1f6   : > { %v1977_v49 = vpop.f32.mrf.mxu0 }
 0x1f8   : > { %v1751_v11 = vpop.f32.mrf.mxu2  ;;  %v1864_v62 = vpop.f32.mrf.mxu3 }
 0x1f9   : > { %v1865_v5 = vadd.f32 %v1864_v62, %v1751_v11  ;;  %v1369_v13 = vpop.f32.mrf.mxu1  ;;  %2024 = vmatmul.f32.gmra.mxu0 %v4370_v9  ;;  %v4854_v11 = vld [vmem:[#allocation30_spill] sm:$0xff] }
 0x1fa   : > { %v1370_v15 = vadd.f32 %v1369_v13, %v3892_v2 }
 0x1fb   : > { %v1978_v1 = vadd.f32 %v1977_v49, %v1865_v5 }
 0x1fc   : > { %v1495_v39 = vadd.f32 %v1370_v15, %v3890_v8  ;;  %1416 = vmatmul.f32.gmra.mxu1 %v3929_v46 }
 0x1fd   : > { %v2105_v53 = vadd.f32 %v1978_v1, %v1494_v24  ;;  %1801 = vmatmul.f32.gmra.mxu2 %v1603_v47  ;;  %1914 = vmatmul.f32.gmra.mxu3 %v4357_v31  ;;  %v1615_v24 = vrot.slane %v2952_v63, 2 }
 0x1fe   : > { %v1980_v29 = vpop.f32.mrf.mxu0 }
 0x1ff   : > { %v2234_v8 = vrot.slane %v2105_v53, 7  ;;  %v4397_v1 = vsel %vm1558_vm1, %v1614_v16, %v1615_v24  ;;  %v1617_v16 = vrot.slane %v3953_v4, 2 }
 0x200   : > { %v1754_v2 = vpop.f32.mrf.mxu2  ;;  %v1867_v32 = vpop.f32.mrf.mxu3 }
 0x201   : > { %v2330_v46 = vsel %vm2233_vm2, 0.0, %v2234_v8  ;;  %v1868_v47 = vadd.f32 %v1867_v32, %v1754_v2  ;;  %v1372_v13 = vpop.f32.mrf.mxu1  ;;  %2027 = vmatmul.f32.gmra.mxu0 %v4379_v17 }
 0x202   : > { %2362 = vst [vmem:[%s4385_s25] sm:$0xff] %v2330_v46  ;;  %v1373_v5 = vadd.f32 %v1372_v13, %v3915_v58  ;;  %v2447_v58 = vmul.f32 %v2105_v53, %v2105_v53 }
 0x203   : > { %v1981_v49 = vadd.f32 %v1980_v29, %v1868_v47 }
 0x204   : > { %v1496_v62 = vadd.f32 %v1373_v5, %v4854_v11  ;;  %1419 = vmatmul.f32.gmra.mxu1 %v3949_v27 }
 0x205   : > { %v2106_v15 = vadd.f32 %v1981_v49, %v1495_v39  ;;  %1804 = vmatmul.f32.gmra.mxu2 %v1606_v23  ;;  %1917 = vmatmul.f32.gmra.mxu3 %v4370_v9 }
 0x206   : > { %v1983_v35 = vpop.f32.mrf.mxu0 }
 0x207   : > { %v2235_v2 = vrot.slane %v2106_v15, 7  ;;  %v2410_v32 = vadd.f32 %v2106_v15, %v2105_v53  ;;  %v2448_v46 = vmul.f32 %v2106_v15, %v2106_v15  ;;  %v4855_v53 = vld [vmem:[#allocation31_spill] sm:$0xff]  ;;  %v4411_v15 = vsel %vm1558_vm1, %v1615_v24, %v1617_v16 }
 0x208   : > { %v1757_v13 = vpop.f32.mrf.mxu2  ;;  %v1870_v29 = vpop.f32.mrf.mxu3  ;;  %v1620_v24 = vrot.slane %v4010_v30, 2 }
 0x209   : > { %v2236_v47 = vsel %vm2233_vm2, %v2234_v8, %v2235_v2  ;;  %v2346_v27 = vsel %vm2233_vm2, %v2235_v2, 0.0  ;;  %v2479_v39 = vadd.f32 %v2448_v46, %v2447_v58  ;;  %v1871_v23 = vadd.f32 %v1870_v29, %v1757_v13  ;;  %v1375_v5 = vpop.f32.mrf.mxu1  ;;  %2030 = vmatmul.f32.gmra.mxu0 %v4397_v1 }
 0x20a   : > { %2363 = vst [vmem:[%s4385_s25 + $0x8] sm:$0xff] %v2236_v47  ;;  %v1376_v34 = vadd.f32 %v1375_v5, %v3934_v42 }
 0x20b   : > { %2364 = vst [vmem:[%s4385_s25 + $0x10] sm:$0x3] %v2346_v27  ;;  %v1984_v63 = vadd.f32 %v1983_v35, %v1871_v23  ;;  %v4857_v23 = vld [vmem:[#allocation32_spill] sm:$0xff] }
 0x20c   : > { %v1497_v49 = vadd.f32 %v1376_v34, %v4855_v53  ;;  %1422 = vmatmul.f32.gmra.mxu1 %v3971_v26 }
 0x20d   : > { %v2107_v8 = vadd.f32 %v1984_v63, %v1496_v62  ;;  %1807 = vmatmul.f32.gmra.mxu2 %v4357_v31  ;;  %1920 = vmatmul.f32.gmra.mxu3 %v4379_v17  ;;  %v4856_v62 = vld [vmem:[#allocation35_spill] sm:$0xff] }
 0x20e   : > { %v1986_v11 = vpop.f32.mrf.mxu0  ;;  %v1619_v47 = vrot.slane %v4856_v62, 2 }
 0x20f   : > { %v2237_v58 = vrot.slane %v2107_v8, 7  ;;  %v2411_v42 = vadd.f32 %v2410_v32, %v2107_v8  ;;  %v2449_v2 = vmul.f32 %v2107_v8, %v2107_v8 }
 0x210   : > { %v1760_v4 = vpop.f32.mrf.mxu2  ;;  %v1873_v46 = vpop.f32.mrf.mxu3  ;;  %v4424_v34 = vsel %vm1558_vm1, %v1619_v47, %v1620_v24 }
 0x211   : > { %v2331_v35 = vsel %vm2233_vm2, 0.0, %v2237_v58  ;;  %v2480_v13 = vadd.f32 %v2479_v39, %v2449_v2  ;;  %v1874_v29 = vadd.f32 %v1873_v46, %v1760_v4  ;;  %v1378_v26 = vpop.f32.mrf.mxu1  ;;  %2033 = vmatmul.f32.gmra.mxu0 %v4411_v15  ;;  %v4859_v46 = vld [vmem:[#allocation36_spill] sm:$0xff] }
 0x212   : > { %2365 = vst [vmem:[%s4385_s25 + $0x18] sm:$0xff] %v2331_v35  ;;  %v1379_v31 = vadd.f32 %v1378_v26, %v3957_v12  ;;  %v1622_v35 = vrot.slane %v4859_v46, 2 }
 0x213   : > { %v1987_v27 = vadd.f32 %v1986_v11, %v1874_v29 }
 0x214   : > { %v1498_v32 = vadd.f32 %v1379_v31, %v4857_v23  ;;  %1425 = vmatmul.f32.gmra.mxu1 %v3994_v55  ;;  %v4438_v31 = vsel %vm1558_vm1, %v1620_v24, %v1622_v35 }
 0x215   : > { %v2108_v5 = vadd.f32 %v1987_v27, %v1497_v49  ;;  %1810 = vmatmul.f32.gmra.mxu2 %v4370_v9  ;;  %1923 = vmatmul.f32.gmra.mxu3 %v4397_v1  ;;  %v4858_v9 = vld [vmem:[#allocation34_spill] sm:$0xff] }
 0x216   : > { %v1989_v39 = vpop.f32.mrf.mxu0 }
 0x217   : > { %v2238_v12 = vrot.slane %v2108_v5, 7  ;;  %v2412_v16 = vadd.f32 %v2411_v42, %v2108_v5  ;;  %v2450_v63 = vmul.f32 %v2108_v5, %v2108_v5  ;;  %v4860_v42 = vld [vmem:[#allocation33_spill] sm:$0xff] }
 0x218   : > { %v1763_v30 = vpop.f32.mrf.mxu2  ;;  %v1876_v53 = vpop.f32.mrf.mxu3 }
 0x219   : > { %v2239_v8 = vsel %vm2233_vm2, %v2237_v58, %v2238_v12  ;;  %v2347_v55 = vsel %vm2233_vm2, %v2238_v12, 0.0  ;;  %v2481_v49 = vadd.f32 %v2480_v13, %v2450_v63  ;;  %v1877_v11 = vadd.f32 %v1876_v53, %v1763_v30  ;;  %v1381_v2 = vpop.f32.mrf.mxu1  ;;  %2036 = vmatmul.f32.gmra.mxu0 %v4424_v34  ;;  %v2953_v53 = vld [vmem:[%s3180_s11 + $0x128] sm:$0xff] }
 0x21a   : > { %2366 = vst [vmem:[%s4385_s25 + $0x20] sm:$0xff] %v2239_v8  ;;  %v1382_v4 = vadd.f32 %v1381_v2, %v4858_v9  ;;  %v1624_v30 = vrot.slane %v4032_v37, 2  ;;  %v1625_v24 = vrot.slane %v2953_v53, 2 }
 0x21b   : > { %2367 = vst [vmem:[%s4385_s25 + $0x28] sm:$0x3] %v2347_v55  ;;  %v1990_v29 = vadd.f32 %v1989_v39, %v1877_v11  ;;  %v4862_v55 = vld [vmem:[#allocation37_spill] sm:$0xff] }
 0x21c   : > { %v1499_v26 = vadd.f32 %v1382_v4, %v4860_v42  ;;  %1428 = vmatmul.f32.gmra.mxu1 %v4019_v36  ;;  %v4451_v2 = vsel %vm1558_vm1, %v1624_v30, %v1625_v24 }
 0x21d   : > { %v2109_v58 = vadd.f32 %v1990_v29, %v1498_v32  ;;  %1813 = vmatmul.f32.gmra.mxu2 %v4379_v17  ;;  %1926 = vmatmul.f32.gmra.mxu3 %v4411_v15  ;;  %v4861_v17 = vld [vmem:[#allocation38_spill] sm:$0xff] }
 0x21e   : > { %v1992_v13 = vpop.f32.mrf.mxu0 }
 0x21f   : > { %v2240_v62 = vrot.slane %v2109_v58, 7  ;;  %v2413_v47 = vadd.f32 %v2412_v16, %v2109_v58  ;;  %v2451_v27 = vmul.f32 %v2109_v58, %v2109_v58 }
 0x220   : > { %v1766_v23 = vpop.f32.mrf.mxu2  ;;  %v1879_v5 = vpop.f32.mrf.mxu3 }
 0x221   : > { %v2332_v39 = vsel %vm2233_vm2, 0.0, %v2240_v62  ;;  %v2482_v12 = vadd.f32 %v2481_v49, %v2451_v27  ;;  %v1880_v36 = vadd.f32 %v1879_v5, %v1766_v23  ;;  %v1384_v63 = vpop.f32.mrf.mxu1  ;;  %2039 = vmatmul.f32.gmra.mxu0 %v4438_v31  ;;  %v4864_v5 = vld [vmem:[#allocation44_spill] sm:$0xff] }
 0x222   : > { %2368 = vst [vmem:[%s4385_s25 + $0x30] sm:$0xff] %v2332_v39  ;;  %v1385_v32 = vadd.f32 %v1384_v63, %v4861_v17  ;;  %v4865_v63 = vld [vmem:[#allocation6_spill] sm:$0xff]  ;;  %v4866_v17 = vld [vmem:[#allocation40_spill] sm:$0xff] }
 0x223   : > { %v1993_v8 = vadd.f32 %v1992_v13, %v1880_v36  ;;  %v1627_v13 = vrot.slane %v4047_v10, 2 }
 0x224   : > { %v1500_v16 = vadd.f32 %v1385_v32, %v4862_v55  ;;  %1431 = vmatmul.f32.gmra.mxu1 %v4044_v51  ;;  %v677_v32 = vadd.f32 %v4866_v17, %v4865_v63 }
 0x225   : > { %v2110_v11 = vadd.f32 %v1993_v8, %v1499_v26  ;;  %1816 = vmatmul.f32.gmra.mxu2 %v4397_v1  ;;  %1929 = vmatmul.f32.gmra.mxu3 %v4424_v34 }
 0x226   : > { %v1995_v49 = vpop.f32.mrf.mxu0 }
 0x227   : > { %v2241_v9 = vrot.slane %v2110_v11, 7  ;;  %v2414_v37 = vadd.f32 %v2413_v47, %v2110_v11  ;;  %v2452_v4 = vmul.f32 %v2110_v11, %v2110_v11  ;;  %v4863_v47 = vld [vmem:[#allocation39_spill] sm:$0xff]  ;;  %v4867_v11 = vld [vmem:[#allocation41_spill] sm:$0xff] }
 0x228   : > { %v1769_v46 = vpop.f32.mrf.mxu2  ;;  %v1882_v35 = vpop.f32.mrf.mxu3 }
 0x229   : > { %v2242_v29 = vsel %vm2233_vm2, %v2240_v62, %v2241_v9  ;;  %v2348_v51 = vsel %vm2233_vm2, %v2241_v9, 0.0  ;;  %v2483_v42 = vadd.f32 %v2482_v12, %v2452_v4  ;;  %v1883_v26 = vadd.f32 %v1882_v35, %v1769_v46  ;;  %v1387_v58 = vpop.f32.mrf.mxu1  ;;  %2042 = vmatmul.f32.gmra.mxu0 %v4451_v2  ;;  %v2954_v4 = vld [vmem:[%s3180_s11 + $0x138] sm:$0xff]  ;;  %v2955_v46 = vld [vmem:[%s3180_s11 + $0x140] sm:$0xff] }
 0x22a   : > { %2369 = vst [vmem:[%s4385_s25 + $0x38] sm:$0xff] %v2242_v29  ;;  %v1388_v1 = vadd.f32 %v1387_v58, %v4024_v52  ;;  %v4465_v12 = vsel %vm1558_vm1, %v1625_v24, %v1627_v13  ;;  %v4868_v24 = vld [vmem:[#allocation42_spill] sm:$0xff]  ;;  %v1630_v35 = vrot.slane %v2955_v46, 2 }
 0x22b   : > { %2370 = vst [vmem:[%s4385_s25 + $0x40] sm:$0x3] %v2348_v51  ;;  %v1996_v27 = vadd.f32 %v1995_v49, %v1883_v26  ;;  %v790_v49 = vadd.f32 %v4867_v11, %v677_v32  ;;  %v4869_v26 = vld [vmem:[#allocation48_spill] sm:$0xff] }
 0x22c   : > { %v1501_v23 = vadd.f32 %v1388_v1, %v4863_v47  ;;  %1434 = vmatmul.f32.gmra.mxu1 %v4864_v5  ;;  %v4870_v5 = vld [vmem:[#allocation9_spill] sm:$0xff] }
 0x22d   : > { %v2111_v39 = vadd.f32 %v1996_v27, %v1500_v16  ;;  %1819 = vmatmul.f32.gmra.mxu2 %v4411_v15  ;;  %1932 = vmatmul.f32.gmra.mxu3 %v4438_v31 }
 0x22e   : > { %v1998_v62 = vpop.f32.mrf.mxu0 }
 0x22f   : > { %v2243_v52 = vrot.slane %v2111_v39, 7  ;;  %v2415_v10 = vadd.f32 %v2414_v37, %v2111_v39  ;;  %v2453_v36 = vmul.f32 %v2111_v39, %v2111_v39  ;;  %v1629_v37 = vrot.slane %v2954_v4, 2  ;;  %v4871_v39 = vld [vmem:[#allocation43_spill] sm:$0xff] }
 0x230   : > { %v1772_v30 = vpop.f32.mrf.mxu2  ;;  %v1885_v53 = vpop.f32.mrf.mxu3 }
 0x231   : > { %v2333_v8 = vsel %vm2233_vm2, 0.0, %v2243_v52  ;;  %v2484_v15 = vadd.f32 %v2483_v42, %v2453_v36  ;;  %v1886_v55 = vadd.f32 %v1885_v53, %v1772_v30  ;;  %v1390_v16 = vpop.f32.mrf.mxu1  ;;  %2045 = vmatmul.f32.gmra.mxu0 %v4465_v12  ;;  %v4480_v1 = vsel %vm1558_vm1, %v1629_v37, %v1630_v35  ;;  %v4872_v53 = vld [vmem:[#allocation45_spill] sm:$0xff] }
 0x232   : > { %2371 = vst [vmem:[%s4385_s25 + $0x48] sm:$0xff] %v2333_v8  ;;  %v1391_v9 = vadd.f32 %v1390_v16, %v4868_v24  ;;  %v4874_v16 = vld [vmem:[#allocation49_spill] sm:$0xff] }
 0x233   : > { %v1999_v29 = vadd.f32 %v1998_v62, %v1886_v55  ;;  %v680_v62 = vadd.f32 %v4871_v39, %v4870_v5  ;;  %v4873_v55 = vld [vmem:[#allocation46_spill] sm:$0xff]  ;;  %v1632_v11 = vrot.slane %v4874_v16, 2 }
 0x234   : > { %v1502_v51 = vadd.f32 %v1391_v9, %v790_v49  ;;  %1437 = vmatmul.f32.gmra.mxu1 %v4869_v26  ;;  %v4875_v9 = vld [vmem:[#allocation53_spill] sm:$0xff]  ;;  %v4876_v26 = vld [vmem:[#allocation12_spill] sm:$0xff] }
 0x235   : > { %v2112_v58 = vadd.f32 %v1999_v29, %v1501_v23  ;;  %1822 = vmatmul.f32.gmra.mxu2 %v4424_v34  ;;  %1935 = vmatmul.f32.gmra.mxu3 %v4451_v2  ;;  %v793_v8 = vadd.f32 %v4872_v53, %v680_v62  ;;  %v4496_v4 = vsel %vm1558_vm1, %v1630_v35, %v1632_v11  ;;  %v4878_v62 = vld [vmem:[#allocation50_spill] sm:$0xff]  ;;  %v4879_v35 = vld [vmem:[#allocation51_spill] sm:$0xff] }
 0x236   : > { %v2001_v42 = vpop.f32.mrf.mxu0 }
 0x237   : > { %v2244_v13 = vrot.slane %v2112_v58, 7  ;;  %v2416_v27 = vadd.f32 %v2415_v10, %v2112_v58  ;;  %v2454_v47 = vmul.f32 %v2112_v58, %v2112_v58  ;;  %v4877_v58 = vld [vmem:[#allocation47_spill] sm:$0xff] }
 0x238   : > { %v1775_v36 = vpop.f32.mrf.mxu2  ;;  %v1888_v63 = vpop.f32.mrf.mxu3 }
 0x239   : > { %v2245_v23 = vsel %vm2233_vm2, %v2243_v52, %v2244_v13  ;;  %v2349_v34 = vsel %vm2233_vm2, %v2244_v13, 0.0  ;;  %v2485_v17 = vadd.f32 %v2484_v15, %v2454_v47  ;;  %v1889_v32 = vadd.f32 %v1888_v63, %v1775_v36  ;;  %v1393_v30 = vpop.f32.mrf.mxu1  ;;  %2048 = vmatmul.f32.gmra.mxu0 %v4480_v1 }
 0x23a   : > { %2372 = vst [vmem:[%s4385_s25 + $0x50] sm:$0xff] %v2245_v23  ;;  %v1394_v10 = vadd.f32 %v1393_v30, %v4873_v55  ;;  %v2956_v23 = vld [vmem:[%s3180_s11 + $0x150] sm:$0xff] }
 0x23b   : > { %2373 = vst [vmem:[%s4385_s25 + $0x58] sm:$0x3] %v2349_v34  ;;  %v2002_v49 = vadd.f32 %v2001_v42, %v1889_v32  ;;  %v683_v42 = vadd.f32 %v4877_v58, %v4876_v26  ;;  %v2957_v34 = vld [vmem:[%s3180_s11 + $0x158] sm:$0xff] }
 0x23c   : > { %v1503_v24 = vadd.f32 %v1394_v10, %v793_v8  ;;  %1440 = vmatmul.f32.gmra.mxu1 %v4875_v9  ;;  %v1635_v32 = vrot.slane %v2957_v34, 2  ;;  %v4880_v8 = vld [vmem:[#allocation57_spill] sm:$0xff]  ;;  %v4881_v9 = vld [vmem:[#allocation15_spill] sm:$0xff] }
 0x23d   : > { %v2113_v52 = vadd.f32 %v2002_v49, %v1502_v51  ;;  %1825 = vmatmul.f32.gmra.mxu2 %v4438_v31  ;;  %1938 = vmatmul.f32.gmra.mxu3 %v4465_v12  ;;  %v796_v36 = vadd.f32 %v4878_v62, %v683_v42 }
 0x23e   : > { %v2004_v15 = vpop.f32.mrf.mxu0 }
 0x23f   : > { %v2246_v37 = vrot.slane %v2113_v52, 7  ;;  %v2417_v46 = vadd.f32 %v2416_v27, %v2113_v52  ;;  %v2455_v29 = vmul.f32 %v2113_v52, %v2113_v52  ;;  %v1634_v27 = vrot.slane %v2956_v23, 2  ;;  %v4882_v52 = vld [vmem:[#allocation52_spill] sm:$0xff] }
 0x240   : > { %v1778_v13 = vpop.f32.mrf.mxu2  ;;  %v1891_v47 = vpop.f32.mrf.mxu3 }
 0x241   : > { %v2334_v51 = vsel %vm2233_vm2, 0.0, %v2246_v37  ;;  %v2486_v31 = vadd.f32 %v2485_v17, %v2455_v29  ;;  %v1892_v5 = vadd.f32 %v1891_v47, %v1778_v13  ;;  %v1396_v39 = vpop.f32.mrf.mxu1  ;;  %2051 = vmatmul.f32.gmra.mxu0 %v4496_v4  ;;  %v4511_v10 = vsel %vm1558_vm1, %v1634_v27, %v1635_v32  ;;  %v4883_v47 = vld [vmem:[#allocation54_spill] sm:$0xff] }
 0x242   : > { %2374 = vst [vmem:[%s4385_s25 + $0x60] sm:$0xff] %v2334_v51  ;;  %v1397_v63 = vadd.f32 %v1396_v39, %v4879_v35  ;;  %v4885_v39 = vld [vmem:[#allocation58_spill] sm:$0xff] }
 0x243   : > { %v2005_v30 = vadd.f32 %v2004_v15, %v1892_v5  ;;  %v686_v15 = vadd.f32 %v4882_v52, %v4881_v9  ;;  %v4884_v5 = vld [vmem:[#allocation55_spill] sm:$0xff]  ;;  %v1637_v62 = vrot.slane %v4885_v39, 2 }
 0x244   : > { %v1504_v53 = vadd.f32 %v1397_v63, %v796_v36  ;;  %1443 = vmatmul.f32.gmra.mxu1 %v4880_v8  ;;  %v4886_v63 = vld [vmem:[#allocation63_spill] sm:$0xff]  ;;  %v4887_v8 = vld [vmem:[#allocation18_spill] sm:$0xff] }
 0x245   : > { %v2114_v55 = vadd.f32 %v2005_v30, %v1503_v24  ;;  %1828 = vmatmul.f32.gmra.mxu2 %v4451_v2  ;;  %1941 = vmatmul.f32.gmra.mxu3 %v4480_v1  ;;  %v799_v51 = vadd.f32 %v4883_v47, %v686_v15  ;;  %v4527_v23 = vsel %vm1558_vm1, %v1635_v32, %v1637_v62  ;;  %v4889_v15 = vld [vmem:[#allocation59_spill] sm:$0xff]  ;;  %v4890_v32 = vld [vmem:[#allocation60_spill] sm:$0xff] }
 0x246   : > { %v2007_v17 = vpop.f32.mrf.mxu0 }
 0x247   : > { %v2247_v16 = vrot.slane %v2114_v55, 7  ;;  %v2418_v11 = vadd.f32 %v2417_v46, %v2114_v55  ;;  %v2456_v49 = vmul.f32 %v2114_v55, %v2114_v55  ;;  %v4888_v55 = vld [vmem:[#allocation56_spill] sm:$0xff] }
 0x248   : > { %v1781_v29 = vpop.f32.mrf.mxu2  ;;  %v1894_v26 = vpop.f32.mrf.mxu3 }
 0x249   : > { %v2248_v24 = vsel %vm2233_vm2, %v2246_v37, %v2247_v16  ;;  %v2350_v2 = vsel %vm2233_vm2, %v2247_v16, 0.0  ;;  %v2487_v58 = vadd.f32 %v2486_v31, %v2456_v49  ;;  %v1895_v42 = vadd.f32 %v1894_v26, %v1781_v29  ;;  %v1399_v13 = vpop.f32.mrf.mxu1  ;;  %2054 = vmatmul.f32.gmra.mxu0 %v4511_v10 }
 0x24a   : > { %2375 = vst [vmem:[%s4385_s25 + $0x68] sm:$0xff] %v2248_v24  ;;  %v1400_v46 = vadd.f32 %v1399_v13, %v4884_v5  ;;  %v2958_v24 = vld [vmem:[%s3180_s11 + $0x168] sm:$0xff]  ;;  %s2715_s11 = sshll.u32 %s347_s27, 1 }
 0x24b   : > { %2376 = vst [vmem:[%s4385_s25 + $0x70] sm:$0x3] %v2350_v2  ;;  %v2008_v36 = vadd.f32 %v2007_v17, %v1895_v42  ;;  %v689_v17 = vadd.f32 %v4888_v55, %v4887_v8  ;;  %v4891_v2 = vld [vmem:[#allocation62_spill] sm:$0xff]  ;;  %s349_s9 = scalar_lea.vmem [#allocation3], %s2715_s11 }
 0x24c   : > { %v1505_v35 = vadd.f32 %v1400_v46, %v799_v51  ;;  %1446 = vmatmul.f32.gmra.mxu1 %v4886_v63  ;;  %v1640_v42 = vrot.slane %v4891_v2, 2  ;;  %v4892_v51 = vld [vmem:[#allocation68_spill] sm:$0xff]  ;;  %v4893_v63 = vld [vmem:[#allocation21_spill] sm:$0xff]  ;;  %v459_v2 = vld [vmem:[%s4151_s16 + $0x10] sm:$0x3]  ;;  %s2546_s13 = sshll.u32 %s349_s9, 4  ;;  %s2547_s13 = int_to_ptr.vmem [resolvable:$true] %s2546_s13 }
 0x24d   : > { %v2115_v37 = vadd.f32 %v2008_v36, %v1504_v53  ;;  %1831 = vmatmul.f32.gmra.mxu2 %v4465_v12  ;;  %1944 = vmatmul.f32.gmra.mxu3 %v4496_v4  ;;  %v802_v29 = vadd.f32 %v4889_v15, %v689_v17 }
 0x24e   : > { %v2010_v31 = vpop.f32.mrf.mxu0 }
 0x24f   : > { %v2249_v27 = vrot.slane %v2115_v37, 7  ;;  %v2419_v34 = vadd.f32 %v2418_v11, %v2115_v37  ;;  %v2457_v30 = vmul.f32 %v2115_v37, %v2115_v37  ;;  %v1639_v11 = vrot.slane %v2958_v24, 2  ;;  %v4894_v37 = vld [vmem:[#allocation61_spill] sm:$0xff] }
 0x250   : > { %v1784_v16 = vpop.f32.mrf.mxu2  ;;  %v1897_v49 = vpop.f32.mrf.mxu3  ;;  %v4899_v24 = vld [vmem:[#allocation73_spill] sm:$0xff] }
 0x251   : > { %v2335_v53 = vsel %vm2233_vm2, 0.0, %v2249_v27  ;;  %v2488_v9 = vadd.f32 %v2487_v58, %v2457_v30  ;;  %v1898_v12 = vadd.f32 %v1897_v49, %v1784_v16  ;;  %v1402_v52 = vpop.f32.mrf.mxu1  ;;  %2057 = vmatmul.f32.gmra.mxu0 %v4527_v23  ;;  %v1641_v46 = vsel %vm1558_vm1, %v1639_v11, %v1640_v42  ;;  %v4895_v49 = vld [vmem:[#allocation64_spill] sm:$0xff] }
 0x252   : > { %2377 = vst [vmem:[%s4385_s25 + $0x78] sm:$0xff] %v2335_v53  ;;  %v1403_v26 = vadd.f32 %v1402_v52, %v4890_v32  ;;  %v692_v30 = vadd.f32 %v4894_v37, %v4893_v63  ;;  %v4897_v52 = vld [vmem:[#allocation69_spill] sm:$0xff]  ;;  %v1034_v11 = vrot.slane %v4899_v24, 1  ;;  %v4901_v63 = vld [vmem:[#allocation66_spill] sm:$0xff] }
 0x253   : > { %v2011_v13 = vadd.f32 %v2010_v31, %v1898_v12  ;;  %v4896_v12 = vld [vmem:[#allocation65_spill] sm:$0xff]  ;;  %v1642_v15 = vrot.slane %v4897_v52, 2 }
 0x254   : > { %v1506_v47 = vadd.f32 %v1403_v26, %v802_v29  ;;  %1449 = vmatmul.f32.gmra.mxu1 %v4892_v51  ;;  %v805_v53 = vadd.f32 %v4895_v49, %v692_v30 }
 0x255   : > { %v2116_v5 = vadd.f32 %v2011_v13, %v1505_v35  ;;  %1834 = vmatmul.f32.gmra.mxu2 %v4480_v1  ;;  %1947 = vmatmul.f32.gmra.mxu3 %v4511_v10  ;;  %v1643_v51 = vsel %vm1558_vm1, %v1640_v42, %v1642_v15  ;;  %v4903_v42 = vld [vmem:[#allocation71_spill] sm:$0xff] }
 0x256   : > { %v2013_v58 = vpop.f32.mrf.mxu0 }
 0x257   : > { %v2250_v39 = vrot.slane %v2116_v5, 7  ;;  %v2420_v62 = vadd.f32 %v2419_v34, %v2116_v5  ;;  %v2458_v36 = vmul.f32 %v2116_v5, %v2116_v5 }
 0x258   : > { %v1787_v31 = vpop.f32.mrf.mxu2  ;;  %v1900_v8 = vpop.f32.mrf.mxu3 }
 0x259   : > { %v2251_v55 = vsel %vm2233_vm2, %v2249_v27, %v2250_v39  ;;  %v2351_v35 = vsel %vm2233_vm2, %v2250_v39, 0.0  ;;  %v2489_v1 = vadd.f32 %v2488_v9, %v2458_v36  ;;  %v1901_v17 = vadd.f32 %v1900_v8, %v1787_v31  ;;  %v1405_v16 = vpop.f32.mrf.mxu1  ;;  %2060 = vmatmul.f32.gmra.mxu0 %v1641_v46  ;;  %v4898_v9 = vld [vmem:[#allocation67_spill] sm:$0xff]  ;;  %v4900_v36 = vld [vmem:[#allocation24_spill] sm:$0xff] }
 0x25a   : > { %2378 = vst [vmem:[%s4385_s25 + $0x80] sm:$0xff] %v2251_v55  ;;  %v1406_v34 = vadd.f32 %v1405_v16, %v4896_v12  ;;  %v1033_v26 = vrot.slane %v4898_v9, 1  ;;  %v1644_v49 = vrot.slane %v4898_v9, 2  ;;  %v4905_v9 = vld [vmem:[#allocation72_spill] sm:$0xff] }
 0x25b   : > { %2379 = vst [vmem:[%s4385_s25 + $0x88] sm:$0x3] %v2351_v35  ;;  %v2014_v29 = vadd.f32 %v2013_v58, %v1901_v17  ;;  %v4902_v17 = vld [vmem:[#allocation70_spill] sm:$0xff] }
 0x25c   : > { %v1507_v32 = vadd.f32 %v1406_v34, %v805_v53  ;;  %1452 = vmatmul.f32.gmra.mxu1 %v4195_v60  ;;  %v695_v60 = vadd.f32 %v4901_v63, %v4900_v36  ;;  %v1035_v35 = vsel %vm947_vm0, %v1033_v26, %v1034_v11  ;;  %v1645_v53 = vrot.slane %v4899_v24, 2 }
 0x25d   : > { %v2117_v27 = vadd.f32 %v2014_v29, %v1506_v47  ;;  %1837 = vmatmul.f32.gmra.mxu2 %v4496_v4  ;;  %1950 = vmatmul.f32.gmra.mxu3 %v4527_v23  ;;  %v473_v4 = vmul.f32 0.0, %v459_v2 }
 0x25e   : > { %v2016_v13 = vpop.f32.mrf.mxu0  ;;  %v808_v16 = vadd.f32 %v4902_v17, %v695_v60  ;;  %v1646_v29 = vsel %vm1558_vm1, %v1644_v49, %v1645_v53 }
 0x25f   : > { %v2252_v5 = vrot.slane %v2117_v27, 7  ;;  %v2421_v39 = vadd.f32 %v2420_v62, %v2117_v27  ;;  %v2459_v58 = vmul.f32 %v2117_v27, %v2117_v27  ;;  %v1036_v52 = vrot.slane %v473_v4, 1 }
 0x260   : > { %v1790_v47 = vpop.f32.mrf.mxu2  ;;  %v1903_v37 = vpop.f32.mrf.mxu3 }
 0x261   : > { %v2336_v30 = vsel %vm2233_vm2, 0.0, %v2252_v5  ;;  %v2490_v31 = vadd.f32 %v2489_v1, %v2459_v58  ;;  %v1904_v8 = vadd.f32 %v1903_v37, %v1790_v47  ;;  %v1408_v55 = vpop.f32.mrf.mxu1  ;;  %2063 = vmatmul.f32.gmra.mxu0 %v1643_v51  ;;  %v4904_v58 = vld [vmem:[#allocation27_spill] sm:$0xff]  ;;  %v1037_v63 = vsel %vm947_vm0, %v1034_v11, %v1036_v52 }
 0x262   : > { %2380 = vst [vmem:[%s4385_s25 + $0x90] sm:$0xff] %v2336_v30  ;;  %v1409_v62 = vadd.f32 %v1408_v55, %v4903_v42  ;;  %v698_v36 = vadd.f32 %v4905_v9, %v4904_v58 }
 0x263   : > { %v2017_v12 = vadd.f32 %v2016_v13, %v1904_v8  ;;  %v1647_v8 = vrot.slane %v473_v4, 2 }
 0x264   : > { %v1508_v34 = vadd.f32 %v1409_v62, %v808_v16  ;;  %1455 = vmatmul.f32.gmra.mxu1 %v1035_v35  ;;  %v811_v37 = vadd.f32 %v4197_v50, %v698_v36  ;;  %v4907_v50 = vld [vmem:[#allocation7_spill] sm:$0xff]  ;;  %v4909_v36 = vld [vmem:[#allocation10_spill] sm:$0xff] }
 0x265   : > { %v2118_v15 = vadd.f32 %v2017_v12, %v1507_v32  ;;  %1840 = vmatmul.f32.gmra.mxu2 %v4511_v10  ;;  %1953 = vmatmul.f32.gmra.mxu3 %v1641_v46  ;;  %v4908_v62 = vld [vmem:[#allocation75_spill] sm:$0xff] }
 0x266   : > { %v2019_v1 = vpop.f32.mrf.mxu0  ;;  %v701_v49 = vadd.f32 %v4908_v62, %v4907_v50 }
 0x267   : > { %v2253_v27 = vrot.slane %v2118_v15, 7  ;;  %v2422_v26 = vadd.f32 %v2421_v39, %v2118_v15  ;;  %v2460_v2 = vmul.f32 %v2118_v15, %v2118_v15  ;;  %v4906_v39 = vld [vmem:[#allocation74_spill] sm:$0xff] }
 0x268   : > { %v1793_v24 = vpop.f32.mrf.mxu2  ;;  %v1906_v13 = vpop.f32.mrf.mxu3 }
 0x269   : > { %v2254_v32 = vsel %vm2233_vm2, %v2252_v5, %v2253_v27  ;;  %v2352_v10 = vsel %vm2233_vm2, %v2253_v27, 0.0  ;;  %v2491_v46 = vadd.f32 %v2490_v31, %v2460_v2  ;;  %v1907_v60 = vadd.f32 %v1906_v13, %v1793_v24  ;;  %v1411_v47 = vpop.f32.mrf.mxu1  ;;  %2066 = vmatmul.f32.gmra.mxu0 %v1646_v29 }
 0x26a   : > { %2381 = vst [vmem:[%s4385_s25 + $0x98] sm:$0xff] %v2254_v32  ;;  %v1412_v30 = vadd.f32 %v1411_v47, %v4906_v39  ;;  %v1648_v5 = vsel %vm1558_vm1, %v1645_v53, %v1647_v8  ;;  %v704_v24 = vadd.f32 %v4215_v43, %v4909_v36 }
 0x26b   : > { %2382 = vst [vmem:[%s4385_s25 + $0xa0] sm:$0x3] %v2352_v10  ;;  %v2020_v55 = vadd.f32 %v2019_v1, %v1907_v60 }
 0x26c   : > { %v1509_v35 = vadd.f32 %v1412_v30, %v811_v37  ;;  %1458 = vmatmul.f32.gmra.mxu1 %v1037_v63  ;;  %v817_v60 = vadd.f32 %v4224_v0, %v704_v24 }
 0x26d   : > { %v2119_v17 = vadd.f32 %v2020_v55, %v1508_v34  ;;  %1843 = vmatmul.f32.gmra.mxu2 %v4527_v23  ;;  %1956 = vmatmul.f32.gmra.mxu3 %v1643_v51  ;;  %v814_v23 = vadd.f32 %v4211_v21, %v701_v49  ;;  %v4912_v49 = vld [vmem:[#allocation77_spill] sm:$0xff] }
 0x26e   : > { %v2022_v11 = vpop.f32.mrf.mxu0 }
 0x26f   : > { %v2255_v31 = vrot.slane %v2119_v17, 7  ;;  %v2423_v16 = vadd.f32 %v2422_v26, %v2119_v17  ;;  %v2461_v42 = vmul.f32 %v2119_v17, %v2119_v17  ;;  %v4910_v17 = vld [vmem:[#allocation13_spill] sm:$0xff] }
 0x270   : > { %v1796_v12 = vpop.f32.mrf.mxu2  ;;  %v1909_v4 = vpop.f32.mrf.mxu3 }
 0x271   : > { %v2337_v52 = vsel %vm2233_vm2, 0.0, %v2255_v31  ;;  %v2492_v15 = vadd.f32 %v2491_v46, %v2461_v42  ;;  %v1910_v1 = vadd.f32 %v1909_v4, %v1796_v12  ;;  %v1414_v34 = vpop.f32.mrf.mxu1  ;;  %2069 = vmatmul.f32.gmra.mxu0 %v1648_v5 }
 0x272   : > { %2383 = vst [vmem:[%s4385_s25 + $0xa8] sm:$0xff] %v2337_v52  ;;  %v1415_v51 = vadd.f32 %v1414_v34, %v4213_v18 }
 0x273   : > { %v2023_v53 = vadd.f32 %v2022_v11, %v1910_v1  ;;  %v707_v11 = vadd.f32 %v4228_v40, %v4910_v17 }
 0x274   : > { %v1510_v29 = vadd.f32 %v1415_v51, %v814_v23  ;;  %v4913_v51 = vld [vmem:[#allocation16_spill] sm:$0xff] }
 0x275   : > { %v2120_v27 = vadd.f32 %v2023_v53, %v1509_v35  ;;  %v4914_v53 = vld [vmem:[#allocation78_spill] sm:$0xff] }
 0x276   : > { %v2025_v26 = vpop.f32.mrf.mxu0 }
 0x277   : > { %v2256_v2 = vrot.slane %v2120_v27, 7  ;;  %v2424_v58 = vadd.f32 %v2423_v16, %v2120_v27  ;;  %v2462_v9 = vmul.f32 %v2120_v27, %v2120_v27 }
 0x278   : > { %v1799_v13 = vpop.f32.mrf.mxu2  ;;  %v1912_v63 = vpop.f32.mrf.mxu3 }
 0x279   : > { %v2257_v32 = vsel %vm2233_vm2, %v2255_v31, %v2256_v2  ;;  %v2353_v21 = vsel %vm2233_vm2, %v2256_v2, 0.0  ;;  %v2493_v10 = vadd.f32 %v2492_v15, %v2462_v9  ;;  %v1913_v18 = vadd.f32 %v1912_v63, %v1799_v13  ;;  %v1417_v46 = vpop.f32.mrf.mxu1 }
 0x27a   : > { %2384 = vst [vmem:[%s4385_s25 + $0xb0] sm:$0xff] %v2257_v32  ;;  %v1418_v47 = vadd.f32 %v1417_v46, %v4226_v59  ;;  %v4911_v59 = vld [vmem:[#allocation76_spill] sm:$0xff] }
 0x27b   : > { %2385 = vst [vmem:[%s4385_s25 + $0xb8] sm:$0x3] %v2353_v21  ;;  %v2026_v37 = vadd.f32 %v2025_v26, %v1913_v18  ;;  %v820_v62 = vadd.f32 %v4911_v59, %v707_v11  ;;  %v4917_v11 = vld [vmem:[#allocation80_spill] sm:$0xff] }
 0x27c   : > { %v1511_v39 = vadd.f32 %v1418_v47, %v817_v60 }
 0x27d   : > { %v2121_v30 = vadd.f32 %v2026_v37, %v1510_v29  ;;  %v710_v29 = vadd.f32 %v4914_v53, %v4913_v51  ;;  %v4915_v37 = vld [vmem:[#allocation19_spill] sm:$0xff] }
 0x27e   : > { %v2028_v43 = vpop.f32.mrf.mxu0 }
 0x27f   : > { %v2258_v8 = vrot.slane %v2121_v30, 7  ;;  %v2425_v55 = vadd.f32 %v2424_v58, %v2121_v30  ;;  %v2463_v35 = vmul.f32 %v2121_v30, %v2121_v30  ;;  %v823_v13 = vadd.f32 %v4243_v6, %v710_v29 }
 0x280   : > { %v1802_v5 = vpop.f32.mrf.mxu2  ;;  %v1915_v31 = vpop.f32.mrf.mxu3 }
 0x281   : > { %v2338_v16 = vsel %vm2233_vm2, 0.0, %v2258_v8  ;;  %v2494_v0 = vadd.f32 %v2493_v10, %v2463_v35  ;;  %v1916_v42 = vadd.f32 %v1915_v31, %v1802_v5  ;;  %v1420_v50 = vpop.f32.mrf.mxu1 }
 0x282   : > { %2386 = vst [vmem:[%s4385_s25 + $0xc0] sm:$0xff] %v2338_v16  ;;  %v1421_v12 = vadd.f32 %v1420_v50, %v4912_v49  ;;  %v4919_v49 = vld [vmem:[#allocation81_spill] sm:$0xff] }
 0x283   : > { %v2029_v4 = vadd.f32 %v2028_v43, %v1916_v42 }
 0x284   : > { %v1512_v52 = vadd.f32 %v1421_v12, %v820_v62  ;;  %v4918_v62 = vld [vmem:[#allocation22_spill] sm:$0xff] }
 0x285   : > { %v2122_v15 = vadd.f32 %v2029_v4, %v1511_v39  ;;  %v713_v39 = vadd.f32 %v4247_v45, %v4915_v37  ;;  %v716_v12 = vadd.f32 %v4919_v49, %v4918_v62 }
 0x286   : > { %v2031_v1 = vpop.f32.mrf.mxu0 }
 0x287   : > { %v2259_v34 = vrot.slane %v2122_v15, 7  ;;  %v2426_v40 = vadd.f32 %v2425_v55, %v2122_v15  ;;  %v2464_v23 = vmul.f32 %v2122_v15, %v2122_v15  ;;  %v829_v51 = vadd.f32 %v4262_v28, %v716_v12 }
 0x288   : > { %v1805_v27 = vpop.f32.mrf.mxu2  ;;  %v1918_v26 = vpop.f32.mrf.mxu3 }
 0x289   : > { %v2260_v2 = vsel %vm2233_vm2, %v2258_v8, %v2259_v34  ;;  %v2354_v58 = vsel %vm2233_vm2, %v2259_v34, 0.0  ;;  %v2495_v9 = vadd.f32 %v2494_v0, %v2464_v23  ;;  %v1919_v36 = vadd.f32 %v1918_v26, %v1805_v27  ;;  %v1423_v24 = vpop.f32.mrf.mxu1 }
 0x28a   : > { %2387 = vst [vmem:[%s4385_s25 + $0xc8] sm:$0xff] %v2260_v2  ;;  %v1424_v63 = vadd.f32 %v1423_v24, %v4245_v3  ;;  %v4916_v3 = vld [vmem:[#allocation79_spill] sm:$0xff]  ;;  %v4920_v24 = vld [vmem:[#allocation25_spill] sm:$0xff] }
 0x28b   : > { %2388 = vst [vmem:[%s4385_s25 + $0xd0] sm:$0x3] %v2354_v58  ;;  %v2032_v32 = vadd.f32 %v2031_v1, %v1919_v36  ;;  %v826_v17 = vadd.f32 %v4916_v3, %v713_v39 }
 0x28c   : > { %v1513_v21 = vadd.f32 %v1424_v63, %v823_v13  ;;  %v719_v13 = vadd.f32 %v4266_v61, %v4920_v24 }
 0x28d   : > { %v2123_v10 = vadd.f32 %v2032_v32, %v1512_v52 }
 0x28e   : > { %v2034_v18 = vpop.f32.mrf.mxu0 }
 0x28f   : > { %v2261_v46 = vrot.slane %v2123_v10, 7  ;;  %v2427_v60 = vadd.f32 %v2426_v40, %v2123_v10  ;;  %v2465_v47 = vmul.f32 %v2123_v10, %v2123_v10 }
 0x290   : > { %v1808_v30 = vpop.f32.mrf.mxu2  ;;  %v1921_v43 = vpop.f32.mrf.mxu3 }
 0x291   : > { %v2339_v8 = vsel %vm2233_vm2, 0.0, %v2261_v46  ;;  %v2496_v6 = vadd.f32 %v2495_v9, %v2465_v47  ;;  %v1922_v55 = vadd.f32 %v1921_v43, %v1808_v30  ;;  %v1426_v35 = vpop.f32.mrf.mxu1 }
 0x292   : > { %2389 = vst [vmem:[%s4385_s25 + $0xd8] sm:$0xff] %v2339_v8  ;;  %v1427_v5 = vadd.f32 %v1426_v35, %v4917_v11  ;;  %v4924_v35 = vld [vmem:[#allocation84_spill] sm:$0xff] }
 0x293   : > { %v2035_v31 = vadd.f32 %v2034_v18, %v1922_v55  ;;  %v4923_v55 = vld [vmem:[#allocation28_spill] sm:$0xff] }
 0x294   : > { %v1514_v16 = vadd.f32 %v1427_v5, %v826_v17  ;;  %v722_v3 = vadd.f32 %v4924_v35, %v4923_v55 }
 0x295   : > { %v2124_v0 = vadd.f32 %v2035_v31, %v1513_v21 }
 0x296   : > { %v2037_v42 = vpop.f32.mrf.mxu0 }
 0x297   : > { %v2262_v50 = vrot.slane %v2124_v0, 7  ;;  %v2428_v45 = vadd.f32 %v2427_v60, %v2124_v0  ;;  %v2466_v59 = vmul.f32 %v2124_v0, %v2124_v0  ;;  %v4922_v60 = vld [vmem:[#allocation83_spill] sm:$0xff] }
 0x298   : > { %v1811_v4 = vpop.f32.mrf.mxu2  ;;  %v1924_v52 = vpop.f32.mrf.mxu3 }
 0x299   : > { %v2263_v15 = vsel %vm2233_vm2, %v2261_v46, %v2262_v50  ;;  %v2355_v1 = vsel %vm2233_vm2, %v2262_v50, 0.0  ;;  %v2497_v34 = vadd.f32 %v2496_v6, %v2466_v59  ;;  %v1925_v40 = vadd.f32 %v1924_v52, %v1811_v4  ;;  %v1429_v23 = vpop.f32.mrf.mxu1 }
 0x29a   : > { %2390 = vst [vmem:[%s4385_s25 + $0xe0] sm:$0xff] %v2263_v15  ;;  %v1430_v53 = vadd.f32 %v1429_v23, %v4264_v25  ;;  %v4921_v25 = vld [vmem:[#allocation82_spill] sm:$0xff]  ;;  %v835_v50 = vadd.f32 %v4281_v41, %v722_v3 }
 0x29b   : > { %2391 = vst [vmem:[%s4385_s25 + $0xe8] sm:$0x3] %v2355_v1  ;;  %v2038_v29 = vadd.f32 %v2037_v42, %v1925_v40  ;;  %v832_v46 = vadd.f32 %v4921_v25, %v719_v13  ;;  %v4925_v1 = vld [vmem:[#allocation8_spill] sm:$0xff] }
 0x29c   : > { %v1515_v27 = vadd.f32 %v1430_v53, %v829_v51 }
 0x29d   : > { %v2125_v26 = vadd.f32 %v2038_v29, %v1514_v16 }
 0x29e   : > { %v2040_v2 = vpop.f32.mrf.mxu0 }
 0x29f   : > { %v2264_v58 = vrot.slane %v2125_v26, 7  ;;  %v2429_v9 = vadd.f32 %v2428_v45, %v2125_v26  ;;  %v2467_v36 = vmul.f32 %v2125_v26, %v2125_v26  ;;  %v4927_v26 = vld [vmem:[#allocation86_spill] sm:$0xff] }
 0x2a0   : > { %v1814_v63 = vpop.f32.mrf.mxu2  ;;  %v1927_v32 = vpop.f32.mrf.mxu3 }
 0x2a1   : > { %v2340_v21 = vsel %vm2233_vm2, 0.0, %v2264_v58  ;;  %v2498_v28 = vadd.f32 %v2497_v34, %v2467_v36  ;;  %v1928_v10 = vadd.f32 %v1927_v32, %v1814_v63  ;;  %v1432_v18 = vpop.f32.mrf.mxu1  ;;  %v725_v34 = vadd.f32 %v4285_v14, %v4925_v1  ;;  %v4928_v32 = vld [vmem:[#allocation11_spill] sm:$0xff]  ;;  %v4933_v1 = vld [vmem:[#allocation17_spill] sm:$0xff] }
 0x2a2   : > { %2392 = vst [vmem:[%s4385_s25 + $0xf0] sm:$0xff] %v2340_v21  ;;  %v1433_v47 = vadd.f32 %v1432_v18, %v4922_v60  ;;  %v4929_v21 = vld [vmem:[#allocation87_spill] sm:$0xff] }
 0x2a3   : > { %v2041_v37 = vadd.f32 %v2040_v2, %v1928_v10 }
 0x2a4   : > { %v1516_v39 = vadd.f32 %v1433_v47, %v832_v46 }
 0x2a5   : > { %v2126_v30 = vadd.f32 %v2041_v37, %v1515_v27 }
 0x2a6   : > { %v2043_v43 = vpop.f32.mrf.mxu0 }
 0x2a7   : > { %v2265_v8 = vrot.slane %v2126_v30, 7  ;;  %v2430_v61 = vadd.f32 %v2429_v9, %v2126_v30  ;;  %v2468_v6 = vmul.f32 %v2126_v30, %v2126_v30 }
 0x2a8   : > { %v1817_v17 = vpop.f32.mrf.mxu2  ;;  %v1930_v11 = vpop.f32.mrf.mxu3 }
 0x2a9   : > { %v2266_v5 = vsel %vm2233_vm2, %v2264_v58, %v2265_v8  ;;  %v2356_v31 = vsel %vm2233_vm2, %v2265_v8, 0.0  ;;  %v2499_v16 = vadd.f32 %v2498_v28, %v2468_v6  ;;  %v1931_v0 = vadd.f32 %v1930_v11, %v1817_v17  ;;  %v1435_v42 = vpop.f32.mrf.mxu1  ;;  %v4930_v17 = vld [vmem:[#allocation14_spill] sm:$0xff] }
 0x2aa   : > { %2393 = vst [vmem:[%s4385_s25 + $0xf8] sm:$0xff] %v2266_v5  ;;  %v1436_v45 = vadd.f32 %v1435_v42, %v4283_v22  ;;  %v4926_v22 = vld [vmem:[#allocation85_spill] sm:$0xff]  ;;  %v728_v28 = vadd.f32 %v4929_v21, %v4928_v32  ;;  %v731_v11 = vadd.f32 %v4304_v48, %v4930_v17  ;;  %v4935_v32 = vld [vmem:[#allocation20_spill] sm:$0xff] }
 0x2ab   : > { %2394 = vst [vmem:[%s4385_s25 + $0x100] sm:$0x3] %v2356_v31  ;;  %v2044_v59 = vadd.f32 %v2043_v43, %v1931_v0  ;;  %v838_v27 = vadd.f32 %v4926_v22, %v725_v34  ;;  %v4934_v34 = vld [vmem:[#allocation90_spill] sm:$0xff]  ;;  %v737_v21 = vadd.f32 %v4323_v19, %v4935_v32 }
 0x2ac   : > { %v1517_v62 = vadd.f32 %v1436_v45, %v835_v50  ;;  %v4932_v45 = vld [vmem:[#allocation89_spill] sm:$0xff] }
 0x2ad   : > { %v2127_v49 = vadd.f32 %v2044_v59, %v1516_v39  ;;  %v841_v39 = vadd.f32 %v4300_v44, %v728_v28 }
 0x2ae   : > { %v2046_v12 = vpop.f32.mrf.mxu0 }
 0x2af   : > { %v2267_v4 = vrot.slane %v2127_v49, 7  ;;  %v2431_v52 = vadd.f32 %v2430_v61, %v2127_v49  ;;  %v2469_v15 = vmul.f32 %v2127_v49, %v2127_v49 }
 0x2b0   : > { %v1820_v40 = vpop.f32.mrf.mxu2  ;;  %v1933_v23 = vpop.f32.mrf.mxu3 }
 0x2b1   : > { %v2341_v51 = vsel %vm2233_vm2, 0.0, %v2267_v4  ;;  %v2500_v41 = vadd.f32 %v2499_v16, %v2469_v15  ;;  %v1934_v53 = vadd.f32 %v1933_v23, %v1820_v40  ;;  %v1438_v29 = vpop.f32.mrf.mxu1  ;;  %v734_v40 = vadd.f32 %v4934_v34, %v4933_v1 }
 0x2b2   : > { %2395 = vst [vmem:[%s4385_s25 + $0x108] sm:$0xff] %v2341_v51  ;;  %v1439_v2 = vadd.f32 %v1438_v29, %v4927_v26 }
 0x2b3   : > { %v2047_v58 = vadd.f32 %v2046_v12, %v1934_v53  ;;  %v847_v26 = vadd.f32 %v4319_v38, %v734_v40 }
 0x2b4   : > { %v1518_v9 = vadd.f32 %v1439_v2, %v838_v27 }
 0x2b5   : > { %v2128_v36 = vadd.f32 %v2047_v58, %v1517_v62 }
 0x2b6   : > { %v2049_v24 = vpop.f32.mrf.mxu0 }
 0x2b7   : > { %v2268_v13 = vrot.slane %v2128_v36, 7  ;;  %v2432_v14 = vadd.f32 %v2431_v52, %v2128_v36  ;;  %v2470_v63 = vmul.f32 %v2128_v36, %v2128_v36 }
 0x2b8   : > { %v1823_v10 = vpop.f32.mrf.mxu2  ;;  %v1936_v18 = vpop.f32.mrf.mxu3 }
 0x2b9   : > { %v2269_v25 = vsel %vm2233_vm2, %v2267_v4, %v2268_v13  ;;  %v2357_v46 = vsel %vm2233_vm2, %v2268_v13, 0.0  ;;  %v2501_v60 = vadd.f32 %v2500_v41, %v2470_v63  ;;  %v1937_v47 = vadd.f32 %v1936_v18, %v1823_v10  ;;  %v1441_v37 = vpop.f32.mrf.mxu1 }
 0x2ba   : > { %2396 = vst [vmem:[%s4385_s25 + $0x110] sm:$0xff] %v2269_v25  ;;  %v1442_v30 = vadd.f32 %v1441_v37, %v4302_v54  ;;  %v4931_v54 = vld [vmem:[#allocation88_spill] sm:$0xff] }
 0x2bb   : > { %2397 = vst [vmem:[%s4385_s25 + $0x118] sm:$0x3] %v2357_v46  ;;  %v2050_v43 = vadd.f32 %v2049_v24, %v1937_v47  ;;  %v844_v50 = vadd.f32 %v4931_v54, %v731_v11  ;;  %v4937_v47 = vld [vmem:[#allocation92_spill] sm:$0xff] }
 0x2bc   : > { %v1519_v8 = vadd.f32 %v1442_v30, %v841_v39 }
 0x2bd   : > { %v2129_v61 = vadd.f32 %v2050_v43, %v1518_v9 }
 0x2be   : > { %v2052_v6 = vpop.f32.mrf.mxu0 }
 0x2bf   : > { %v2270_v55 = vrot.slane %v2129_v61, 7  ;;  %v2433_v35 = vadd.f32 %v2432_v14, %v2129_v61  ;;  %v2471_v3 = vmul.f32 %v2129_v61, %v2129_v61 }
 0x2c0   : > { %v1826_v5 = vpop.f32.mrf.mxu2  ;;  %v1939_v31 = vpop.f32.mrf.mxu3 }
 0x2c1   : > { %v2342_v16 = vsel %vm2233_vm2, 0.0, %v2270_v55  ;;  %v2502_v44 = vadd.f32 %v2501_v60, %v2471_v3  ;;  %v1940_v0 = vadd.f32 %v1939_v31, %v1826_v5  ;;  %v1444_v42 = vpop.f32.mrf.mxu1 }
 0x2c2   : > { %2398 = vst [vmem:[%s4385_s25 + $0x120] sm:$0xff] %v2342_v16  ;;  %v1445_v59 = vadd.f32 %v1444_v42, %v4932_v45 }
 0x2c3   : > { %v2053_v62 = vadd.f32 %v2052_v6, %v1940_v0 }
 0x2c4   : > { %v1520_v49 = vadd.f32 %v1445_v59, %v844_v50 }
 0x2c5   : > { %v2130_v12 = vadd.f32 %v2053_v62, %v1519_v8 }
 0x2c6   : > { %v2055_v4 = vpop.f32.mrf.mxu0 }
 0x2c7   : > { %v2271_v52 = vrot.slane %v2130_v12, 7  ;;  %v2434_v48 = vadd.f32 %v2433_v35, %v2130_v12  ;;  %v2472_v15 = vmul.f32 %v2130_v12, %v2130_v12  ;;  %v4939_v35 = vld [vmem:[#allocation93_spill] sm:$0xff] }
 0x2c8   : > { %v1829_v23 = vpop.f32.mrf.mxu2  ;;  %v1942_v51 = vpop.f32.mrf.mxu3 }
 0x2c9   : > { %v2272_v41 = vsel %vm2233_vm2, %v2270_v55, %v2271_v52  ;;  %v2358_v53 = vsel %vm2233_vm2, %v2271_v52, 0.0  ;;  %v2503_v29 = vadd.f32 %v2502_v44, %v2472_v15  ;;  %v1943_v22 = vadd.f32 %v1942_v51, %v1829_v23  ;;  %v1447_v27 = vpop.f32.mrf.mxu1  ;;  %v4938_v55 = vld [vmem:[#allocation23_spill] sm:$0xff]  ;;  %v4940_v52 = vld [vmem:[#allocation26_spill] sm:$0xff] }
 0x2ca   : > { %2399 = vst [vmem:[%s4385_s25 + $0x128] sm:$0xff] %v2272_v41  ;;  %v1448_v2 = vadd.f32 %v1447_v27, %v4321_v20  ;;  %v4936_v20 = vld [vmem:[#allocation91_spill] sm:$0xff]  ;;  %v740_v3 = vadd.f32 %v4939_v35, %v4938_v55  ;;  %v4941_v51 = vld [vmem:[#allocation94_spill] sm:$0xff] }
 0x2cb   : > { %2400 = vst [vmem:[%s4385_s25 + $0x130] sm:$0x3] %v2358_v53  ;;  %v2056_v58 = vadd.f32 %v2055_v4, %v1943_v22  ;;  %v850_v60 = vadd.f32 %v4936_v20, %v737_v21 }
 0x2cc   : > { %v1521_v9 = vadd.f32 %v1448_v2, %v847_v26  ;;  %v853_v42 = vadd.f32 %v4338_v56, %v740_v3 }
 0x2cd   : > { %v2131_v36 = vadd.f32 %v2056_v58, %v1520_v49  ;;  %v4942_v58 = vld [vmem:[#allocation29_spill] sm:$0xff] }
 0x2ce   : > { %v2058_v24 = vpop.f32.mrf.mxu0 }
 0x2cf   : > { %v2273_v13 = vrot.slane %v2131_v36, 7  ;;  %v2435_v14 = vadd.f32 %v2434_v48, %v2131_v36  ;;  %v2473_v63 = vmul.f32 %v2131_v36, %v2131_v36  ;;  %v743_v48 = vadd.f32 %v4342_v57, %v4940_v52 }
 0x2d0   : > { %v1832_v28 = vpop.f32.mrf.mxu2  ;;  %v1945_v10 = vpop.f32.mrf.mxu3 }
 0x2d1   : > { %v2343_v18 = vsel %vm2233_vm2, 0.0, %v2273_v13  ;;  %v2504_v38 = vadd.f32 %v2503_v29, %v2473_v63  ;;  %v1946_v25 = vadd.f32 %v1945_v10, %v1832_v28  ;;  %v1450_v46 = vpop.f32.mrf.mxu1  ;;  %v4944_v28 = vld [vmem:[#allocation96_spill] sm:$0xff] }
 0x2d2   : > { %2401 = vst [vmem:[%s4385_s25 + $0x138] sm:$0xff] %v2343_v18  ;;  %v1451_v37 = vadd.f32 %v1450_v46, %v4937_v47  ;;  %v4945_v18 = vld [vmem:[#allocation97_spill] sm:$0xff] }
 0x2d3   : > { %v2059_v39 = vadd.f32 %v2058_v24, %v1946_v25 }
 0x2d4   : > { %v1522_v30 = vadd.f32 %v1451_v37, %v850_v60 }
 0x2d5   : > { %v2132_v43 = vadd.f32 %v2059_v39, %v1521_v9  ;;  %v4943_v9 = vld [vmem:[#allocation95_spill] sm:$0xff] }
 0x2d6   : > { %v2061_v8 = vpop.f32.mrf.mxu0  ;;  %v746_v36 = vadd.f32 %v4943_v9, %v4942_v58 }
 0x2d7   : > { %v2274_v61 = vrot.slane %v2132_v43, 7  ;;  %v2436_v19 = vadd.f32 %v2435_v14, %v2132_v43  ;;  %v2474_v6 = vmul.f32 %v2132_v43, %v2132_v43 }
 0x2d8   : > { %v1835_v17 = vpop.f32.mrf.mxu2  ;;  %v1948_v11 = vpop.f32.mrf.mxu3  ;;  %v859_v10 = vadd.f32 %v4944_v28, %v746_v36 }
 0x2d9   : > { %v2275_v5 = vsel %vm2233_vm2, %v2273_v13, %v2274_v61  ;;  %v2359_v31 = vsel %vm2233_vm2, %v2274_v61, 0.0  ;;  %v2505_v16 = vadd.f32 %v2504_v38, %v2474_v6  ;;  %v1949_v44 = vadd.f32 %v1948_v11, %v1835_v17  ;;  %v1453_v0 = vpop.f32.mrf.mxu1 }
 0x2da   : > { %2402 = vst [vmem:[%s4385_s25 + $0x140] sm:$0xff] %v2275_v5  ;;  %v1454_v54 = vadd.f32 %v1453_v0, %v4340_v33  ;;  %v856_v33 = vadd.f32 %v4348_v7, %v743_v48 }
 0x2db   : > { %2403 = vst [vmem:[%s4385_s25 + $0x148] sm:$0x3] %v2359_v31  ;;  %v2062_v50 = vadd.f32 %v2061_v8, %v1949_v44 }
 0x2dc   : > { %v1523_v45 = vadd.f32 %v1454_v54, %v853_v42 }
 0x2dd   : > { %v2133_v59 = vadd.f32 %v2062_v50, %v1522_v30 }
 0x2de   : > { %v2064_v62 = vpop.f32.mrf.mxu0 }
 0x2df   : > { %v2276_v49 = vrot.slane %v2133_v59, 7  ;;  %v2437_v12 = vadd.f32 %v2436_v19, %v2133_v59  ;;  %v2475_v4 = vmul.f32 %v2133_v59, %v2133_v59 }
 0x2e0   : > { %v1838_v15 = vpop.f32.mrf.mxu2  ;;  %v1951_v1 = vpop.f32.mrf.mxu3 }
 0x2e1   : > { %v2344_v34 = vsel %vm2233_vm2, 0.0, %v2276_v49  ;;  %v2506_v56 = vadd.f32 %v2505_v16, %v2475_v4  ;;  %v1952_v40 = vadd.f32 %v1951_v1, %v1838_v15  ;;  %v1456_v23 = vpop.f32.mrf.mxu1 }
 0x2e2   : > { %2404 = vst [vmem:[%s4385_s25 + $0x150] sm:$0xff] %v2344_v34  ;;  %v1457_v41 = vadd.f32 %v1456_v23, %v4941_v51 }
 0x2e3   : > { %v2065_v53 = vadd.f32 %v2064_v62, %v1952_v40 }
 0x2e4   : > { %v1524_v29 = vadd.f32 %v1457_v41, %v856_v33 }
 0x2e5   : > { %v2134_v22 = vadd.f32 %v2065_v53, %v1523_v45 }
 0x2e6   : > { %v2067_v27 = vpop.f32.mrf.mxu0 }
 0x2e7   : > { %v2277_v26 = vrot.slane %v2134_v22, 7  ;;  %v2438_v57 = vadd.f32 %v2437_v12, %v2134_v22  ;;  %v2476_v2 = vmul.f32 %v2134_v22, %v2134_v22 }
 0x2e8   : > { %v1841_v24 = vpop.f32.mrf.mxu2  ;;  %v1954_v13 = vpop.f32.mrf.mxu3 }
 0x2e9   : > { %v2278_v14 = vsel %vm2233_vm2, %v2276_v49, %v2277_v26  ;;  %v2360_v7 = vsel %vm2233_vm2, %v2277_v26, 0.0  ;;  %v2507_v63 = vadd.f32 %v2506_v56, %v2476_v2  ;;  %v1955_v32 = vadd.f32 %v1954_v13, %v1841_v24  ;;  %v1459_v21 = vpop.f32.mrf.mxu1 }
 0x2ea   : > { %2405 = vst [vmem:[%s4385_s25 + $0x158] sm:$0xff] %v2278_v14  ;;  %v1460_v38 = vadd.f32 %v1459_v21, %v4945_v18 }
 0x2eb   : > { %2406 = vst [vmem:[%s4385_s25 + $0x160] sm:$0x3] %v2360_v7  ;;  %v2068_v25 = vadd.f32 %v2067_v27, %v1955_v32 }
 0x2ec   : > { %v1525_v46 = vadd.f32 %v1460_v38, %v859_v10 }
 0x2ed   : > { %v2135_v20 = vadd.f32 %v2068_v25, %v1524_v29 }
 0x2ee   : > { %v2070_v39 = vpop.f32.mrf.mxu0 }
 0x2ef   : > { %v2279_v60 = vrot.slane %v2135_v20, 7  ;;  %v2439_v47 = vadd.f32 %v2438_v57, %v2135_v20  ;;  %v2477_v37 = vmul.f32 %v2135_v20, %v2135_v20 }
 0x2f0   : > { %v1844_v30 = vpop.f32.mrf.mxu2  ;;  %v1957_v43 = vpop.f32.mrf.mxu3 }
 0x2f1   : > { %v2345_v8 = vsel %vm2233_vm2, 0.0, %v2279_v60  ;;  %v2508_v61 = vadd.f32 %v2507_v63, %v2477_v37  ;;  %v1958_v19 = vadd.f32 %v1957_v43, %v1844_v30 }
 0x2f2   : > { %2407 = vst [vmem:[%s4385_s25 + $0x168] sm:$0xff] %v2345_v8 }
 0x2f3   : > { %v2071_v6 = vadd.f32 %v2070_v39, %v1958_v19 }
 0x2f5   : > { %v2136_v55 = vadd.f32 %v2071_v6, %v1525_v46 }
 0x2f7   : > { %v2280_v35 = vrot.slane %v2136_v55, 7  ;;  %v2440_v3 = vadd.f32 %v2439_v47, %v2136_v55  ;;  %v2478_v17 = vmul.f32 %v2136_v55, %v2136_v55 }
 0x2f9   : > { %v2281_v11 = vsel %vm2233_vm2, %v2279_v60, %v2280_v35  ;;  %v2361_v5 = vsel %vm2233_vm2, %v2280_v35, 0.0  ;;  %v2441_v31 = vrot.slane %v2440_v3, 4  ;;  %v2509_v16 = vadd.f32 %v2508_v61, %v2478_v17 }
 0x2fa   : > { %2408 = vst [vmem:[%s4385_s25 + $0x170] sm:$0xff] %v2281_v11 }
 0x2fb   : > { %2409 = vst [vmem:[%s4385_s25 + $0x178] sm:$0x3] %v2361_v5  ;;  %v2442_v44 = vadd.f32 %v2441_v31, %v2440_v3  ;;  %v2510_v0 = vrot.slane %v2509_v16, 4 }
 0x2fd   : > { %v2443_v42 = vrot.slane %v2442_v44, 2  ;;  %v2511_v54 = vadd.f32 %v2510_v0, %v2509_v16 }
 0x2ff   : > { %v2444_v50 = vadd.f32 %v2443_v42, %v2442_v44  ;;  %v2512_v45 = vrot.slane %v2511_v54, 2 }
 0x301   : > { %v2445_v59 = vrot.slane %v2444_v50, 1  ;;  %v2513_v62 = vadd.f32 %v2512_v45, %v2511_v54 }
 0x303   : > { %v2514_v49 = vrot.slane %v2513_v62, 1  ;;  %v2446_v12 = vadd.f32 %v2445_v59, %v2444_v50 }
 0x305   : > { %v2515_v4 = vadd.f32 %v2514_v49, %v2513_v62 }
 0x307   : > { %v2516_v52 = vsel %vm2233_vm2, %v2446_v12, %v2515_v4 }
 0x308   : > { %2517 = vst [vmem:[%s349_s9] sm:$0x3] %v2516_v52 }
 0x309   : > { %2986 = shalt.err (!%p2983_p5)
}
 0x30a   : > { %2872 = dma.vmem_to_hbm [thread:$0]  (%p3109_p4), %s2547_s13, 32, %s2549_s10, %s2529_s21  }
 0x30b PF: > { %p2879_p6 = scmp.ge.s32.totalorder %s3037_s23, 2  ;;  %s2573_s27 = sand.u32 1, %s3017_s18  }
 0x30c   : > { %s2574_s15 = scalar_lea.sflag [#allocation4], %s2573_s27 }
 0x30d   : > { %p2875_p7 = pnand %p2879_p6, %p3116_p8 }
 0x30f   : > { %p2876_p9 = pneg %p2875_p7 }
 0x311   : > { %3012 = dma.done.wait (%p2876_p9), %s2574_s15, 32  }
 0x312   : > { %3014 = vsyncadd (%p2876_p9), %s2574_s15, 4294967264  ;;  %s19_s23 = sadd.s32 1, %s3037_s23   ;;  %s4946_s18 = smov %s3021_s19 }
 0x313   : > { %p16_p10 = scmp.ge.s32.totalorder %s19_s23, 4   ;;  %s4947_s19 = smov %s3025_s20 }
 0x314   : > { %s4948_s20 = smov %s3122_s6  ;;  %s4949_s21 = smov %s3033_s22 }
 0x315   : > { %s4950_s22 = smov %s4952_s26  ;;  %18 = sbr.rel (!%p16_p10) target bundleno = 4 (0x4), region = 91 }
 0x31a   :  { %2580 = vsyncpa [#allocation4], 1 }
 0x31b   :  { %2582 = vsyncpa [#allocation4 + $0x1], 1 }

</bundles_post_ra>
